<compile_context>
chip_gen: v6e
topology: v6e:2x2x1
jax: 0.10.0
libtpu: 0.0.40
codegen_flags: <defaults>
</compile_context>

<pallas_src>
import jax
import jax.numpy as jnp
from jax.experimental import pallas as pl
from jax.experimental.pallas import tpu as pltpu

# ---------------- configuration (small, consistent with the module) --------
V = 50            # vocab size            (w2v.n_vocabs)
E = 16            # embedding factors     (w2v.n_embfactors)
T = 8             # seqlen
H = 32            # LSTM hidden size
NDIR = 2          # bidirectional
B = 2             # batch
N_LABELS = 5
N_KERNELS = 10
KERNEL_SZS = (3, 4, 5)
KS_MAX = max(KERNEL_SZS)
H1 = 64           # classifier hidden size (classifier_szs=[H1])
EPS = 1e-5

L2 = NDIR * H                                    # conv "length" axis (=64)
CONV_LENS = [L2 - ks + 1 for ks in KERNEL_SZS]   # Conv1d output lengths
POOL_LENS = [(lc - 3) // 3 + 1 for lc in CONV_LENS]
assert len(set(POOL_LENS)) == 1, "torch.cat(dim=1) needs equal pooled lengths"
P = POOL_LENS[0]                                 # pooled length (=20)
LC = 3 * P                                       # conv positions used by pool
assert LC <= min(CONV_LENS) and LC + KS_MAX - 1 <= L2
NC = len(KERNEL_SZS) * N_KERNELS                 # stacked conv channels (=30)
F_IN = NC * P                                    # classifier input (=600)


def _sigmoid(x):
    return 1.0 / (1.0 + jnp.exp(-x))


# ----------------------------- fused kernel --------------------------------
def _cnnrnn_kernel(tok_ref, emb_ref, wih_ref, blstm_ref, whhf_ref, whhb_ref,
                   wconv_ref, cscale_ref, cshift_ref, sel_ref,
                   w1_ref, b1_ref, w2c_ref, b2_ref,
                   out_ref, ys_scr, feat_scr):
    f32, bf16 = jnp.float32, jnp.bfloat16
    H4, H8 = 4 * H, 8 * H

    # -- WordEmbedding (eval): one-hot @ emb; rows are time-major (t*B + b) --
    tok = tok_ref[...]                                        # (T*B, 1) int32
    vocab = jax.lax.broadcasted_iota(jnp.int32, (T * B, V), 1)
    onehot = jnp.where(vocab == tok, 1.0, 0.0).astype(bf16)   # (T*B, V)
    x = jnp.dot(onehot, emb_ref[...], preferred_element_type=f32)   # (T*B, E)

    # -- hoisted input projection for BOTH directions (one matmul) ----------
    # columns: [fwd i,f,g,o | bwd i,f,g,o], bias b_ih + b_hh already folded
    xg = jnp.dot(x.astype(bf16), wih_ref[...],
                 preferred_element_type=f32) + blstm_ref[...]       # (T*B, 8H)

    # -- fused bidirectional LSTM recurrence (T unrolled, h0 = c0 = 0) ------
    whhf = whhf_ref[...]                                      # (H, 4H) bf16
    whhb = whhb_ref[...]                                      # (H, 4H) bf16
    c_f = jnp.zeros((B, H), f32)
    c_b = jnp.zeros((B, H), f32)
    h_f = jnp.zeros((B, H), f32)
    h_b = jnp.zeros((B, H), f32)
    for s in range(T):
        if s == 0:
            g_f = xg[0:B, 0:H4]
            g_b = xg[(T - 1) * B:T * B, H4:H8]
        else:
            g_f = xg[s * B:(s + 1) * B, 0:H4] + jnp.dot(
                h_f.astype(bf16), whhf, preferred_element_type=f32)
            g_b = xg[(T - 1 - s) * B:(T - s) * B, H4:H8] + jnp.dot(
                h_b.astype(bf16), whhb, preferred_element_type=f32)

        i_f = _sigmoid(g_f[:, 0:H])
        f_f = _sigmoid(g_f[:, H:2 * H])
        gg_f = jnp.tanh(g_f[:, 2 * H:3 * H])
        o_f = _sigmoid(g_f[:, 3 * H:4 * H])
        c_f = f_f * c_f + i_f * gg_f
        h_f = o_f * jnp.tanh(c_f)

        i_b = _sigmoid(g_b[:, 0:H])
        f_b = _sigmoid(g_b[:, H:2 * H])
        gg_b = jnp.tanh(g_b[:, 2 * H:3 * H])
        o_b = _sigmoid(g_b[:, 3 * H:4 * H])
        c_b = f_b * c_b + i_b * gg_b
        h_b = o_b * jnp.tanh(c_b)

        # batch_first bi-LSTM output: forward h -> time s, backward h -> T-1-s
        for b in range(B):
            ys_scr[b, s:s + 1, 0:H] = h_f[b:b + 1, :]
            ys_scr[b, T - 1 - s:T - s, H:NDIR * H] = h_b[b:b + 1, :]

    # -- all Conv1d branches + BN (eval) + MaxPool1d(3), per batch ----------
    wconv = wconv_ref[...]                                    # (NC, KS_MAX*T)
    cscale = cscale_ref[...]                                  # (NC, 1)
    cshift = cshift_ref[...]                                  # (NC, 1)
    sel = sel_ref[...]                                        # (LC-2, P) 0/1
    for b in range(B):
        yb = ys_scr[b]                                        # (T, 2H)
        # windowed input: row j*T + t holds yb[t, j:j+LC]
        xwin = jnp.concatenate([yb[:, j:j + LC] for j in range(KS_MAX)],
                               axis=0)                        # (KS_MAX*T, LC)
        z = jnp.dot(wconv, xwin.astype(bf16),
                    preferred_element_type=f32)               # (NC, LC)
        z = z * cscale + cshift                               # BN + conv bias
        m3 = jnp.maximum(z[:, 0:LC - 2],
                         jnp.maximum(z[:, 1:LC - 1], z[:, 2:LC]))
        pooled = jnp.dot(m3, sel, preferred_element_type=f32)  # (NC, P)
        # flatten in PyTorch order (branch, kernel, pool-pos) into feat row b
        for kk in range(NC):
            feat_scr[b:b + 1, kk * P:(kk + 1) * P] = pooled[kk:kk + 1, :]

    # -- classifier (BN(F_IN)+Linear+BN(H1) folded) + ReLU + Linear + softmax
    feat = feat_scr[...]                                      # (B, F_IN)
    h1 = jnp.dot(feat.astype(bf16), w1_ref[...],
                 preferred_element_type=f32) + b1_ref[...]
    h1 = jnp.maximum(h1, 0.0)
    logits = jnp.dot(h1.astype(bf16), w2c_ref[...],
                     preferred_element_type=f32) + b2_ref[...]
    mx = jnp.max(logits, axis=-1, keepdims=True)
    ex = jnp.exp(logits - mx)
    out_ref[...] = ex / jnp.sum(ex, axis=-1, keepdims=True)


def _full_spec(shape):
    return pl.BlockSpec(shape, lambda: (0,) * len(shape))


@jax.jit
def cnnrnn_forward(tokens, params):
    """Eval-mode CNNRNN forward: (B, T) int tokens -> (B, n_labels) probs."""
    # time-major flat tokens: row r = t*B + b (layout plumbing only)
    tok_tm = jnp.transpose(tokens).reshape(T * B, 1).astype(jnp.int32)
    operands = (tok_tm, params["emb"], params["wih"], params["blstm"],
                params["whhf"], params["whhb"], params["wconv"],
                params["cscale"], params["cshift"], params["sel"],
                params["w1t"], params["b1"], params["w2c"], params["b2"])
    return pl.pallas_call(
        _cnnrnn_kernel,
        out_shape=jax.ShapeDtypeStruct((B, N_LABELS), jnp.float32),
        in_specs=[_full_spec(o.shape) for o in operands],
        out_specs=_full_spec((B, N_LABELS)),
        scratch_shapes=[pltpu.VMEM((B, T, NDIR * H), jnp.float32),   # LSTM out
                        pltpu.VMEM((B, F_IN), jnp.float32)],         # features
    )(*operands)


# --------------------------- deterministic params --------------------------
def init_params(key):
    ks_list = list(jax.random.split(key, 64))
    it = iter(ks_list)

    def nrm(shape, s=0.1):
        return (s * jax.random.normal(next(it), shape)).astype(jnp.float32)

    emb = nrm((V, E), 1.0)

    # bidirectional LSTM, PyTorch parameter layout, gate order i,f,g,o
    def lstm_dir():
        wih = nrm((4 * H, E))            # weight_ih
        whh = nrm((4 * H, H))            # weight_hh
        bih = nrm((4 * H,))
        bhh = nrm((4 * H,))
        return wih, whh, bih + bhh

    wih_f, whh_f, b_f = lstm_dir()
    wih_b, whh_b, b_b = lstm_dir()
    wih = jnp.concatenate([wih_f.T, wih_b.T], axis=1)          # (E, 8H)
    blstm = jnp.concatenate([b_f, b_b]).reshape(1, 8 * H)

    # conv branches: Conv1d weights zero-padded to KS_MAX taps, stacked over
    # branches; BN (eval: mean=0, var=1) and conv bias folded to scale/shift.
    w_pad = jnp.zeros((NC, T, KS_MAX), jnp.float32)
    scales, shifts = [], []
    for br, ks in enumerate(KERNEL_SZS):
        w = nrm((N_KERNELS, T, ks))                            # (out, in=T, ks)
        cb = nrm((N_KERNELS,))
        gamma = 1.0 + nrm((N_KERNELS,))
        beta = nrm((N_KERNELS,))
        scale = gamma / jnp.sqrt(1.0 + EPS)
        shift = cb * scale + beta
        w_pad = w_pad.at[br * N_KERNELS:(br + 1) * N_KERNELS, :, :ks].set(w)
        scales.append(scale)
        shifts.append(shift)
    wconv = jnp.transpose(w_pad, (0, 2, 1)).reshape(NC, KS_MAX * T)  # col=j*T+t
    cscale = jnp.concatenate(scales).reshape(NC, 1)
    cshift = jnp.concatenate(shifts).reshape(NC, 1)

    # MaxPool1d(3) selection matrix: picks column 3p of the running 3-max
    sel = jnp.zeros((LC - 2, P), jnp.float32)
    sel = sel.at[3 * jnp.arange(P), jnp.arange(P)].set(1.0)

    # classifier: fold BN(F_IN) and BN(H1) (eval, running stats 0/1) into fc1
    g0 = 1.0 + nrm((F_IN,))
    beta0 = nrm((F_IN,))
    w1 = nrm((H1, F_IN))
    b1 = nrm((H1,))
    g1 = 1.0 + nrm((H1,))
    beta1 = nrm((H1,))
    w2 = nrm((N_LABELS, H1))
    b2 = nrm((N_LABELS,))
    s0 = g0 / jnp.sqrt(1.0 + EPS)
    s1 = g1 / jnp.sqrt(1.0 + EPS)
    w1_eff = w1 * s0[None, :] * s1[:, None]                    # (H1, F_IN)
    b1_eff = s1 * (b1 + w1 @ beta0) + beta1                    # (H1,)

    return dict(
        emb=emb.astype(jnp.bfloat16),
        wih=wih.astype(jnp.bfloat16),
        blstm=blstm,
        whhf=whh_f.T.astype(jnp.bfloat16),                     # (H, 4H)
        whhb=whh_b.T.astype(jnp.bfloat16),                     # (H, 4H)
        wconv=wconv.astype(jnp.bfloat16),
        cscale=cscale,
        cshift=cshift,
        sel=sel,
        w1t=jnp.transpose(w1_eff).astype(jnp.bfloat16),        # (F_IN, H1)
        b1=b1_eff.reshape(1, H1),
        w2c=jnp.transpose(w2).astype(jnp.bfloat16),            # (H1, n_labels)
        b2=b2.reshape(1, N_LABELS),
    )


if __name__ == "__main__":
    key = jax.random.PRNGKey(0)
    kp, kt = jax.random.split(key)
    params = init_params(kp)
    tokens = jax.random.randint(kt, (B, T), 0, V)              # (B, seqlen)

    out = cnnrnn_forward(tokens, params)
    out = jax.block_until_ready(out)

    assert out.shape == (B, N_LABELS)
    assert bool(jnp.all(jnp.isfinite(out)))
    assert bool(jnp.allclose(jnp.sum(out, axis=-1), 1.0, atol=1e-4))
    print("KERNEL_OK")
</pallas_src>

<mosaic_0001>
module attributes {stable_mosaic.version = 11 : i64} {
  func.func @_cnnrnn_kernel(%arg0: memref<16x1xi32, #tpu.memory_space<vmem>>, %arg1: memref<50x16xbf16, #tpu.memory_space<vmem>>, %arg2: memref<16x256xbf16, #tpu.memory_space<vmem>>, %arg3: memref<1x256xf32, #tpu.memory_space<vmem>>, %arg4: memref<32x128xbf16, #tpu.memory_space<vmem>>, %arg5: memref<32x128xbf16, #tpu.memory_space<vmem>>, %arg6: memref<30x40xbf16, #tpu.memory_space<vmem>>, %arg7: memref<30x1xf32, #tpu.memory_space<vmem>>, %arg8: memref<30x1xf32, #tpu.memory_space<vmem>>, %arg9: memref<58x20xf32, #tpu.memory_space<vmem>>, %arg10: memref<600x64xbf16, #tpu.memory_space<vmem>>, %arg11: memref<1x64xf32, #tpu.memory_space<vmem>>, %arg12: memref<64x5xbf16, #tpu.memory_space<vmem>>, %arg13: memref<1x5xf32, #tpu.memory_space<vmem>>, %arg14: memref<2x5xf32, #tpu.memory_space<vmem>>, %arg15: memref<2x8x64xf32, #tpu.memory_space<vmem>>, %arg16: memref<2x600xf32, #tpu.memory_space<vmem>>) attributes {dimension_semantics = [], scalar_prefetch = 0 : i64, scratch_operands = 2 : i64, tpu.core_type = #tpu.core_type<tc>} {
    %c0 = arith.constant 0 : index
    %c0_0 = arith.constant 0 : index
    %0 = vector.load %arg0[%c0, %c0_0] : memref<16x1xi32, #tpu.memory_space<vmem>>, vector<16x1xi32>
    %1 = tpu.iota {dimensions = array<i32: 1>} : vector<16x50xi32>
    %2 = vector.broadcast %0 : vector<16x1xi32> to vector<16x50xi32>
    %3 = arith.cmpi eq, %1, %2 : vector<16x50xi32>
    %cst = arith.constant 1.000000e+00 : f32
    %cst_1 = arith.constant 0.000000e+00 : f32
    %4 = vector.broadcast %cst : f32 to vector<16x50xf32>
    %5 = vector.broadcast %cst_1 : f32 to vector<16x50xf32>
    %6 = arith.select %3, %4, %5 : vector<16x50xi1>, vector<16x50xf32>
    %7 = arith.truncf %6 : vector<16x50xf32> to vector<16x50xbf16>
    %c0_2 = arith.constant 0 : index
    %c0_3 = arith.constant 0 : index
    %8 = vector.load %arg1[%c0_2, %c0_3] : memref<50x16xbf16, #tpu.memory_space<vmem>>, vector<50x16xbf16>
    %cst_4 = arith.constant dense<0.000000e+00> : vector<16x16xf32>
    %9 = tpu.matmul %7, %8, %cst_4 {dimension_numbers = #tpu.dot_dimension_numbers<[1], [0], [0], [1], [0, 0, 1, 1], [], []>} : vector<16x50xbf16>, vector<50x16xbf16>, vector<16x16xf32> -> vector<16x16xf32>
    %10 = arith.truncf %9 : vector<16x16xf32> to vector<16x16xbf16>
    %c0_5 = arith.constant 0 : index
    %c0_6 = arith.constant 0 : index
    %11 = vector.load %arg2[%c0_5, %c0_6] : memref<16x256xbf16, #tpu.memory_space<vmem>>, vector<16x256xbf16>
    %cst_7 = arith.constant dense<0.000000e+00> : vector<16x256xf32>
    %12 = tpu.matmul %10, %11, %cst_7 {dimension_numbers = #tpu.dot_dimension_numbers<[1], [0], [0], [1], [0, 0, 1, 1], [], []>} : vector<16x16xbf16>, vector<16x256xbf16>, vector<16x256xf32> -> vector<16x256xf32>
    %c0_8 = arith.constant 0 : index
    %c0_9 = arith.constant 0 : index
    %13 = vector.load %arg3[%c0_8, %c0_9] : memref<1x256xf32, #tpu.memory_space<vmem>>, vector<1x256xf32>
    %14 = vector.broadcast %13 : vector<1x256xf32> to vector<16x256xf32>
    %15 = arith.addf %12, %14 : vector<16x256xf32>
    %c0_10 = arith.constant 0 : index
    %c0_11 = arith.constant 0 : index
    %16 = vector.load %arg4[%c0_10, %c0_11] : memref<32x128xbf16, #tpu.memory_space<vmem>>, vector<32x128xbf16>
    %c0_12 = arith.constant 0 : index
    %c0_13 = arith.constant 0 : index
    %17 = vector.load %arg5[%c0_12, %c0_13] : memref<32x128xbf16, #tpu.memory_space<vmem>>, vector<32x128xbf16>
    %cst_14 = arith.constant 0.000000e+00 : f32
    %18 = vector.broadcast %cst_14 : f32 to vector<2x32xf32>
    %cst_15 = arith.constant 0.000000e+00 : f32
    %19 = vector.broadcast %cst_15 : f32 to vector<2x32xf32>
    %20 = vector.extract_strided_slice %15 {offsets = [0, 0], sizes = [2, 128], strides = [1, 1]} : vector<16x256xf32> to vector<2x128xf32>
    %21 = vector.extract_strided_slice %15 {offsets = [14, 128], sizes = [2, 128], strides = [1, 1]} : vector<16x256xf32> to vector<2x128xf32>
    %22 = vector.extract_strided_slice %20 {offsets = [0, 0], sizes = [2, 32], strides = [1, 1]} : vector<2x128xf32> to vector<2x32xf32>
    %cst_16 = arith.constant 0.000000e+00 : f32
    %23 = vector.broadcast %cst_16 : f32 to vector<2x32xf32>
    %24 = arith.subf %23, %22 : vector<2x32xf32>
    %25 = math.exp %24 : vector<2x32xf32>
    %cst_17 = arith.constant 1.000000e+00 : f32
    %26 = vector.broadcast %cst_17 : f32 to vector<2x32xf32>
    %27 = arith.addf %26, %25 : vector<2x32xf32>
    %cst_18 = arith.constant 1.000000e+00 : f32
    %28 = vector.broadcast %cst_18 : f32 to vector<2x32xf32>
    %29 = arith.divf %28, %27 : vector<2x32xf32>
    %30 = vector.extract_strided_slice %20 {offsets = [0, 32], sizes = [2, 32], strides = [1, 1]} : vector<2x128xf32> to vector<2x32xf32>
    %cst_19 = arith.constant 0.000000e+00 : f32
    %31 = vector.broadcast %cst_19 : f32 to vector<2x32xf32>
    %32 = arith.subf %31, %30 : vector<2x32xf32>
    %33 = math.exp %32 : vector<2x32xf32>
    %cst_20 = arith.constant 1.000000e+00 : f32
    %34 = vector.broadcast %cst_20 : f32 to vector<2x32xf32>
    %35 = arith.addf %34, %33 : vector<2x32xf32>
    %cst_21 = arith.constant 1.000000e+00 : f32
    %36 = vector.broadcast %cst_21 : f32 to vector<2x32xf32>
    %37 = arith.divf %36, %35 : vector<2x32xf32>
    %38 = vector.extract_strided_slice %20 {offsets = [0, 64], sizes = [2, 32], strides = [1, 1]} : vector<2x128xf32> to vector<2x32xf32>
    %39 = math.tanh %38 : vector<2x32xf32>
    %40 = vector.extract_strided_slice %20 {offsets = [0, 96], sizes = [2, 32], strides = [1, 1]} : vector<2x128xf32> to vector<2x32xf32>
    %cst_22 = arith.constant 0.000000e+00 : f32
    %41 = vector.broadcast %cst_22 : f32 to vector<2x32xf32>
    %42 = arith.subf %41, %40 : vector<2x32xf32>
    %43 = math.exp %42 : vector<2x32xf32>
    %cst_23 = arith.constant 1.000000e+00 : f32
    %44 = vector.broadcast %cst_23 : f32 to vector<2x32xf32>
    %45 = arith.addf %44, %43 : vector<2x32xf32>
    %cst_24 = arith.constant 1.000000e+00 : f32
    %46 = vector.broadcast %cst_24 : f32 to vector<2x32xf32>
    %47 = arith.divf %46, %45 : vector<2x32xf32>
    %48 = arith.mulf %37, %18 : vector<2x32xf32>
    %49 = arith.mulf %29, %39 : vector<2x32xf32>
    %50 = arith.addf %48, %49 : vector<2x32xf32>
    %51 = math.tanh %50 : vector<2x32xf32>
    %52 = arith.mulf %47, %51 : vector<2x32xf32>
    %53 = vector.extract_strided_slice %21 {offsets = [0, 0], sizes = [2, 32], strides = [1, 1]} : vector<2x128xf32> to vector<2x32xf32>
    %cst_25 = arith.constant 0.000000e+00 : f32
    %54 = vector.broadcast %cst_25 : f32 to vector<2x32xf32>
    %55 = arith.subf %54, %53 : vector<2x32xf32>
    %56 = math.exp %55 : vector<2x32xf32>
    %cst_26 = arith.constant 1.000000e+00 : f32
    %57 = vector.broadcast %cst_26 : f32 to vector<2x32xf32>
    %58 = arith.addf %57, %56 : vector<2x32xf32>
    %cst_27 = arith.constant 1.000000e+00 : f32
    %59 = vector.broadcast %cst_27 : f32 to vector<2x32xf32>
    %60 = arith.divf %59, %58 : vector<2x32xf32>
    %61 = vector.extract_strided_slice %21 {offsets = [0, 32], sizes = [2, 32], strides = [1, 1]} : vector<2x128xf32> to vector<2x32xf32>
    %cst_28 = arith.constant 0.000000e+00 : f32
    %62 = vector.broadcast %cst_28 : f32 to vector<2x32xf32>
    %63 = arith.subf %62, %61 : vector<2x32xf32>
    %64 = math.exp %63 : vector<2x32xf32>
    %cst_29 = arith.constant 1.000000e+00 : f32
    %65 = vector.broadcast %cst_29 : f32 to vector<2x32xf32>
    %66 = arith.addf %65, %64 : vector<2x32xf32>
    %cst_30 = arith.constant 1.000000e+00 : f32
    %67 = vector.broadcast %cst_30 : f32 to vector<2x32xf32>
    %68 = arith.divf %67, %66 : vector<2x32xf32>
    %69 = vector.extract_strided_slice %21 {offsets = [0, 64], sizes = [2, 32], strides = [1, 1]} : vector<2x128xf32> to vector<2x32xf32>
    %70 = math.tanh %69 : vector<2x32xf32>
    %71 = vector.extract_strided_slice %21 {offsets = [0, 96], sizes = [2, 32], strides = [1, 1]} : vector<2x128xf32> to vector<2x32xf32>
    %cst_31 = arith.constant 0.000000e+00 : f32
    %72 = vector.broadcast %cst_31 : f32 to vector<2x32xf32>
    %73 = arith.subf %72, %71 : vector<2x32xf32>
    %74 = math.exp %73 : vector<2x32xf32>
    %cst_32 = arith.constant 1.000000e+00 : f32
    %75 = vector.broadcast %cst_32 : f32 to vector<2x32xf32>
    %76 = arith.addf %75, %74 : vector<2x32xf32>
    %cst_33 = arith.constant 1.000000e+00 : f32
    %77 = vector.broadcast %cst_33 : f32 to vector<2x32xf32>
    %78 = arith.divf %77, %76 : vector<2x32xf32>
    %79 = arith.mulf %68, %19 : vector<2x32xf32>
    %80 = arith.mulf %60, %70 : vector<2x32xf32>
    %81 = arith.addf %79, %80 : vector<2x32xf32>
    %82 = math.tanh %81 : vector<2x32xf32>
    %83 = arith.mulf %78, %82 : vector<2x32xf32>
    %84 = vector.extract_strided_slice %52 {offsets = [0, 0], sizes = [1, 32], strides = [1, 1]} : vector<2x32xf32> to vector<1x32xf32>
    %c0_34 = arith.constant 0 : index
    %c0_35 = arith.constant 0 : index
    %c0_36 = arith.constant 0 : index
    %85 = vector.load %arg15[%c0_34, %c0_35, %c0_36] : memref<2x8x64xf32, #tpu.memory_space<vmem>>, vector<1x1x32xf32>
    %86 = vector.shape_cast %85 : vector<1x1x32xf32> to vector<1x32xf32>
    %87 = vector.shape_cast %84 : vector<1x32xf32> to vector<1x1x32xf32>
    tpu.vector_store %arg15[%c0_34, %c0_35, %c0_36], %87 {strides = array<i32>} : memref<2x8x64xf32, #tpu.memory_space<vmem>>, vector<1x1x32xf32>,
    %88 = vector.extract_strided_slice %83 {offsets = [0, 0], sizes = [1, 32], strides = [1, 1]} : vector<2x32xf32> to vector<1x32xf32>
    %c0_37 = arith.constant 0 : index
    %c7 = arith.constant 7 : index
    %c32 = arith.constant 32 : index
    %89 = vector.load %arg15[%c0_37, %c7, %c32] : memref<2x8x64xf32, #tpu.memory_space<vmem>>, vector<1x1x32xf32>
    %90 = vector.shape_cast %89 : vector<1x1x32xf32> to vector<1x32xf32>
    %91 = vector.shape_cast %88 : vector<1x32xf32> to vector<1x1x32xf32>
    tpu.vector_store %arg15[%c0_37, %c7, %c32], %91 {strides = array<i32>} : memref<2x8x64xf32, #tpu.memory_space<vmem>>, vector<1x1x32xf32>,
    %92 = vector.extract_strided_slice %52 {offsets = [1, 0], sizes = [1, 32], strides = [1, 1]} : vector<2x32xf32> to vector<1x32xf32>
    %c1 = arith.constant 1 : index
    %c0_38 = arith.constant 0 : index
    %c0_39 = arith.constant 0 : index
    %93 = vector.load %arg15[%c1, %c0_38, %c0_39] : memref<2x8x64xf32, #tpu.memory_space<vmem>>, vector<1x1x32xf32>
    %94 = vector.shape_cast %93 : vector<1x1x32xf32> to vector<1x32xf32>
    %95 = vector.shape_cast %92 : vector<1x32xf32> to vector<1x1x32xf32>
    tpu.vector_store %arg15[%c1, %c0_38, %c0_39], %95 {strides = array<i32>} : memref<2x8x64xf32, #tpu.memory_space<vmem>>, vector<1x1x32xf32>,
    %96 = vector.extract_strided_slice %83 {offsets = [1, 0], sizes = [1, 32], strides = [1, 1]} : vector<2x32xf32> to vector<1x32xf32>
    %c1_40 = arith.constant 1 : index
    %c7_41 = arith.constant 7 : index
    %c32_42 = arith.constant 32 : index
    %97 = vector.load %arg15[%c1_40, %c7_41, %c32_42] : memref<2x8x64xf32, #tpu.memory_space<vmem>>, vector<1x1x32xf32>
    %98 = vector.shape_cast %97 : vector<1x1x32xf32> to vector<1x32xf32>
    %99 = vector.shape_cast %96 : vector<1x32xf32> to vector<1x1x32xf32>
    tpu.vector_store %arg15[%c1_40, %c7_41, %c32_42], %99 {strides = array<i32>} : memref<2x8x64xf32, #tpu.memory_space<vmem>>, vector<1x1x32xf32>,
    %100 = vector.extract_strided_slice %15 {offsets = [2, 0], sizes = [2, 128], strides = [1, 1]} : vector<16x256xf32> to vector<2x128xf32>
    %101 = arith.truncf %52 : vector<2x32xf32> to vector<2x32xbf16>
    %cst_43 = arith.constant dense<0.000000e+00> : vector<2x128xf32>
    %102 = tpu.matmul %101, %16, %cst_43 {dimension_numbers = #tpu.dot_dimension_numbers<[1], [0], [0], [1], [0, 0, 1, 1], [], []>} : vector<2x32xbf16>, vector<32x128xbf16>, vector<2x128xf32> -> vector<2x128xf32>
    %103 = arith.addf %100, %102 : vector<2x128xf32>
    %104 = vector.extract_strided_slice %15 {offsets = [12, 128], sizes = [2, 128], strides = [1, 1]} : vector<16x256xf32> to vector<2x128xf32>
    %105 = arith.truncf %83 : vector<2x32xf32> to vector<2x32xbf16>
    %cst_44 = arith.constant dense<0.000000e+00> : vector<2x128xf32>
    %106 = tpu.matmul %105, %17, %cst_44 {dimension_numbers = #tpu.dot_dimension_numbers<[1], [0], [0], [1], [0, 0, 1, 1], [], []>} : vector<2x32xbf16>, vector<32x128xbf16>, vector<2x128xf32> -> vector<2x128xf32>
    %107 = arith.addf %104, %106 : vector<2x128xf32>
    %108 = vector.extract_strided_slice %103 {offsets = [0, 0], sizes = [2, 32], strides = [1, 1]} : vector<2x128xf32> to vector<2x32xf32>
    %cst_45 = arith.constant 0.000000e+00 : f32
    %109 = vector.broadcast %cst_45 : f32 to vector<2x32xf32>
    %110 = arith.subf %109, %108 : vector<2x32xf32>
    %111 = math.exp %110 : vector<2x32xf32>
    %cst_46 = arith.constant 1.000000e+00 : f32
    %112 = vector.broadcast %cst_46 : f32 to vector<2x32xf32>
    %113 = arith.addf %112, %111 : vector<2x32xf32>
    %cst_47 = arith.constant 1.000000e+00 : f32
    %114 = vector.broadcast %cst_47 : f32 to vector<2x32xf32>
    %115 = arith.divf %114, %113 : vector<2x32xf32>
    %116 = vector.extract_strided_slice %103 {offsets = [0, 32], sizes = [2, 32], strides = [1, 1]} : vector<2x128xf32> to vector<2x32xf32>
    %cst_48 = arith.constant 0.000000e+00 : f32
    %117 = vector.broadcast %cst_48 : f32 to vector<2x32xf32>
    %118 = arith.subf %117, %116 : vector<2x32xf32>
    %119 = math.exp %118 : vector<2x32xf32>
    %cst_49 = arith.constant 1.000000e+00 : f32
    %120 = vector.broadcast %cst_49 : f32 to vector<2x32xf32>
    %121 = arith.addf %120, %119 : vector<2x32xf32>
    %cst_50 = arith.constant 1.000000e+00 : f32
    %122 = vector.broadcast %cst_50 : f32 to vector<2x32xf32>
    %123 = arith.divf %122, %121 : vector<2x32xf32>
    %124 = vector.extract_strided_slice %103 {offsets = [0, 64], sizes = [2, 32], strides = [1, 1]} : vector<2x128xf32> to vector<2x32xf32>
    %125 = math.tanh %124 : vector<2x32xf32>
    %126 = vector.extract_strided_slice %103 {offsets = [0, 96], sizes = [2, 32], strides = [1, 1]} : vector<2x128xf32> to vector<2x32xf32>
    %cst_51 = arith.constant 0.000000e+00 : f32
    %127 = vector.broadcast %cst_51 : f32 to vector<2x32xf32>
    %128 = arith.subf %127, %126 : vector<2x32xf32>
    %129 = math.exp %128 : vector<2x32xf32>
    %cst_52 = arith.constant 1.000000e+00 : f32
    %130 = vector.broadcast %cst_52 : f32 to vector<2x32xf32>
    %131 = arith.addf %130, %129 : vector<2x32xf32>
    %cst_53 = arith.constant 1.000000e+00 : f32
    %132 = vector.broadcast %cst_53 : f32 to vector<2x32xf32>
    %133 = arith.divf %132, %131 : vector<2x32xf32>
    %134 = arith.mulf %123, %50 : vector<2x32xf32>
    %135 = arith.mulf %115, %125 : vector<2x32xf32>
    %136 = arith.addf %134, %135 : vector<2x32xf32>
    %137 = math.tanh %136 : vector<2x32xf32>
    %138 = arith.mulf %133, %137 : vector<2x32xf32>
    %139 = vector.extract_strided_slice %107 {offsets = [0, 0], sizes = [2, 32], strides = [1, 1]} : vector<2x128xf32> to vector<2x32xf32>
    %cst_54 = arith.constant 0.000000e+00 : f32
    %140 = vector.broadcast %cst_54 : f32 to vector<2x32xf32>
    %141 = arith.subf %140, %139 : vector<2x32xf32>
    %142 = math.exp %141 : vector<2x32xf32>
    %cst_55 = arith.constant 1.000000e+00 : f32
    %143 = vector.broadcast %cst_55 : f32 to vector<2x32xf32>
    %144 = arith.addf %143, %142 : vector<2x32xf32>
    %cst_56 = arith.constant 1.000000e+00 : f32
    %145 = vector.broadcast %cst_56 : f32 to vector<2x32xf32>
    %146 = arith.divf %145, %144 : vector<2x32xf32>
    %147 = vector.extract_strided_slice %107 {offsets = [0, 32], sizes = [2, 32], strides = [1, 1]} : vector<2x128xf32> to vector<2x32xf32>
    %cst_57 = arith.constant 0.000000e+00 : f32
    %148 = vector.broadcast %cst_57 : f32 to vector<2x32xf32>
    %149 = arith.subf %148, %147 : vector<2x32xf32>
    %150 = math.exp %149 : vector<2x32xf32>
    %cst_58 = arith.constant 1.000000e+00 : f32
    %151 = vector.broadcast %cst_58 : f32 to vector<2x32xf32>
    %152 = arith.addf %151, %150 : vector<2x32xf32>
    %cst_59 = arith.constant 1.000000e+00 : f32
    %153 = vector.broadcast %cst_59 : f32 to vector<2x32xf32>
    %154 = arith.divf %153, %152 : vector<2x32xf32>
    %155 = vector.extract_strided_slice %107 {offsets = [0, 64], sizes = [2, 32], strides = [1, 1]} : vector<2x128xf32> to vector<2x32xf32>
    %156 = math.tanh %155 : vector<2x32xf32>
    %157 = vector.extract_strided_slice %107 {offsets = [0, 96], sizes = [2, 32], strides = [1, 1]} : vector<2x128xf32> to vector<2x32xf32>
    %cst_60 = arith.constant 0.000000e+00 : f32
    %158 = vector.broadcast %cst_60 : f32 to vector<2x32xf32>
    %159 = arith.subf %158, %157 : vector<2x32xf32>
    %160 = math.exp %159 : vector<2x32xf32>
    %cst_61 = arith.constant 1.000000e+00 : f32
    %161 = vector.broadcast %cst_61 : f32 to vector<2x32xf32>
    %162 = arith.addf %161, %160 : vector<2x32xf32>
    %cst_62 = arith.constant 1.000000e+00 : f32
    %163 = vector.broadcast %cst_62 : f32 to vector<2x32xf32>
    %164 = arith.divf %163, %162 : vector<2x32xf32>
    %165 = arith.mulf %154, %81 : vector<2x32xf32>
    %166 = arith.mulf %146, %156 : vector<2x32xf32>
    %167 = arith.addf %165, %166 : vector<2x32xf32>
    %168 = math.tanh %167 : vector<2x32xf32>
    %169 = arith.mulf %164, %168 : vector<2x32xf32>
    %170 = vector.extract_strided_slice %138 {offsets = [0, 0], sizes = [1, 32], strides = [1, 1]} : vector<2x32xf32> to vector<1x32xf32>
    %c0_63 = arith.constant 0 : index
    %c1_64 = arith.constant 1 : index
    %c0_65 = arith.constant 0 : index
    %171 = vector.load %arg15[%c0_63, %c1_64, %c0_65] : memref<2x8x64xf32, #tpu.memory_space<vmem>>, vector<1x1x32xf32>
    %172 = vector.shape_cast %171 : vector<1x1x32xf32> to vector<1x32xf32>
    %173 = vector.shape_cast %170 : vector<1x32xf32> to vector<1x1x32xf32>
    tpu.vector_store %arg15[%c0_63, %c1_64, %c0_65], %173 {strides = array<i32>} : memref<2x8x64xf32, #tpu.memory_space<vmem>>, vector<1x1x32xf32>,
    %174 = vector.extract_strided_slice %169 {offsets = [0, 0], sizes = [1, 32], strides = [1, 1]} : vector<2x32xf32> to vector<1x32xf32>
    %c0_66 = arith.constant 0 : index
    %c6 = arith.constant 6 : index
    %c32_67 = arith.constant 32 : index
    %175 = vector.load %arg15[%c0_66, %c6, %c32_67] : memref<2x8x64xf32, #tpu.memory_space<vmem>>, vector<1x1x32xf32>
    %176 = vector.shape_cast %175 : vector<1x1x32xf32> to vector<1x32xf32>
    %177 = vector.shape_cast %174 : vector<1x32xf32> to vector<1x1x32xf32>
    tpu.vector_store %arg15[%c0_66, %c6, %c32_67], %177 {strides = array<i32>} : memref<2x8x64xf32, #tpu.memory_space<vmem>>, vector<1x1x32xf32>,
    %178 = vector.extract_strided_slice %138 {offsets = [1, 0], sizes = [1, 32], strides = [1, 1]} : vector<2x32xf32> to vector<1x32xf32>
    %c1_68 = arith.constant 1 : index
    %c1_69 = arith.constant 1 : index
    %c0_70 = arith.constant 0 : index
    %179 = vector.load %arg15[%c1_68, %c1_69, %c0_70] : memref<2x8x64xf32, #tpu.memory_space<vmem>>, vector<1x1x32xf32>
    %180 = vector.shape_cast %179 : vector<1x1x32xf32> to vector<1x32xf32>
    %181 = vector.shape_cast %178 : vector<1x32xf32> to vector<1x1x32xf32>
    tpu.vector_store %arg15[%c1_68, %c1_69, %c0_70], %181 {strides = array<i32>} : memref<2x8x64xf32, #tpu.memory_space<vmem>>, vector<1x1x32xf32>,
    %182 = vector.extract_strided_slice %169 {offsets = [1, 0], sizes = [1, 32], strides = [1, 1]} : vector<2x32xf32> to vector<1x32xf32>
    %c1_71 = arith.constant 1 : index
    %c6_72 = arith.constant 6 : index
    %c32_73 = arith.constant 32 : index
    %183 = vector.load %arg15[%c1_71, %c6_72, %c32_73] : memref<2x8x64xf32, #tpu.memory_space<vmem>>, vector<1x1x32xf32>
    %184 = vector.shape_cast %183 : vector<1x1x32xf32> to vector<1x32xf32>
    %185 = vector.shape_cast %182 : vector<1x32xf32> to vector<1x1x32xf32>
    tpu.vector_store %arg15[%c1_71, %c6_72, %c32_73], %185 {strides = array<i32>} : memref<2x8x64xf32, #tpu.memory_space<vmem>>, vector<1x1x32xf32>,
    %186 = vector.extract_strided_slice %15 {offsets = [4, 0], sizes = [2, 128], strides = [1, 1]} : vector<16x256xf32> to vector<2x128xf32>
    %187 = arith.truncf %138 : vector<2x32xf32> to vector<2x32xbf16>
    %cst_74 = arith.constant dense<0.000000e+00> : vector<2x128xf32>
    %188 = tpu.matmul %187, %16, %cst_74 {dimension_numbers = #tpu.dot_dimension_numbers<[1], [0], [0], [1], [0, 0, 1, 1], [], []>} : vector<2x32xbf16>, vector<32x128xbf16>, vector<2x128xf32> -> vector<2x128xf32>
    %189 = arith.addf %186, %188 : vector<2x128xf32>
    %190 = vector.extract_strided_slice %15 {offsets = [10, 128], sizes = [2, 128], strides = [1, 1]} : vector<16x256xf32> to vector<2x128xf32>
    %191 = arith.truncf %169 : vector<2x32xf32> to vector<2x32xbf16>
    %cst_75 = arith.constant dense<0.000000e+00> : vector<2x128xf32>
    %192 = tpu.matmul %191, %17, %cst_75 {dimension_numbers = #tpu.dot_dimension_numbers<[1], [0], [0], [1], [0, 0, 1, 1], [], []>} : vector<2x32xbf16>, vector<32x128xbf16>, vector<2x128xf32> -> vector<2x128xf32>
    %193 = arith.addf %190, %192 : vector<2x128xf32>
    %194 = vector.extract_strided_slice %189 {offsets = [0, 0], sizes = [2, 32], strides = [1, 1]} : vector<2x128xf32> to vector<2x32xf32>
    %cst_76 = arith.constant 0.000000e+00 : f32
    %195 = vector.broadcast %cst_76 : f32 to vector<2x32xf32>
    %196 = arith.subf %195, %194 : vector<2x32xf32>
    %197 = math.exp %196 : vector<2x32xf32>
    %cst_77 = arith.constant 1.000000e+00 : f32
    %198 = vector.broadcast %cst_77 : f32 to vector<2x32xf32>
    %199 = arith.addf %198, %197 : vector<2x32xf32>
    %cst_78 = arith.constant 1.000000e+00 : f32
    %200 = vector.broadcast %cst_78 : f32 to vector<2x32xf32>
    %201 = arith.divf %200, %199 : vector<2x32xf32>
    %202 = vector.extract_strided_slice %189 {offsets = [0, 32], sizes = [2, 32], strides = [1, 1]} : vector<2x128xf32> to vector<2x32xf32>
    %cst_79 = arith.constant 0.000000e+00 : f32
    %203 = vector.broadcast %cst_79 : f32 to vector<2x32xf32>
    %204 = arith.subf %203, %202 : vector<2x32xf32>
    %205 = math.exp %204 : vector<2x32xf32>
    %cst_80 = arith.constant 1.000000e+00 : f32
    %206 = vector.broadcast %cst_80 : f32 to vector<2x32xf32>
    %207 = arith.addf %206, %205 : vector<2x32xf32>
    %cst_81 = arith.constant 1.000000e+00 : f32
    %208 = vector.broadcast %cst_81 : f32 to vector<2x32xf32>
    %209 = arith.divf %208, %207 : vector<2x32xf32>
    %210 = vector.extract_strided_slice %189 {offsets = [0, 64], sizes = [2, 32], strides = [1, 1]} : vector<2x128xf32> to vector<2x32xf32>
    %211 = math.tanh %210 : vector<2x32xf32>
    %212 = vector.extract_strided_slice %189 {offsets = [0, 96], sizes = [2, 32], strides = [1, 1]} : vector<2x128xf32> to vector<2x32xf32>
    %cst_82 = arith.constant 0.000000e+00 : f32
    %213 = vector.broadcast %cst_82 : f32 to vector<2x32xf32>
    %214 = arith.subf %213, %212 : vector<2x32xf32>
    %215 = math.exp %214 : vector<2x32xf32>
    %cst_83 = arith.constant 1.000000e+00 : f32
    %216 = vector.broadcast %cst_83 : f32 to vector<2x32xf32>
    %217 = arith.addf %216, %215 : vector<2x32xf32>
    %cst_84 = arith.constant 1.000000e+00 : f32
    %218 = vector.broadcast %cst_84 : f32 to vector<2x32xf32>
    %219 = arith.divf %218, %217 : vector<2x32xf32>
    %220 = arith.mulf %209, %136 : vector<2x32xf32>
    %221 = arith.mulf %201, %211 : vector<2x32xf32>
    %222 = arith.addf %220, %221 : vector<2x32xf32>
    %223 = math.tanh %222 : vector<2x32xf32>
    %224 = arith.mulf %219, %223 : vector<2x32xf32>
    %225 = vector.extract_strided_slice %193 {offsets = [0, 0], sizes = [2, 32], strides = [1, 1]} : vector<2x128xf32> to vector<2x32xf32>
    %cst_85 = arith.constant 0.000000e+00 : f32
    %226 = vector.broadcast %cst_85 : f32 to vector<2x32xf32>
    %227 = arith.subf %226, %225 : vector<2x32xf32>
    %228 = math.exp %227 : vector<2x32xf32>
    %cst_86 = arith.constant 1.000000e+00 : f32
    %229 = vector.broadcast %cst_86 : f32 to vector<2x32xf32>
    %230 = arith.addf %229, %228 : vector<2x32xf32>
    %cst_87 = arith.constant 1.000000e+00 : f32
    %231 = vector.broadcast %cst_87 : f32 to vector<2x32xf32>
    %232 = arith.divf %231, %230 : vector<2x32xf32>
    %233 = vector.extract_strided_slice %193 {offsets = [0, 32], sizes = [2, 32], strides = [1, 1]} : vector<2x128xf32> to vector<2x32xf32>
    %cst_88 = arith.constant 0.000000e+00 : f32
    %234 = vector.broadcast %cst_88 : f32 to vector<2x32xf32>
    %235 = arith.subf %234, %233 : vector<2x32xf32>
    %236 = math.exp %235 : vector<2x32xf32>
    %cst_89 = arith.constant 1.000000e+00 : f32
    %237 = vector.broadcast %cst_89 : f32 to vector<2x32xf32>
    %238 = arith.addf %237, %236 : vector<2x32xf32>
    %cst_90 = arith.constant 1.000000e+00 : f32
    %239 = vector.broadcast %cst_90 : f32 to vector<2x32xf32>
    %240 = arith.divf %239, %238 : vector<2x32xf32>
    %241 = vector.extract_strided_slice %193 {offsets = [0, 64], sizes = [2, 32], strides = [1, 1]} : vector<2x128xf32> to vector<2x32xf32>
    %242 = math.tanh %241 : vector<2x32xf32>
    %243 = vector.extract_strided_slice %193 {offsets = [0, 96], sizes = [2, 32], strides = [1, 1]} : vector<2x128xf32> to vector<2x32xf32>
    %cst_91 = arith.constant 0.000000e+00 : f32
    %244 = vector.broadcast %cst_91 : f32 to vector<2x32xf32>
    %245 = arith.subf %244, %243 : vector<2x32xf32>
    %246 = math.exp %245 : vector<2x32xf32>
    %cst_92 = arith.constant 1.000000e+00 : f32
    %247 = vector.broadcast %cst_92 : f32 to vector<2x32xf32>
    %248 = arith.addf %247, %246 : vector<2x32xf32>
    %cst_93 = arith.constant 1.000000e+00 : f32
    %249 = vector.broadcast %cst_93 : f32 to vector<2x32xf32>
    %250 = arith.divf %249, %248 : vector<2x32xf32>
    %251 = arith.mulf %240, %167 : vector<2x32xf32>
    %252 = arith.mulf %232, %242 : vector<2x32xf32>
    %253 = arith.addf %251, %252 : vector<2x32xf32>
    %254 = math.tanh %253 : vector<2x32xf32>
    %255 = arith.mulf %250, %254 : vector<2x32xf32>
    %256 = vector.extract_strided_slice %224 {offsets = [0, 0], sizes = [1, 32], strides = [1, 1]} : vector<2x32xf32> to vector<1x32xf32>
    %c0_94 = arith.constant 0 : index
    %c2 = arith.constant 2 : index
    %c0_95 = arith.constant 0 : index
    %257 = vector.load %arg15[%c0_94, %c2, %c0_95] : memref<2x8x64xf32, #tpu.memory_space<vmem>>, vector<1x1x32xf32>
    %258 = vector.shape_cast %257 : vector<1x1x32xf32> to vector<1x32xf32>
    %259 = vector.shape_cast %256 : vector<1x32xf32> to vector<1x1x32xf32>
    tpu.vector_store %arg15[%c0_94, %c2, %c0_95], %259 {strides = array<i32>} : memref<2x8x64xf32, #tpu.memory_space<vmem>>, vector<1x1x32xf32>,
    %260 = vector.extract_strided_slice %255 {offsets = [0, 0], sizes = [1, 32], strides = [1, 1]} : vector<2x32xf32> to vector<1x32xf32>
    %c0_96 = arith.constant 0 : index
    %c5 = arith.constant 5 : index
    %c32_97 = arith.constant 32 : index
    %261 = vector.load %arg15[%c0_96, %c5, %c32_97] : memref<2x8x64xf32, #tpu.memory_space<vmem>>, vector<1x1x32xf32>
    %262 = vector.shape_cast %261 : vector<1x1x32xf32> to vector<1x32xf32>
    %263 = vector.shape_cast %260 : vector<1x32xf32> to vector<1x1x32xf32>
    tpu.vector_store %arg15[%c0_96, %c5, %c32_97], %263 {strides = array<i32>} : memref<2x8x64xf32, #tpu.memory_space<vmem>>, vector<1x1x32xf32>,
    %264 = vector.extract_strided_slice %224 {offsets = [1, 0], sizes = [1, 32], strides = [1, 1]} : vector<2x32xf32> to vector<1x32xf32>
    %c1_98 = arith.constant 1 : index
    %c2_99 = arith.constant 2 : index
    %c0_100 = arith.constant 0 : index
    %265 = vector.load %arg15[%c1_98, %c2_99, %c0_100] : memref<2x8x64xf32, #tpu.memory_space<vmem>>, vector<1x1x32xf32>
    %266 = vector.shape_cast %265 : vector<1x1x32xf32> to vector<1x32xf32>
    %267 = vector.shape_cast %264 : vector<1x32xf32> to vector<1x1x32xf32>
    tpu.vector_store %arg15[%c1_98, %c2_99, %c0_100], %267 {strides = array<i32>} : memref<2x8x64xf32, #tpu.memory_space<vmem>>, vector<1x1x32xf32>,
    %268 = vector.extract_strided_slice %255 {offsets = [1, 0], sizes = [1, 32], strides = [1, 1]} : vector<2x32xf32> to vector<1x32xf32>
    %c1_101 = arith.constant 1 : index
    %c5_102 = arith.constant 5 : index
    %c32_103 = arith.constant 32 : index
    %269 = vector.load %arg15[%c1_101, %c5_102, %c32_103] : memref<2x8x64xf32, #tpu.memory_space<vmem>>, vector<1x1x32xf32>
    %270 = vector.shape_cast %269 : vector<1x1x32xf32> to vector<1x32xf32>
    %271 = vector.shape_cast %268 : vector<1x32xf32> to vector<1x1x32xf32>
    tpu.vector_store %arg15[%c1_101, %c5_102, %c32_103], %271 {strides = array<i32>} : memref<2x8x64xf32, #tpu.memory_space<vmem>>, vector<1x1x32xf32>,
    %272 = vector.extract_strided_slice %15 {offsets = [6, 0], sizes = [2, 128], strides = [1, 1]} : vector<16x256xf32> to vector<2x128xf32>
    %273 = arith.truncf %224 : vector<2x32xf32> to vector<2x32xbf16>
    %cst_104 = arith.constant dense<0.000000e+00> : vector<2x128xf32>
    %274 = tpu.matmul %273, %16, %cst_104 {dimension_numbers = #tpu.dot_dimension_numbers<[1], [0], [0], [1], [0, 0, 1, 1], [], []>} : vector<2x32xbf16>, vector<32x128xbf16>, vector<2x128xf32> -> vector<2x128xf32>
    %275 = arith.addf %272, %274 : vector<2x128xf32>
    %276 = vector.extract_strided_slice %15 {offsets = [8, 128], sizes = [2, 128], strides = [1, 1]} : vector<16x256xf32> to vector<2x128xf32>
    %277 = arith.truncf %255 : vector<2x32xf32> to vector<2x32xbf16>
    %cst_105 = arith.constant dense<0.000000e+00> : vector<2x128xf32>
    %278 = tpu.matmul %277, %17, %cst_105 {dimension_numbers = #tpu.dot_dimension_numbers<[1], [0], [0], [1], [0, 0, 1, 1], [], []>} : vector<2x32xbf16>, vector<32x128xbf16>, vector<2x128xf32> -> vector<2x128xf32>
    %279 = arith.addf %276, %278 : vector<2x128xf32>
    %280 = vector.extract_strided_slice %275 {offsets = [0, 0], sizes = [2, 32], strides = [1, 1]} : vector<2x128xf32> to vector<2x32xf32>
    %cst_106 = arith.constant 0.000000e+00 : f32
    %281 = vector.broadcast %cst_106 : f32 to vector<2x32xf32>
    %282 = arith.subf %281, %280 : vector<2x32xf32>
    %283 = math.exp %282 : vector<2x32xf32>
    %cst_107 = arith.constant 1.000000e+00 : f32
    %284 = vector.broadcast %cst_107 : f32 to vector<2x32xf32>
    %285 = arith.addf %284, %283 : vector<2x32xf32>
    %cst_108 = arith.constant 1.000000e+00 : f32
    %286 = vector.broadcast %cst_108 : f32 to vector<2x32xf32>
    %287 = arith.divf %286, %285 : vector<2x32xf32>
    %288 = vector.extract_strided_slice %275 {offsets = [0, 32], sizes = [2, 32], strides = [1, 1]} : vector<2x128xf32> to vector<2x32xf32>
    %cst_109 = arith.constant 0.000000e+00 : f32
    %289 = vector.broadcast %cst_109 : f32 to vector<2x32xf32>
    %290 = arith.subf %289, %288 : vector<2x32xf32>
    %291 = math.exp %290 : vector<2x32xf32>
    %cst_110 = arith.constant 1.000000e+00 : f32
    %292 = vector.broadcast %cst_110 : f32 to vector<2x32xf32>
    %293 = arith.addf %292, %291 : vector<2x32xf32>
    %cst_111 = arith.constant 1.000000e+00 : f32
    %294 = vector.broadcast %cst_111 : f32 to vector<2x32xf32>
    %295 = arith.divf %294, %293 : vector<2x32xf32>
    %296 = vector.extract_strided_slice %275 {offsets = [0, 64], sizes = [2, 32], strides = [1, 1]} : vector<2x128xf32> to vector<2x32xf32>
    %297 = math.tanh %296 : vector<2x32xf32>
    %298 = vector.extract_strided_slice %275 {offsets = [0, 96], sizes = [2, 32], strides = [1, 1]} : vector<2x128xf32> to vector<2x32xf32>
    %cst_112 = arith.constant 0.000000e+00 : f32
    %299 = vector.broadcast %cst_112 : f32 to vector<2x32xf32>
    %300 = arith.subf %299, %298 : vector<2x32xf32>
    %301 = math.exp %300 : vector<2x32xf32>
    %cst_113 = arith.constant 1.000000e+00 : f32
    %302 = vector.broadcast %cst_113 : f32 to vector<2x32xf32>
    %303 = arith.addf %302, %301 : vector<2x32xf32>
    %cst_114 = arith.constant 1.000000e+00 : f32
    %304 = vector.broadcast %cst_114 : f32 to vector<2x32xf32>
    %305 = arith.divf %304, %303 : vector<2x32xf32>
    %306 = arith.mulf %295, %222 : vector<2x32xf32>
    %307 = arith.mulf %287, %297 : vector<2x32xf32>
    %308 = arith.addf %306, %307 : vector<2x32xf32>
    %309 = math.tanh %308 : vector<2x32xf32>
    %310 = arith.mulf %305, %309 : vector<2x32xf32>
    %311 = vector.extract_strided_slice %279 {offsets = [0, 0], sizes = [2, 32], strides = [1, 1]} : vector<2x128xf32> to vector<2x32xf32>
    %cst_115 = arith.constant 0.000000e+00 : f32
    %312 = vector.broadcast %cst_115 : f32 to vector<2x32xf32>
    %313 = arith.subf %312, %311 : vector<2x32xf32>
    %314 = math.exp %313 : vector<2x32xf32>
    %cst_116 = arith.constant 1.000000e+00 : f32
    %315 = vector.broadcast %cst_116 : f32 to vector<2x32xf32>
    %316 = arith.addf %315, %314 : vector<2x32xf32>
    %cst_117 = arith.constant 1.000000e+00 : f32
    %317 = vector.broadcast %cst_117 : f32 to vector<2x32xf32>
    %318 = arith.divf %317, %316 : vector<2x32xf32>
    %319 = vector.extract_strided_slice %279 {offsets = [0, 32], sizes = [2, 32], strides = [1, 1]} : vector<2x128xf32> to vector<2x32xf32>
    %cst_118 = arith.constant 0.000000e+00 : f32
    %320 = vector.broadcast %cst_118 : f32 to vector<2x32xf32>
    %321 = arith.subf %320, %319 : vector<2x32xf32>
    %322 = math.exp %321 : vector<2x32xf32>
    %cst_119 = arith.constant 1.000000e+00 : f32
    %323 = vector.broadcast %cst_119 : f32 to vector<2x32xf32>
    %324 = arith.addf %323, %322 : vector<2x32xf32>
    %cst_120 = arith.constant 1.000000e+00 : f32
    %325 = vector.broadcast %cst_120 : f32 to vector<2x32xf32>
    %326 = arith.divf %325, %324 : vector<2x32xf32>
    %327 = vector.extract_strided_slice %279 {offsets = [0, 64], sizes = [2, 32], strides = [1, 1]} : vector<2x128xf32> to vector<2x32xf32>
    %328 = math.tanh %327 : vector<2x32xf32>
    %329 = vector.extract_strided_slice %279 {offsets = [0, 96], sizes = [2, 32], strides = [1, 1]} : vector<2x128xf32> to vector<2x32xf32>
    %cst_121 = arith.constant 0.000000e+00 : f32
    %330 = vector.broadcast %cst_121 : f32 to vector<2x32xf32>
    %331 = arith.subf %330, %329 : vector<2x32xf32>
    %332 = math.exp %331 : vector<2x32xf32>
    %cst_122 = arith.constant 1.000000e+00 : f32
    %333 = vector.broadcast %cst_122 : f32 to vector<2x32xf32>
    %334 = arith.addf %333, %332 : vector<2x32xf32>
    %cst_123 = arith.constant 1.000000e+00 : f32
    %335 = vector.broadcast %cst_123 : f32 to vector<2x32xf32>
    %336 = arith.divf %335, %334 : vector<2x32xf32>
    %337 = arith.mulf %326, %253 : vector<2x32xf32>
    %338 = arith.mulf %318, %328 : vector<2x32xf32>
    %339 = arith.addf %337, %338 : vector<2x32xf32>
    %340 = math.tanh %339 : vector<2x32xf32>
    %341 = arith.mulf %336, %340 : vector<2x32xf32>
    %342 = vector.extract_strided_slice %310 {offsets = [0, 0], sizes = [1, 32], strides = [1, 1]} : vector<2x32xf32> to vector<1x32xf32>
    %c0_124 = arith.constant 0 : index
    %c3 = arith.constant 3 : index
    %c0_125 = arith.constant 0 : index
    %343 = vector.load %arg15[%c0_124, %c3, %c0_125] : memref<2x8x64xf32, #tpu.memory_space<vmem>>, vector<1x1x32xf32>
    %344 = vector.shape_cast %343 : vector<1x1x32xf32> to vector<1x32xf32>
    %345 = vector.shape_cast %342 : vector<1x32xf32> to vector<1x1x32xf32>
    tpu.vector_store %arg15[%c0_124, %c3, %c0_125], %345 {strides = array<i32>} : memref<2x8x64xf32, #tpu.memory_space<vmem>>, vector<1x1x32xf32>,
    %346 = vector.extract_strided_slice %341 {offsets = [0, 0], sizes = [1, 32], strides = [1, 1]} : vector<2x32xf32> to vector<1x32xf32>
    %c0_126 = arith.constant 0 : index
    %c4 = arith.constant 4 : index
    %c32_127 = arith.constant 32 : index
    %347 = vector.load %arg15[%c0_126, %c4, %c32_127] : memref<2x8x64xf32, #tpu.memory_space<vmem>>, vector<1x1x32xf32>
    %348 = vector.shape_cast %347 : vector<1x1x32xf32> to vector<1x32xf32>
    %349 = vector.shape_cast %346 : vector<1x32xf32> to vector<1x1x32xf32>
    tpu.vector_store %arg15[%c0_126, %c4, %c32_127], %349 {strides = array<i32>} : memref<2x8x64xf32, #tpu.memory_space<vmem>>, vector<1x1x32xf32>,
    %350 = vector.extract_strided_slice %310 {offsets = [1, 0], sizes = [1, 32], strides = [1, 1]} : vector<2x32xf32> to vector<1x32xf32>
    %c1_128 = arith.constant 1 : index
    %c3_129 = arith.constant 3 : index
    %c0_130 = arith.constant 0 : index
    %351 = vector.load %arg15[%c1_128, %c3_129, %c0_130] : memref<2x8x64xf32, #tpu.memory_space<vmem>>, vector<1x1x32xf32>
    %352 = vector.shape_cast %351 : vector<1x1x32xf32> to vector<1x32xf32>
    %353 = vector.shape_cast %350 : vector<1x32xf32> to vector<1x1x32xf32>
    tpu.vector_store %arg15[%c1_128, %c3_129, %c0_130], %353 {strides = array<i32>} : memref<2x8x64xf32, #tpu.memory_space<vmem>>, vector<1x1x32xf32>,
    %354 = vector.extract_strided_slice %341 {offsets = [1, 0], sizes = [1, 32], strides = [1, 1]} : vector<2x32xf32> to vector<1x32xf32>
    %c1_131 = arith.constant 1 : index
    %c4_132 = arith.constant 4 : index
    %c32_133 = arith.constant 32 : index
    %355 = vector.load %arg15[%c1_131, %c4_132, %c32_133] : memref<2x8x64xf32, #tpu.memory_space<vmem>>, vector<1x1x32xf32>
    %356 = vector.shape_cast %355 : vector<1x1x32xf32> to vector<1x32xf32>
    %357 = vector.shape_cast %354 : vector<1x32xf32> to vector<1x1x32xf32>
    tpu.vector_store %arg15[%c1_131, %c4_132, %c32_133], %357 {strides = array<i32>} : memref<2x8x64xf32, #tpu.memory_space<vmem>>, vector<1x1x32xf32>,
    %358 = vector.extract_strided_slice %15 {offsets = [8, 0], sizes = [2, 128], strides = [1, 1]} : vector<16x256xf32> to vector<2x128xf32>
    %359 = arith.truncf %310 : vector<2x32xf32> to vector<2x32xbf16>
    %cst_134 = arith.constant dense<0.000000e+00> : vector<2x128xf32>
    %360 = tpu.matmul %359, %16, %cst_134 {dimension_numbers = #tpu.dot_dimension_numbers<[1], [0], [0], [1], [0, 0, 1, 1], [], []>} : vector<2x32xbf16>, vector<32x128xbf16>, vector<2x128xf32> -> vector<2x128xf32>
    %361 = arith.addf %358, %360 : vector<2x128xf32>
    %362 = vector.extract_strided_slice %15 {offsets = [6, 128], sizes = [2, 128], strides = [1, 1]} : vector<16x256xf32> to vector<2x128xf32>
    %363 = arith.truncf %341 : vector<2x32xf32> to vector<2x32xbf16>
    %cst_135 = arith.constant dense<0.000000e+00> : vector<2x128xf32>
    %364 = tpu.matmul %363, %17, %cst_135 {dimension_numbers = #tpu.dot_dimension_numbers<[1], [0], [0], [1], [0, 0, 1, 1], [], []>} : vector<2x32xbf16>, vector<32x128xbf16>, vector<2x128xf32> -> vector<2x128xf32>
    %365 = arith.addf %362, %364 : vector<2x128xf32>
    %366 = vector.extract_strided_slice %361 {offsets = [0, 0], sizes = [2, 32], strides = [1, 1]} : vector<2x128xf32> to vector<2x32xf32>
    %cst_136 = arith.constant 0.000000e+00 : f32
    %367 = vector.broadcast %cst_136 : f32 to vector<2x32xf32>
    %368 = arith.subf %367, %366 : vector<2x32xf32>
    %369 = math.exp %368 : vector<2x32xf32>
    %cst_137 = arith.constant 1.000000e+00 : f32
    %370 = vector.broadcast %cst_137 : f32 to vector<2x32xf32>
    %371 = arith.addf %370, %369 : vector<2x32xf32>
    %cst_138 = arith.constant 1.000000e+00 : f32
    %372 = vector.broadcast %cst_138 : f32 to vector<2x32xf32>
    %373 = arith.divf %372, %371 : vector<2x32xf32>
    %374 = vector.extract_strided_slice %361 {offsets = [0, 32], sizes = [2, 32], strides = [1, 1]} : vector<2x128xf32> to vector<2x32xf32>
    %cst_139 = arith.constant 0.000000e+00 : f32
    %375 = vector.broadcast %cst_139 : f32 to vector<2x32xf32>
    %376 = arith.subf %375, %374 : vector<2x32xf32>
    %377 = math.exp %376 : vector<2x32xf32>
    %cst_140 = arith.constant 1.000000e+00 : f32
    %378 = vector.broadcast %cst_140 : f32 to vector<2x32xf32>
    %379 = arith.addf %378, %377 : vector<2x32xf32>
    %cst_141 = arith.constant 1.000000e+00 : f32
    %380 = vector.broadcast %cst_141 : f32 to vector<2x32xf32>
    %381 = arith.divf %380, %379 : vector<2x32xf32>
    %382 = vector.extract_strided_slice %361 {offsets = [0, 64], sizes = [2, 32], strides = [1, 1]} : vector<2x128xf32> to vector<2x32xf32>
    %383 = math.tanh %382 : vector<2x32xf32>
    %384 = vector.extract_strided_slice %361 {offsets = [0, 96], sizes = [2, 32], strides = [1, 1]} : vector<2x128xf32> to vector<2x32xf32>
    %cst_142 = arith.constant 0.000000e+00 : f32
    %385 = vector.broadcast %cst_142 : f32 to vector<2x32xf32>
    %386 = arith.subf %385, %384 : vector<2x32xf32>
    %387 = math.exp %386 : vector<2x32xf32>
    %cst_143 = arith.constant 1.000000e+00 : f32
    %388 = vector.broadcast %cst_143 : f32 to vector<2x32xf32>
    %389 = arith.addf %388, %387 : vector<2x32xf32>
    %cst_144 = arith.constant 1.000000e+00 : f32
    %390 = vector.broadcast %cst_144 : f32 to vector<2x32xf32>
    %391 = arith.divf %390, %389 : vector<2x32xf32>
    %392 = arith.mulf %381, %308 : vector<2x32xf32>
    %393 = arith.mulf %373, %383 : vector<2x32xf32>
    %394 = arith.addf %392, %393 : vector<2x32xf32>
    %395 = math.tanh %394 : vector<2x32xf32>
    %396 = arith.mulf %391, %395 : vector<2x32xf32>
    %397 = vector.extract_strided_slice %365 {offsets = [0, 0], sizes = [2, 32], strides = [1, 1]} : vector<2x128xf32> to vector<2x32xf32>
    %cst_145 = arith.constant 0.000000e+00 : f32
    %398 = vector.broadcast %cst_145 : f32 to vector<2x32xf32>
    %399 = arith.subf %398, %397 : vector<2x32xf32>
    %400 = math.exp %399 : vector<2x32xf32>
    %cst_146 = arith.constant 1.000000e+00 : f32
    %401 = vector.broadcast %cst_146 : f32 to vector<2x32xf32>
    %402 = arith.addf %401, %400 : vector<2x32xf32>
    %cst_147 = arith.constant 1.000000e+00 : f32
    %403 = vector.broadcast %cst_147 : f32 to vector<2x32xf32>
    %404 = arith.divf %403, %402 : vector<2x32xf32>
    %405 = vector.extract_strided_slice %365 {offsets = [0, 32], sizes = [2, 32], strides = [1, 1]} : vector<2x128xf32> to vector<2x32xf32>
    %cst_148 = arith.constant 0.000000e+00 : f32
    %406 = vector.broadcast %cst_148 : f32 to vector<2x32xf32>
    %407 = arith.subf %406, %405 : vector<2x32xf32>
    %408 = math.exp %407 : vector<2x32xf32>
    %cst_149 = arith.constant 1.000000e+00 : f32
    %409 = vector.broadcast %cst_149 : f32 to vector<2x32xf32>
    %410 = arith.addf %409, %408 : vector<2x32xf32>
    %cst_150 = arith.constant 1.000000e+00 : f32
    %411 = vector.broadcast %cst_150 : f32 to vector<2x32xf32>
    %412 = arith.divf %411, %410 : vector<2x32xf32>
    %413 = vector.extract_strided_slice %365 {offsets = [0, 64], sizes = [2, 32], strides = [1, 1]} : vector<2x128xf32> to vector<2x32xf32>
    %414 = math.tanh %413 : vector<2x32xf32>
    %415 = vector.extract_strided_slice %365 {offsets = [0, 96], sizes = [2, 32], strides = [1, 1]} : vector<2x128xf32> to vector<2x32xf32>
    %cst_151 = arith.constant 0.000000e+00 : f32
    %416 = vector.broadcast %cst_151 : f32 to vector<2x32xf32>
    %417 = arith.subf %416, %415 : vector<2x32xf32>
    %418 = math.exp %417 : vector<2x32xf32>
    %cst_152 = arith.constant 1.000000e+00 : f32
    %419 = vector.broadcast %cst_152 : f32 to vector<2x32xf32>
    %420 = arith.addf %419, %418 : vector<2x32xf32>
    %cst_153 = arith.constant 1.000000e+00 : f32
    %421 = vector.broadcast %cst_153 : f32 to vector<2x32xf32>
    %422 = arith.divf %421, %420 : vector<2x32xf32>
    %423 = arith.mulf %412, %339 : vector<2x32xf32>
    %424 = arith.mulf %404, %414 : vector<2x32xf32>
    %425 = arith.addf %423, %424 : vector<2x32xf32>
    %426 = math.tanh %425 : vector<2x32xf32>
    %427 = arith.mulf %422, %426 : vector<2x32xf32>
    %428 = vector.extract_strided_slice %396 {offsets = [0, 0], sizes = [1, 32], strides = [1, 1]} : vector<2x32xf32> to vector<1x32xf32>
    %c0_154 = arith.constant 0 : index
    %c4_155 = arith.constant 4 : index
    %c0_156 = arith.constant 0 : index
    %429 = vector.load %arg15[%c0_154, %c4_155, %c0_156] : memref<2x8x64xf32, #tpu.memory_space<vmem>>, vector<1x1x32xf32>
    %430 = vector.shape_cast %429 : vector<1x1x32xf32> to vector<1x32xf32>
    %431 = vector.shape_cast %428 : vector<1x32xf32> to vector<1x1x32xf32>
    tpu.vector_store %arg15[%c0_154, %c4_155, %c0_156], %431 {strides = array<i32>} : memref<2x8x64xf32, #tpu.memory_space<vmem>>, vector<1x1x32xf32>,
    %432 = vector.extract_strided_slice %427 {offsets = [0, 0], sizes = [1, 32], strides = [1, 1]} : vector<2x32xf32> to vector<1x32xf32>
    %c0_157 = arith.constant 0 : index
    %c3_158 = arith.constant 3 : index
    %c32_159 = arith.constant 32 : index
    %433 = vector.load %arg15[%c0_157, %c3_158, %c32_159] : memref<2x8x64xf32, #tpu.memory_space<vmem>>, vector<1x1x32xf32>
    %434 = vector.shape_cast %433 : vector<1x1x32xf32> to vector<1x32xf32>
    %435 = vector.shape_cast %432 : vector<1x32xf32> to vector<1x1x32xf32>
    tpu.vector_store %arg15[%c0_157, %c3_158, %c32_159], %435 {strides = array<i32>} : memref<2x8x64xf32, #tpu.memory_space<vmem>>, vector<1x1x32xf32>,
    %436 = vector.extract_strided_slice %396 {offsets = [1, 0], sizes = [1, 32], strides = [1, 1]} : vector<2x32xf32> to vector<1x32xf32>
    %c1_160 = arith.constant 1 : index
    %c4_161 = arith.constant 4 : index
    %c0_162 = arith.constant 0 : index
    %437 = vector.load %arg15[%c1_160, %c4_161, %c0_162] : memref<2x8x64xf32, #tpu.memory_space<vmem>>, vector<1x1x32xf32>
    %438 = vector.shape_cast %437 : vector<1x1x32xf32> to vector<1x32xf32>
    %439 = vector.shape_cast %436 : vector<1x32xf32> to vector<1x1x32xf32>
    tpu.vector_store %arg15[%c1_160, %c4_161, %c0_162], %439 {strides = array<i32>} : memref<2x8x64xf32, #tpu.memory_space<vmem>>, vector<1x1x32xf32>,
    %440 = vector.extract_strided_slice %427 {offsets = [1, 0], sizes = [1, 32], strides = [1, 1]} : vector<2x32xf32> to vector<1x32xf32>
    %c1_163 = arith.constant 1 : index
    %c3_164 = arith.constant 3 : index
    %c32_165 = arith.constant 32 : index
    %441 = vector.load %arg15[%c1_163, %c3_164, %c32_165] : memref<2x8x64xf32, #tpu.memory_space<vmem>>, vector<1x1x32xf32>
    %442 = vector.shape_cast %441 : vector<1x1x32xf32> to vector<1x32xf32>
    %443 = vector.shape_cast %440 : vector<1x32xf32> to vector<1x1x32xf32>
    tpu.vector_store %arg15[%c1_163, %c3_164, %c32_165], %443 {strides = array<i32>} : memref<2x8x64xf32, #tpu.memory_space<vmem>>, vector<1x1x32xf32>,
    %444 = vector.extract_strided_slice %15 {offsets = [10, 0], sizes = [2, 128], strides = [1, 1]} : vector<16x256xf32> to vector<2x128xf32>
    %445 = arith.truncf %396 : vector<2x32xf32> to vector<2x32xbf16>
    %cst_166 = arith.constant dense<0.000000e+00> : vector<2x128xf32>
    %446 = tpu.matmul %445, %16, %cst_166 {dimension_numbers = #tpu.dot_dimension_numbers<[1], [0], [0], [1], [0, 0, 1, 1], [], []>} : vector<2x32xbf16>, vector<32x128xbf16>, vector<2x128xf32> -> vector<2x128xf32>
    %447 = arith.addf %444, %446 : vector<2x128xf32>
    %448 = vector.extract_strided_slice %15 {offsets = [4, 128], sizes = [2, 128], strides = [1, 1]} : vector<16x256xf32> to vector<2x128xf32>
    %449 = arith.truncf %427 : vector<2x32xf32> to vector<2x32xbf16>
    %cst_167 = arith.constant dense<0.000000e+00> : vector<2x128xf32>
    %450 = tpu.matmul %449, %17, %cst_167 {dimension_numbers = #tpu.dot_dimension_numbers<[1], [0], [0], [1], [0, 0, 1, 1], [], []>} : vector<2x32xbf16>, vector<32x128xbf16>, vector<2x128xf32> -> vector<2x128xf32>
    %451 = arith.addf %448, %450 : vector<2x128xf32>
    %452 = vector.extract_strided_slice %447 {offsets = [0, 0], sizes = [2, 32], strides = [1, 1]} : vector<2x128xf32> to vector<2x32xf32>
    %cst_168 = arith.constant 0.000000e+00 : f32
    %453 = vector.broadcast %cst_168 : f32 to vector<2x32xf32>
    %454 = arith.subf %453, %452 : vector<2x32xf32>
    %455 = math.exp %454 : vector<2x32xf32>
    %cst_169 = arith.constant 1.000000e+00 : f32
    %456 = vector.broadcast %cst_169 : f32 to vector<2x32xf32>
    %457 = arith.addf %456, %455 : vector<2x32xf32>
    %cst_170 = arith.constant 1.000000e+00 : f32
    %458 = vector.broadcast %cst_170 : f32 to vector<2x32xf32>
    %459 = arith.divf %458, %457 : vector<2x32xf32>
    %460 = vector.extract_strided_slice %447 {offsets = [0, 32], sizes = [2, 32], strides = [1, 1]} : vector<2x128xf32> to vector<2x32xf32>
    %cst_171 = arith.constant 0.000000e+00 : f32
    %461 = vector.broadcast %cst_171 : f32 to vector<2x32xf32>
    %462 = arith.subf %461, %460 : vector<2x32xf32>
    %463 = math.exp %462 : vector<2x32xf32>
    %cst_172 = arith.constant 1.000000e+00 : f32
    %464 = vector.broadcast %cst_172 : f32 to vector<2x32xf32>
    %465 = arith.addf %464, %463 : vector<2x32xf32>
    %cst_173 = arith.constant 1.000000e+00 : f32
    %466 = vector.broadcast %cst_173 : f32 to vector<2x32xf32>
    %467 = arith.divf %466, %465 : vector<2x32xf32>
    %468 = vector.extract_strided_slice %447 {offsets = [0, 64], sizes = [2, 32], strides = [1, 1]} : vector<2x128xf32> to vector<2x32xf32>
    %469 = math.tanh %468 : vector<2x32xf32>
    %470 = vector.extract_strided_slice %447 {offsets = [0, 96], sizes = [2, 32], strides = [1, 1]} : vector<2x128xf32> to vector<2x32xf32>
    %cst_174 = arith.constant 0.000000e+00 : f32
    %471 = vector.broadcast %cst_174 : f32 to vector<2x32xf32>
    %472 = arith.subf %471, %470 : vector<2x32xf32>
    %473 = math.exp %472 : vector<2x32xf32>
    %cst_175 = arith.constant 1.000000e+00 : f32
    %474 = vector.broadcast %cst_175 : f32 to vector<2x32xf32>
    %475 = arith.addf %474, %473 : vector<2x32xf32>
    %cst_176 = arith.constant 1.000000e+00 : f32
    %476 = vector.broadcast %cst_176 : f32 to vector<2x32xf32>
    %477 = arith.divf %476, %475 : vector<2x32xf32>
    %478 = arith.mulf %467, %394 : vector<2x32xf32>
    %479 = arith.mulf %459, %469 : vector<2x32xf32>
    %480 = arith.addf %478, %479 : vector<2x32xf32>
    %481 = math.tanh %480 : vector<2x32xf32>
    %482 = arith.mulf %477, %481 : vector<2x32xf32>
    %483 = vector.extract_strided_slice %451 {offsets = [0, 0], sizes = [2, 32], strides = [1, 1]} : vector<2x128xf32> to vector<2x32xf32>
    %cst_177 = arith.constant 0.000000e+00 : f32
    %484 = vector.broadcast %cst_177 : f32 to vector<2x32xf32>
    %485 = arith.subf %484, %483 : vector<2x32xf32>
    %486 = math.exp %485 : vector<2x32xf32>
    %cst_178 = arith.constant 1.000000e+00 : f32
    %487 = vector.broadcast %cst_178 : f32 to vector<2x32xf32>
    %488 = arith.addf %487, %486 : vector<2x32xf32>
    %cst_179 = arith.constant 1.000000e+00 : f32
    %489 = vector.broadcast %cst_179 : f32 to vector<2x32xf32>
    %490 = arith.divf %489, %488 : vector<2x32xf32>
    %491 = vector.extract_strided_slice %451 {offsets = [0, 32], sizes = [2, 32], strides = [1, 1]} : vector<2x128xf32> to vector<2x32xf32>
    %cst_180 = arith.constant 0.000000e+00 : f32
    %492 = vector.broadcast %cst_180 : f32 to vector<2x32xf32>
    %493 = arith.subf %492, %491 : vector<2x32xf32>
    %494 = math.exp %493 : vector<2x32xf32>
    %cst_181 = arith.constant 1.000000e+00 : f32
    %495 = vector.broadcast %cst_181 : f32 to vector<2x32xf32>
    %496 = arith.addf %495, %494 : vector<2x32xf32>
    %cst_182 = arith.constant 1.000000e+00 : f32
    %497 = vector.broadcast %cst_182 : f32 to vector<2x32xf32>
    %498 = arith.divf %497, %496 : vector<2x32xf32>
    %499 = vector.extract_strided_slice %451 {offsets = [0, 64], sizes = [2, 32], strides = [1, 1]} : vector<2x128xf32> to vector<2x32xf32>
    %500 = math.tanh %499 : vector<2x32xf32>
    %501 = vector.extract_strided_slice %451 {offsets = [0, 96], sizes = [2, 32], strides = [1, 1]} : vector<2x128xf32> to vector<2x32xf32>
    %cst_183 = arith.constant 0.000000e+00 : f32
    %502 = vector.broadcast %cst_183 : f32 to vector<2x32xf32>
    %503 = arith.subf %502, %501 : vector<2x32xf32>
    %504 = math.exp %503 : vector<2x32xf32>
    %cst_184 = arith.constant 1.000000e+00 : f32
    %505 = vector.broadcast %cst_184 : f32 to vector<2x32xf32>
    %506 = arith.addf %505, %504 : vector<2x32xf32>
    %cst_185 = arith.constant 1.000000e+00 : f32
    %507 = vector.broadcast %cst_185 : f32 to vector<2x32xf32>
    %508 = arith.divf %507, %506 : vector<2x32xf32>
    %509 = arith.mulf %498, %425 : vector<2x32xf32>
    %510 = arith.mulf %490, %500 : vector<2x32xf32>
    %511 = arith.addf %509, %510 : vector<2x32xf32>
    %512 = math.tanh %511 : vector<2x32xf32>
    %513 = arith.mulf %508, %512 : vector<2x32xf32>
    %514 = vector.extract_strided_slice %482 {offsets = [0, 0], sizes = [1, 32], strides = [1, 1]} : vector<2x32xf32> to vector<1x32xf32>
    %c0_186 = arith.constant 0 : index
    %c5_187 = arith.constant 5 : index
    %c0_188 = arith.constant 0 : index
    %515 = vector.load %arg15[%c0_186, %c5_187, %c0_188] : memref<2x8x64xf32, #tpu.memory_space<vmem>>, vector<1x1x32xf32>
    %516 = vector.shape_cast %515 : vector<1x1x32xf32> to vector<1x32xf32>
    %517 = vector.shape_cast %514 : vector<1x32xf32> to vector<1x1x32xf32>
    tpu.vector_store %arg15[%c0_186, %c5_187, %c0_188], %517 {strides = array<i32>} : memref<2x8x64xf32, #tpu.memory_space<vmem>>, vector<1x1x32xf32>,
    %518 = vector.extract_strided_slice %513 {offsets = [0, 0], sizes = [1, 32], strides = [1, 1]} : vector<2x32xf32> to vector<1x32xf32>
    %c0_189 = arith.constant 0 : index
    %c2_190 = arith.constant 2 : index
    %c32_191 = arith.constant 32 : index
    %519 = vector.load %arg15[%c0_189, %c2_190, %c32_191] : memref<2x8x64xf32, #tpu.memory_space<vmem>>, vector<1x1x32xf32>
    %520 = vector.shape_cast %519 : vector<1x1x32xf32> to vector<1x32xf32>
    %521 = vector.shape_cast %518 : vector<1x32xf32> to vector<1x1x32xf32>
    tpu.vector_store %arg15[%c0_189, %c2_190, %c32_191], %521 {strides = array<i32>} : memref<2x8x64xf32, #tpu.memory_space<vmem>>, vector<1x1x32xf32>,
    %522 = vector.extract_strided_slice %482 {offsets = [1, 0], sizes = [1, 32], strides = [1, 1]} : vector<2x32xf32> to vector<1x32xf32>
    %c1_192 = arith.constant 1 : index
    %c5_193 = arith.constant 5 : index
    %c0_194 = arith.constant 0 : index
    %523 = vector.load %arg15[%c1_192, %c5_193, %c0_194] : memref<2x8x64xf32, #tpu.memory_space<vmem>>, vector<1x1x32xf32>
    %524 = vector.shape_cast %523 : vector<1x1x32xf32> to vector<1x32xf32>
    %525 = vector.shape_cast %522 : vector<1x32xf32> to vector<1x1x32xf32>
    tpu.vector_store %arg15[%c1_192, %c5_193, %c0_194], %525 {strides = array<i32>} : memref<2x8x64xf32, #tpu.memory_space<vmem>>, vector<1x1x32xf32>,
    %526 = vector.extract_strided_slice %513 {offsets = [1, 0], sizes = [1, 32], strides = [1, 1]} : vector<2x32xf32> to vector<1x32xf32>
    %c1_195 = arith.constant 1 : index
    %c2_196 = arith.constant 2 : index
    %c32_197 = arith.constant 32 : index
    %527 = vector.load %arg15[%c1_195, %c2_196, %c32_197] : memref<2x8x64xf32, #tpu.memory_space<vmem>>, vector<1x1x32xf32>
    %528 = vector.shape_cast %527 : vector<1x1x32xf32> to vector<1x32xf32>
    %529 = vector.shape_cast %526 : vector<1x32xf32> to vector<1x1x32xf32>
    tpu.vector_store %arg15[%c1_195, %c2_196, %c32_197], %529 {strides = array<i32>} : memref<2x8x64xf32, #tpu.memory_space<vmem>>, vector<1x1x32xf32>,
    %530 = vector.extract_strided_slice %15 {offsets = [12, 0], sizes = [2, 128], strides = [1, 1]} : vector<16x256xf32> to vector<2x128xf32>
    %531 = arith.truncf %482 : vector<2x32xf32> to vector<2x32xbf16>
    %cst_198 = arith.constant dense<0.000000e+00> : vector<2x128xf32>
    %532 = tpu.matmul %531, %16, %cst_198 {dimension_numbers = #tpu.dot_dimension_numbers<[1], [0], [0], [1], [0, 0, 1, 1], [], []>} : vector<2x32xbf16>, vector<32x128xbf16>, vector<2x128xf32> -> vector<2x128xf32>
    %533 = arith.addf %530, %532 : vector<2x128xf32>
    %534 = vector.extract_strided_slice %15 {offsets = [2, 128], sizes = [2, 128], strides = [1, 1]} : vector<16x256xf32> to vector<2x128xf32>
    %535 = arith.truncf %513 : vector<2x32xf32> to vector<2x32xbf16>
    %cst_199 = arith.constant dense<0.000000e+00> : vector<2x128xf32>
    %536 = tpu.matmul %535, %17, %cst_199 {dimension_numbers = #tpu.dot_dimension_numbers<[1], [0], [0], [1], [0, 0, 1, 1], [], []>} : vector<2x32xbf16>, vector<32x128xbf16>, vector<2x128xf32> -> vector<2x128xf32>
    %537 = arith.addf %534, %536 : vector<2x128xf32>
    %538 = vector.extract_strided_slice %533 {offsets = [0, 0], sizes = [2, 32], strides = [1, 1]} : vector<2x128xf32> to vector<2x32xf32>
    %cst_200 = arith.constant 0.000000e+00 : f32
    %539 = vector.broadcast %cst_200 : f32 to vector<2x32xf32>
    %540 = arith.subf %539, %538 : vector<2x32xf32>
    %541 = math.exp %540 : vector<2x32xf32>
    %cst_201 = arith.constant 1.000000e+00 : f32
    %542 = vector.broadcast %cst_201 : f32 to vector<2x32xf32>
    %543 = arith.addf %542, %541 : vector<2x32xf32>
    %cst_202 = arith.constant 1.000000e+00 : f32
    %544 = vector.broadcast %cst_202 : f32 to vector<2x32xf32>
    %545 = arith.divf %544, %543 : vector<2x32xf32>
    %546 = vector.extract_strided_slice %533 {offsets = [0, 32], sizes = [2, 32], strides = [1, 1]} : vector<2x128xf32> to vector<2x32xf32>
    %cst_203 = arith.constant 0.000000e+00 : f32
    %547 = vector.broadcast %cst_203 : f32 to vector<2x32xf32>
    %548 = arith.subf %547, %546 : vector<2x32xf32>
    %549 = math.exp %548 : vector<2x32xf32>
    %cst_204 = arith.constant 1.000000e+00 : f32
    %550 = vector.broadcast %cst_204 : f32 to vector<2x32xf32>
    %551 = arith.addf %550, %549 : vector<2x32xf32>
    %cst_205 = arith.constant 1.000000e+00 : f32
    %552 = vector.broadcast %cst_205 : f32 to vector<2x32xf32>
    %553 = arith.divf %552, %551 : vector<2x32xf32>
    %554 = vector.extract_strided_slice %533 {offsets = [0, 64], sizes = [2, 32], strides = [1, 1]} : vector<2x128xf32> to vector<2x32xf32>
    %555 = math.tanh %554 : vector<2x32xf32>
    %556 = vector.extract_strided_slice %533 {offsets = [0, 96], sizes = [2, 32], strides = [1, 1]} : vector<2x128xf32> to vector<2x32xf32>
    %cst_206 = arith.constant 0.000000e+00 : f32
    %557 = vector.broadcast %cst_206 : f32 to vector<2x32xf32>
    %558 = arith.subf %557, %556 : vector<2x32xf32>
    %559 = math.exp %558 : vector<2x32xf32>
    %cst_207 = arith.constant 1.000000e+00 : f32
    %560 = vector.broadcast %cst_207 : f32 to vector<2x32xf32>
    %561 = arith.addf %560, %559 : vector<2x32xf32>
    %cst_208 = arith.constant 1.000000e+00 : f32
    %562 = vector.broadcast %cst_208 : f32 to vector<2x32xf32>
    %563 = arith.divf %562, %561 : vector<2x32xf32>
    %564 = arith.mulf %553, %480 : vector<2x32xf32>
    %565 = arith.mulf %545, %555 : vector<2x32xf32>
    %566 = arith.addf %564, %565 : vector<2x32xf32>
    %567 = math.tanh %566 : vector<2x32xf32>
    %568 = arith.mulf %563, %567 : vector<2x32xf32>
    %569 = vector.extract_strided_slice %537 {offsets = [0, 0], sizes = [2, 32], strides = [1, 1]} : vector<2x128xf32> to vector<2x32xf32>
    %cst_209 = arith.constant 0.000000e+00 : f32
    %570 = vector.broadcast %cst_209 : f32 to vector<2x32xf32>
    %571 = arith.subf %570, %569 : vector<2x32xf32>
    %572 = math.exp %571 : vector<2x32xf32>
    %cst_210 = arith.constant 1.000000e+00 : f32
    %573 = vector.broadcast %cst_210 : f32 to vector<2x32xf32>
    %574 = arith.addf %573, %572 : vector<2x32xf32>
    %cst_211 = arith.constant 1.000000e+00 : f32
    %575 = vector.broadcast %cst_211 : f32 to vector<2x32xf32>
    %576 = arith.divf %575, %574 : vector<2x32xf32>
    %577 = vector.extract_strided_slice %537 {offsets = [0, 32], sizes = [2, 32], strides = [1, 1]} : vector<2x128xf32> to vector<2x32xf32>
    %cst_212 = arith.constant 0.000000e+00 : f32
    %578 = vector.broadcast %cst_212 : f32 to vector<2x32xf32>
    %579 = arith.subf %578, %577 : vector<2x32xf32>
    %580 = math.exp %579 : vector<2x32xf32>
    %cst_213 = arith.constant 1.000000e+00 : f32
    %581 = vector.broadcast %cst_213 : f32 to vector<2x32xf32>
    %582 = arith.addf %581, %580 : vector<2x32xf32>
    %cst_214 = arith.constant 1.000000e+00 : f32
    %583 = vector.broadcast %cst_214 : f32 to vector<2x32xf32>
    %584 = arith.divf %583, %582 : vector<2x32xf32>
    %585 = vector.extract_strided_slice %537 {offsets = [0, 64], sizes = [2, 32], strides = [1, 1]} : vector<2x128xf32> to vector<2x32xf32>
    %586 = math.tanh %585 : vector<2x32xf32>
    %587 = vector.extract_strided_slice %537 {offsets = [0, 96], sizes = [2, 32], strides = [1, 1]} : vector<2x128xf32> to vector<2x32xf32>
    %cst_215 = arith.constant 0.000000e+00 : f32
    %588 = vector.broadcast %cst_215 : f32 to vector<2x32xf32>
    %589 = arith.subf %588, %587 : vector<2x32xf32>
    %590 = math.exp %589 : vector<2x32xf32>
    %cst_216 = arith.constant 1.000000e+00 : f32
    %591 = vector.broadcast %cst_216 : f32 to vector<2x32xf32>
    %592 = arith.addf %591, %590 : vector<2x32xf32>
    %cst_217 = arith.constant 1.000000e+00 : f32
    %593 = vector.broadcast %cst_217 : f32 to vector<2x32xf32>
    %594 = arith.divf %593, %592 : vector<2x32xf32>
    %595 = arith.mulf %584, %511 : vector<2x32xf32>
    %596 = arith.mulf %576, %586 : vector<2x32xf32>
    %597 = arith.addf %595, %596 : vector<2x32xf32>
    %598 = math.tanh %597 : vector<2x32xf32>
    %599 = arith.mulf %594, %598 : vector<2x32xf32>
    %600 = vector.extract_strided_slice %568 {offsets = [0, 0], sizes = [1, 32], strides = [1, 1]} : vector<2x32xf32> to vector<1x32xf32>
    %c0_218 = arith.constant 0 : index
    %c6_219 = arith.constant 6 : index
    %c0_220 = arith.constant 0 : index
    %601 = vector.load %arg15[%c0_218, %c6_219, %c0_220] : memref<2x8x64xf32, #tpu.memory_space<vmem>>, vector<1x1x32xf32>
    %602 = vector.shape_cast %601 : vector<1x1x32xf32> to vector<1x32xf32>
    %603 = vector.shape_cast %600 : vector<1x32xf32> to vector<1x1x32xf32>
    tpu.vector_store %arg15[%c0_218, %c6_219, %c0_220], %603 {strides = array<i32>} : memref<2x8x64xf32, #tpu.memory_space<vmem>>, vector<1x1x32xf32>,
    %604 = vector.extract_strided_slice %599 {offsets = [0, 0], sizes = [1, 32], strides = [1, 1]} : vector<2x32xf32> to vector<1x32xf32>
    %c0_221 = arith.constant 0 : index
    %c1_222 = arith.constant 1 : index
    %c32_223 = arith.constant 32 : index
    %605 = vector.load %arg15[%c0_221, %c1_222, %c32_223] : memref<2x8x64xf32, #tpu.memory_space<vmem>>, vector<1x1x32xf32>
    %606 = vector.shape_cast %605 : vector<1x1x32xf32> to vector<1x32xf32>
    %607 = vector.shape_cast %604 : vector<1x32xf32> to vector<1x1x32xf32>
    tpu.vector_store %arg15[%c0_221, %c1_222, %c32_223], %607 {strides = array<i32>} : memref<2x8x64xf32, #tpu.memory_space<vmem>>, vector<1x1x32xf32>,
    %608 = vector.extract_strided_slice %568 {offsets = [1, 0], sizes = [1, 32], strides = [1, 1]} : vector<2x32xf32> to vector<1x32xf32>
    %c1_224 = arith.constant 1 : index
    %c6_225 = arith.constant 6 : index
    %c0_226 = arith.constant 0 : index
    %609 = vector.load %arg15[%c1_224, %c6_225, %c0_226] : memref<2x8x64xf32, #tpu.memory_space<vmem>>, vector<1x1x32xf32>
    %610 = vector.shape_cast %609 : vector<1x1x32xf32> to vector<1x32xf32>
    %611 = vector.shape_cast %608 : vector<1x32xf32> to vector<1x1x32xf32>
    tpu.vector_store %arg15[%c1_224, %c6_225, %c0_226], %611 {strides = array<i32>} : memref<2x8x64xf32, #tpu.memory_space<vmem>>, vector<1x1x32xf32>,
    %612 = vector.extract_strided_slice %599 {offsets = [1, 0], sizes = [1, 32], strides = [1, 1]} : vector<2x32xf32> to vector<1x32xf32>
    %c1_227 = arith.constant 1 : index
    %c1_228 = arith.constant 1 : index
    %c32_229 = arith.constant 32 : index
    %613 = vector.load %arg15[%c1_227, %c1_228, %c32_229] : memref<2x8x64xf32, #tpu.memory_space<vmem>>, vector<1x1x32xf32>
    %614 = vector.shape_cast %613 : vector<1x1x32xf32> to vector<1x32xf32>
    %615 = vector.shape_cast %612 : vector<1x32xf32> to vector<1x1x32xf32>
    tpu.vector_store %arg15[%c1_227, %c1_228, %c32_229], %615 {strides = array<i32>} : memref<2x8x64xf32, #tpu.memory_space<vmem>>, vector<1x1x32xf32>,
    %616 = vector.extract_strided_slice %15 {offsets = [14, 0], sizes = [2, 128], strides = [1, 1]} : vector<16x256xf32> to vector<2x128xf32>
    %617 = arith.truncf %568 : vector<2x32xf32> to vector<2x32xbf16>
    %cst_230 = arith.constant dense<0.000000e+00> : vector<2x128xf32>
    %618 = tpu.matmul %617, %16, %cst_230 {dimension_numbers = #tpu.dot_dimension_numbers<[1], [0], [0], [1], [0, 0, 1, 1], [], []>} : vector<2x32xbf16>, vector<32x128xbf16>, vector<2x128xf32> -> vector<2x128xf32>
    %619 = arith.addf %616, %618 : vector<2x128xf32>
    %620 = vector.extract_strided_slice %15 {offsets = [0, 128], sizes = [2, 128], strides = [1, 1]} : vector<16x256xf32> to vector<2x128xf32>
    %621 = arith.truncf %599 : vector<2x32xf32> to vector<2x32xbf16>
    %cst_231 = arith.constant dense<0.000000e+00> : vector<2x128xf32>
    %622 = tpu.matmul %621, %17, %cst_231 {dimension_numbers = #tpu.dot_dimension_numbers<[1], [0], [0], [1], [0, 0, 1, 1], [], []>} : vector<2x32xbf16>, vector<32x128xbf16>, vector<2x128xf32> -> vector<2x128xf32>
    %623 = arith.addf %620, %622 : vector<2x128xf32>
    %624 = vector.extract_strided_slice %619 {offsets = [0, 0], sizes = [2, 32], strides = [1, 1]} : vector<2x128xf32> to vector<2x32xf32>
    %cst_232 = arith.constant 0.000000e+00 : f32
    %625 = vector.broadcast %cst_232 : f32 to vector<2x32xf32>
    %626 = arith.subf %625, %624 : vector<2x32xf32>
    %627 = math.exp %626 : vector<2x32xf32>
    %cst_233 = arith.constant 1.000000e+00 : f32
    %628 = vector.broadcast %cst_233 : f32 to vector<2x32xf32>
    %629 = arith.addf %628, %627 : vector<2x32xf32>
    %cst_234 = arith.constant 1.000000e+00 : f32
    %630 = vector.broadcast %cst_234 : f32 to vector<2x32xf32>
    %631 = arith.divf %630, %629 : vector<2x32xf32>
    %632 = vector.extract_strided_slice %619 {offsets = [0, 32], sizes = [2, 32], strides = [1, 1]} : vector<2x128xf32> to vector<2x32xf32>
    %cst_235 = arith.constant 0.000000e+00 : f32
    %633 = vector.broadcast %cst_235 : f32 to vector<2x32xf32>
    %634 = arith.subf %633, %632 : vector<2x32xf32>
    %635 = math.exp %634 : vector<2x32xf32>
    %cst_236 = arith.constant 1.000000e+00 : f32
    %636 = vector.broadcast %cst_236 : f32 to vector<2x32xf32>
    %637 = arith.addf %636, %635 : vector<2x32xf32>
    %cst_237 = arith.constant 1.000000e+00 : f32
    %638 = vector.broadcast %cst_237 : f32 to vector<2x32xf32>
    %639 = arith.divf %638, %637 : vector<2x32xf32>
    %640 = vector.extract_strided_slice %619 {offsets = [0, 64], sizes = [2, 32], strides = [1, 1]} : vector<2x128xf32> to vector<2x32xf32>
    %641 = math.tanh %640 : vector<2x32xf32>
    %642 = vector.extract_strided_slice %619 {offsets = [0, 96], sizes = [2, 32], strides = [1, 1]} : vector<2x128xf32> to vector<2x32xf32>
    %cst_238 = arith.constant 0.000000e+00 : f32
    %643 = vector.broadcast %cst_238 : f32 to vector<2x32xf32>
    %644 = arith.subf %643, %642 : vector<2x32xf32>
    %645 = math.exp %644 : vector<2x32xf32>
    %cst_239 = arith.constant 1.000000e+00 : f32
    %646 = vector.broadcast %cst_239 : f32 to vector<2x32xf32>
    %647 = arith.addf %646, %645 : vector<2x32xf32>
    %cst_240 = arith.constant 1.000000e+00 : f32
    %648 = vector.broadcast %cst_240 : f32 to vector<2x32xf32>
    %649 = arith.divf %648, %647 : vector<2x32xf32>
    %650 = arith.mulf %639, %566 : vector<2x32xf32>
    %651 = arith.mulf %631, %641 : vector<2x32xf32>
    %652 = arith.addf %650, %651 : vector<2x32xf32>
    %653 = math.tanh %652 : vector<2x32xf32>
    %654 = arith.mulf %649, %653 : vector<2x32xf32>
    %655 = vector.extract_strided_slice %623 {offsets = [0, 0], sizes = [2, 32], strides = [1, 1]} : vector<2x128xf32> to vector<2x32xf32>
    %cst_241 = arith.constant 0.000000e+00 : f32
    %656 = vector.broadcast %cst_241 : f32 to vector<2x32xf32>
    %657 = arith.subf %656, %655 : vector<2x32xf32>
    %658 = math.exp %657 : vector<2x32xf32>
    %cst_242 = arith.constant 1.000000e+00 : f32
    %659 = vector.broadcast %cst_242 : f32 to vector<2x32xf32>
    %660 = arith.addf %659, %658 : vector<2x32xf32>
    %cst_243 = arith.constant 1.000000e+00 : f32
    %661 = vector.broadcast %cst_243 : f32 to vector<2x32xf32>
    %662 = arith.divf %661, %660 : vector<2x32xf32>
    %663 = vector.extract_strided_slice %623 {offsets = [0, 32], sizes = [2, 32], strides = [1, 1]} : vector<2x128xf32> to vector<2x32xf32>
    %cst_244 = arith.constant 0.000000e+00 : f32
    %664 = vector.broadcast %cst_244 : f32 to vector<2x32xf32>
    %665 = arith.subf %664, %663 : vector<2x32xf32>
    %666 = math.exp %665 : vector<2x32xf32>
    %cst_245 = arith.constant 1.000000e+00 : f32
    %667 = vector.broadcast %cst_245 : f32 to vector<2x32xf32>
    %668 = arith.addf %667, %666 : vector<2x32xf32>
    %cst_246 = arith.constant 1.000000e+00 : f32
    %669 = vector.broadcast %cst_246 : f32 to vector<2x32xf32>
    %670 = arith.divf %669, %668 : vector<2x32xf32>
    %671 = vector.extract_strided_slice %623 {offsets = [0, 64], sizes = [2, 32], strides = [1, 1]} : vector<2x128xf32> to vector<2x32xf32>
    %672 = math.tanh %671 : vector<2x32xf32>
    %673 = vector.extract_strided_slice %623 {offsets = [0, 96], sizes = [2, 32], strides = [1, 1]} : vector<2x128xf32> to vector<2x32xf32>
    %cst_247 = arith.constant 0.000000e+00 : f32
    %674 = vector.broadcast %cst_247 : f32 to vector<2x32xf32>
    %675 = arith.subf %674, %673 : vector<2x32xf32>
    %676 = math.exp %675 : vector<2x32xf32>
    %cst_248 = arith.constant 1.000000e+00 : f32
    %677 = vector.broadcast %cst_248 : f32 to vector<2x32xf32>
    %678 = arith.addf %677, %676 : vector<2x32xf32>
    %cst_249 = arith.constant 1.000000e+00 : f32
    %679 = vector.broadcast %cst_249 : f32 to vector<2x32xf32>
    %680 = arith.divf %679, %678 : vector<2x32xf32>
    %681 = arith.mulf %670, %597 : vector<2x32xf32>
    %682 = arith.mulf %662, %672 : vector<2x32xf32>
    %683 = arith.addf %681, %682 : vector<2x32xf32>
    %684 = math.tanh %683 : vector<2x32xf32>
    %685 = arith.mulf %680, %684 : vector<2x32xf32>
    %686 = vector.extract_strided_slice %654 {offsets = [0, 0], sizes = [1, 32], strides = [1, 1]} : vector<2x32xf32> to vector<1x32xf32>
    %c0_250 = arith.constant 0 : index
    %c7_251 = arith.constant 7 : index
    %c0_252 = arith.constant 0 : index
    %687 = vector.load %arg15[%c0_250, %c7_251, %c0_252] : memref<2x8x64xf32, #tpu.memory_space<vmem>>, vector<1x1x32xf32>
    %688 = vector.shape_cast %687 : vector<1x1x32xf32> to vector<1x32xf32>
    %689 = vector.shape_cast %686 : vector<1x32xf32> to vector<1x1x32xf32>
    tpu.vector_store %arg15[%c0_250, %c7_251, %c0_252], %689 {strides = array<i32>} : memref<2x8x64xf32, #tpu.memory_space<vmem>>, vector<1x1x32xf32>,
    %690 = vector.extract_strided_slice %685 {offsets = [0, 0], sizes = [1, 32], strides = [1, 1]} : vector<2x32xf32> to vector<1x32xf32>
    %c0_253 = arith.constant 0 : index
    %c0_254 = arith.constant 0 : index
    %c32_255 = arith.constant 32 : index
    %691 = vector.load %arg15[%c0_253, %c0_254, %c32_255] : memref<2x8x64xf32, #tpu.memory_space<vmem>>, vector<1x1x32xf32>
    %692 = vector.shape_cast %691 : vector<1x1x32xf32> to vector<1x32xf32>
    %693 = vector.shape_cast %690 : vector<1x32xf32> to vector<1x1x32xf32>
    tpu.vector_store %arg15[%c0_253, %c0_254, %c32_255], %693 {strides = array<i32>} : memref<2x8x64xf32, #tpu.memory_space<vmem>>, vector<1x1x32xf32>,
    %694 = vector.extract_strided_slice %654 {offsets = [1, 0], sizes = [1, 32], strides = [1, 1]} : vector<2x32xf32> to vector<1x32xf32>
    %c1_256 = arith.constant 1 : index
    %c7_257 = arith.constant 7 : index
    %c0_258 = arith.constant 0 : index
    %695 = vector.load %arg15[%c1_256, %c7_257, %c0_258] : memref<2x8x64xf32, #tpu.memory_space<vmem>>, vector<1x1x32xf32>
    %696 = vector.shape_cast %695 : vector<1x1x32xf32> to vector<1x32xf32>
    %697 = vector.shape_cast %694 : vector<1x32xf32> to vector<1x1x32xf32>
    tpu.vector_store %arg15[%c1_256, %c7_257, %c0_258], %697 {strides = array<i32>} : memref<2x8x64xf32, #tpu.memory_space<vmem>>, vector<1x1x32xf32>,
    %698 = vector.extract_strided_slice %685 {offsets = [1, 0], sizes = [1, 32], strides = [1, 1]} : vector<2x32xf32> to vector<1x32xf32>
    %c1_259 = arith.constant 1 : index
    %c0_260 = arith.constant 0 : index
    %c32_261 = arith.constant 32 : index
    %699 = vector.load %arg15[%c1_259, %c0_260, %c32_261] : memref<2x8x64xf32, #tpu.memory_space<vmem>>, vector<1x1x32xf32>
    %700 = vector.shape_cast %699 : vector<1x1x32xf32> to vector<1x32xf32>
    %701 = vector.shape_cast %698 : vector<1x32xf32> to vector<1x1x32xf32>
    tpu.vector_store %arg15[%c1_259, %c0_260, %c32_261], %701 {strides = array<i32>} : memref<2x8x64xf32, #tpu.memory_space<vmem>>, vector<1x1x32xf32>,
    %c0_262 = arith.constant 0 : index
    %c0_263 = arith.constant 0 : index
    %702 = vector.load %arg6[%c0_262, %c0_263] : memref<30x40xbf16, #tpu.memory_space<vmem>>, vector<30x40xbf16>
    %c0_264 = arith.constant 0 : index
    %c0_265 = arith.constant 0 : index
    %703 = vector.load %arg7[%c0_264, %c0_265] : memref<30x1xf32, #tpu.memory_space<vmem>>, vector<30x1xf32>
    %c0_266 = arith.constant 0 : index
    %c0_267 = arith.constant 0 : index
    %704 = vector.load %arg8[%c0_266, %c0_267] : memref<30x1xf32, #tpu.memory_space<vmem>>, vector<30x1xf32>
    %c0_268 = arith.constant 0 : index
    %c0_269 = arith.constant 0 : index
    %705 = vector.load %arg9[%c0_268, %c0_269] : memref<58x20xf32, #tpu.memory_space<vmem>>, vector<58x20xf32>
    %c0_270 = arith.constant 0 : index
    %c0_271 = arith.constant 0 : index
    %c0_272 = arith.constant 0 : index
    %706 = vector.load %arg15[%c0_270, %c0_271, %c0_272] : memref<2x8x64xf32, #tpu.memory_space<vmem>>, vector<1x8x64xf32>
    %707 = vector.shape_cast %706 : vector<1x8x64xf32> to vector<8x64xf32>
    %708 = vector.extract_strided_slice %707 {offsets = [0, 0], sizes = [8, 60], strides = [1, 1]} : vector<8x64xf32> to vector<8x60xf32>
    %709 = vector.extract_strided_slice %707 {offsets = [0, 1], sizes = [8, 60], strides = [1, 1]} : vector<8x64xf32> to vector<8x60xf32>
    %710 = vector.extract_strided_slice %707 {offsets = [0, 2], sizes = [8, 60], strides = [1, 1]} : vector<8x64xf32> to vector<8x60xf32>
    %711 = vector.extract_strided_slice %707 {offsets = [0, 3], sizes = [8, 60], strides = [1, 1]} : vector<8x64xf32> to vector<8x60xf32>
    %712 = vector.extract_strided_slice %707 {offsets = [0, 4], sizes = [8, 60], strides = [1, 1]} : vector<8x64xf32> to vector<8x60xf32>
    %713 = tpu.concatenate %708, %709, %710, %711, %712 in 0 : vector<8x60xf32>, vector<8x60xf32>, vector<8x60xf32>, vector<8x60xf32>, vector<8x60xf32> -> vector<40x60xf32>
    %714 = arith.truncf %713 : vector<40x60xf32> to vector<40x60xbf16>
    %cst_273 = arith.constant dense<0.000000e+00> : vector<30x60xf32>
    %715 = tpu.matmul %702, %714, %cst_273 {dimension_numbers = #tpu.dot_dimension_numbers<[1], [0], [0], [1], [0, 0, 1, 1], [], []>} : vector<30x40xbf16>, vector<40x60xbf16>, vector<30x60xf32> -> vector<30x60xf32>
    %716 = vector.broadcast %703 : vector<30x1xf32> to vector<30x60xf32>
    %717 = arith.mulf %715, %716 : vector<30x60xf32>
    %718 = vector.broadcast %704 : vector<30x1xf32> to vector<30x60xf32>
    %719 = arith.addf %717, %718 : vector<30x60xf32>
    %720 = vector.extract_strided_slice %719 {offsets = [0, 0], sizes = [30, 58], strides = [1, 1]} : vector<30x60xf32> to vector<30x58xf32>
    %721 = vector.extract_strided_slice %719 {offsets = [0, 1], sizes = [30, 58], strides = [1, 1]} : vector<30x60xf32> to vector<30x58xf32>
    %722 = vector.extract_strided_slice %719 {offsets = [0, 2], sizes = [30, 58], strides = [1, 1]} : vector<30x60xf32> to vector<30x58xf32>
    %723 = arith.maximumf %721, %722 : vector<30x58xf32>
    %724 = arith.maximumf %720, %723 : vector<30x58xf32>
    %cst_274 = arith.constant dense<0.000000e+00> : vector<30x20xf32>
    %725 = tpu.matmul %724, %705, %cst_274 {dimension_numbers = #tpu.dot_dimension_numbers<[1], [0], [0], [1], [0, 0, 1, 1], [], []>} : vector<30x58xf32>, vector<58x20xf32>, vector<30x20xf32> -> vector<30x20xf32>
    %726 = vector.extract_strided_slice %725 {offsets = [0, 0], sizes = [1, 20], strides = [1, 1]} : vector<30x20xf32> to vector<1x20xf32>
    %c0_275 = arith.constant 0 : index
    %c0_276 = arith.constant 0 : index
    %727 = vector.load %arg16[%c0_275, %c0_276] : memref<2x600xf32, #tpu.memory_space<vmem>>, vector<1x20xf32>
    tpu.vector_store %arg16[%c0_275, %c0_276], %726 {strides = array<i32>} : memref<2x600xf32, #tpu.memory_space<vmem>>, vector<1x20xf32>,
    %728 = vector.extract_strided_slice %725 {offsets = [1, 0], sizes = [1, 20], strides = [1, 1]} : vector<30x20xf32> to vector<1x20xf32>
    %c0_277 = arith.constant 0 : index
    %c20 = arith.constant 20 : index
    %729 = vector.load %arg16[%c0_277, %c20] : memref<2x600xf32, #tpu.memory_space<vmem>>, vector<1x20xf32>
    tpu.vector_store %arg16[%c0_277, %c20], %728 {strides = array<i32>} : memref<2x600xf32, #tpu.memory_space<vmem>>, vector<1x20xf32>,
    %730 = vector.extract_strided_slice %725 {offsets = [2, 0], sizes = [1, 20], strides = [1, 1]} : vector<30x20xf32> to vector<1x20xf32>
    %c0_278 = arith.constant 0 : index
    %c40 = arith.constant 40 : index
    %731 = vector.load %arg16[%c0_278, %c40] : memref<2x600xf32, #tpu.memory_space<vmem>>, vector<1x20xf32>
    tpu.vector_store %arg16[%c0_278, %c40], %730 {strides = array<i32>} : memref<2x600xf32, #tpu.memory_space<vmem>>, vector<1x20xf32>,
    %732 = vector.extract_strided_slice %725 {offsets = [3, 0], sizes = [1, 20], strides = [1, 1]} : vector<30x20xf32> to vector<1x20xf32>
    %c0_279 = arith.constant 0 : index
    %c60 = arith.constant 60 : index
    %733 = vector.load %arg16[%c0_279, %c60] : memref<2x600xf32, #tpu.memory_space<vmem>>, vector<1x20xf32>
    tpu.vector_store %arg16[%c0_279, %c60], %732 {strides = array<i32>} : memref<2x600xf32, #tpu.memory_space<vmem>>, vector<1x20xf32>,
    %734 = vector.extract_strided_slice %725 {offsets = [4, 0], sizes = [1, 20], strides = [1, 1]} : vector<30x20xf32> to vector<1x20xf32>
    %c0_280 = arith.constant 0 : index
    %c80 = arith.constant 80 : index
    %735 = vector.load %arg16[%c0_280, %c80] : memref<2x600xf32, #tpu.memory_space<vmem>>, vector<1x20xf32>
    tpu.vector_store %arg16[%c0_280, %c80], %734 {strides = array<i32>} : memref<2x600xf32, #tpu.memory_space<vmem>>, vector<1x20xf32>,
    %736 = vector.extract_strided_slice %725 {offsets = [5, 0], sizes = [1, 20], strides = [1, 1]} : vector<30x20xf32> to vector<1x20xf32>
    %c0_281 = arith.constant 0 : index
    %c100 = arith.constant 100 : index
    %737 = vector.load %arg16[%c0_281, %c100] : memref<2x600xf32, #tpu.memory_space<vmem>>, vector<1x20xf32>
    tpu.vector_store %arg16[%c0_281, %c100], %736 {strides = array<i32>} : memref<2x600xf32, #tpu.memory_space<vmem>>, vector<1x20xf32>,
    %738 = vector.extract_strided_slice %725 {offsets = [6, 0], sizes = [1, 20], strides = [1, 1]} : vector<30x20xf32> to vector<1x20xf32>
    %c0_282 = arith.constant 0 : index
    %c120 = arith.constant 120 : index
    %739 = vector.load %arg16[%c0_282, %c120] : memref<2x600xf32, #tpu.memory_space<vmem>>, vector<1x20xf32>
    tpu.vector_store %arg16[%c0_282, %c120], %738 {strides = array<i32>} : memref<2x600xf32, #tpu.memory_space<vmem>>, vector<1x20xf32>,
    %740 = vector.extract_strided_slice %725 {offsets = [7, 0], sizes = [1, 20], strides = [1, 1]} : vector<30x20xf32> to vector<1x20xf32>
    %c0_283 = arith.constant 0 : index
    %c140 = arith.constant 140 : index
    %741 = vector.load %arg16[%c0_283, %c140] : memref<2x600xf32, #tpu.memory_space<vmem>>, vector<1x20xf32>
    tpu.vector_store %arg16[%c0_283, %c140], %740 {strides = array<i32>} : memref<2x600xf32, #tpu.memory_space<vmem>>, vector<1x20xf32>,
    %742 = vector.extract_strided_slice %725 {offsets = [8, 0], sizes = [1, 20], strides = [1, 1]} : vector<30x20xf32> to vector<1x20xf32>
    %c0_284 = arith.constant 0 : index
    %c160 = arith.constant 160 : index
    %743 = vector.load %arg16[%c0_284, %c160] : memref<2x600xf32, #tpu.memory_space<vmem>>, vector<1x20xf32>
    tpu.vector_store %arg16[%c0_284, %c160], %742 {strides = array<i32>} : memref<2x600xf32, #tpu.memory_space<vmem>>, vector<1x20xf32>,
    %744 = vector.extract_strided_slice %725 {offsets = [9, 0], sizes = [1, 20], strides = [1, 1]} : vector<30x20xf32> to vector<1x20xf32>
    %c0_285 = arith.constant 0 : index
    %c180 = arith.constant 180 : index
    %745 = vector.load %arg16[%c0_285, %c180] : memref<2x600xf32, #tpu.memory_space<vmem>>, vector<1x20xf32>
    tpu.vector_store %arg16[%c0_285, %c180], %744 {strides = array<i32>} : memref<2x600xf32, #tpu.memory_space<vmem>>, vector<1x20xf32>,
    %746 = vector.extract_strided_slice %725 {offsets = [10, 0], sizes = [1, 20], strides = [1, 1]} : vector<30x20xf32> to vector<1x20xf32>
    %c0_286 = arith.constant 0 : index
    %c200 = arith.constant 200 : index
    %747 = vector.load %arg16[%c0_286, %c200] : memref<2x600xf32, #tpu.memory_space<vmem>>, vector<1x20xf32>
    tpu.vector_store %arg16[%c0_286, %c200], %746 {strides = array<i32>} : memref<2x600xf32, #tpu.memory_space<vmem>>, vector<1x20xf32>,
    %748 = vector.extract_strided_slice %725 {offsets = [11, 0], sizes = [1, 20], strides = [1, 1]} : vector<30x20xf32> to vector<1x20xf32>
    %c0_287 = arith.constant 0 : index
    %c220 = arith.constant 220 : index
    %749 = vector.load %arg16[%c0_287, %c220] : memref<2x600xf32, #tpu.memory_space<vmem>>, vector<1x20xf32>
    tpu.vector_store %arg16[%c0_287, %c220], %748 {strides = array<i32>} : memref<2x600xf32, #tpu.memory_space<vmem>>, vector<1x20xf32>,
    %750 = vector.extract_strided_slice %725 {offsets = [12, 0], sizes = [1, 20], strides = [1, 1]} : vector<30x20xf32> to vector<1x20xf32>
    %c0_288 = arith.constant 0 : index
    %c240 = arith.constant 240 : index
    %751 = vector.load %arg16[%c0_288, %c240] : memref<2x600xf32, #tpu.memory_space<vmem>>, vector<1x20xf32>
    tpu.vector_store %arg16[%c0_288, %c240], %750 {strides = array<i32>} : memref<2x600xf32, #tpu.memory_space<vmem>>, vector<1x20xf32>,
    %752 = vector.extract_strided_slice %725 {offsets = [13, 0], sizes = [1, 20], strides = [1, 1]} : vector<30x20xf32> to vector<1x20xf32>
    %c0_289 = arith.constant 0 : index
    %c260 = arith.constant 260 : index
    %753 = vector.load %arg16[%c0_289, %c260] : memref<2x600xf32, #tpu.memory_space<vmem>>, vector<1x20xf32>
    tpu.vector_store %arg16[%c0_289, %c260], %752 {strides = array<i32>} : memref<2x600xf32, #tpu.memory_space<vmem>>, vector<1x20xf32>,
    %754 = vector.extract_strided_slice %725 {offsets = [14, 0], sizes = [1, 20], strides = [1, 1]} : vector<30x20xf32> to vector<1x20xf32>
    %c0_290 = arith.constant 0 : index
    %c280 = arith.constant 280 : index
    %755 = vector.load %arg16[%c0_290, %c280] : memref<2x600xf32, #tpu.memory_space<vmem>>, vector<1x20xf32>
    tpu.vector_store %arg16[%c0_290, %c280], %754 {strides = array<i32>} : memref<2x600xf32, #tpu.memory_space<vmem>>, vector<1x20xf32>,
    %756 = vector.extract_strided_slice %725 {offsets = [15, 0], sizes = [1, 20], strides = [1, 1]} : vector<30x20xf32> to vector<1x20xf32>
    %c0_291 = arith.constant 0 : index
    %c300 = arith.constant 300 : index
    %757 = vector.load %arg16[%c0_291, %c300] : memref<2x600xf32, #tpu.memory_space<vmem>>, vector<1x20xf32>
    tpu.vector_store %arg16[%c0_291, %c300], %756 {strides = array<i32>} : memref<2x600xf32, #tpu.memory_space<vmem>>, vector<1x20xf32>,
    %758 = vector.extract_strided_slice %725 {offsets = [16, 0], sizes = [1, 20], strides = [1, 1]} : vector<30x20xf32> to vector<1x20xf32>
    %c0_292 = arith.constant 0 : index
    %c320 = arith.constant 320 : index
    %759 = vector.load %arg16[%c0_292, %c320] : memref<2x600xf32, #tpu.memory_space<vmem>>, vector<1x20xf32>
    tpu.vector_store %arg16[%c0_292, %c320], %758 {strides = array<i32>} : memref<2x600xf32, #tpu.memory_space<vmem>>, vector<1x20xf32>,
    %760 = vector.extract_strided_slice %725 {offsets = [17, 0], sizes = [1, 20], strides = [1, 1]} : vector<30x20xf32> to vector<1x20xf32>
    %c0_293 = arith.constant 0 : index
    %c340 = arith.constant 340 : index
    %761 = vector.load %arg16[%c0_293, %c340] : memref<2x600xf32, #tpu.memory_space<vmem>>, vector<1x20xf32>
    tpu.vector_store %arg16[%c0_293, %c340], %760 {strides = array<i32>} : memref<2x600xf32, #tpu.memory_space<vmem>>, vector<1x20xf32>,
    %762 = vector.extract_strided_slice %725 {offsets = [18, 0], sizes = [1, 20], strides = [1, 1]} : vector<30x20xf32> to vector<1x20xf32>
    %c0_294 = arith.constant 0 : index
    %c360 = arith.constant 360 : index
    %763 = vector.load %arg16[%c0_294, %c360] : memref<2x600xf32, #tpu.memory_space<vmem>>, vector<1x20xf32>
    tpu.vector_store %arg16[%c0_294, %c360], %762 {strides = array<i32>} : memref<2x600xf32, #tpu.memory_space<vmem>>, vector<1x20xf32>,
    %764 = vector.extract_strided_slice %725 {offsets = [19, 0], sizes = [1, 20], strides = [1, 1]} : vector<30x20xf32> to vector<1x20xf32>
    %c0_295 = arith.constant 0 : index
    %c380 = arith.constant 380 : index
    %765 = vector.load %arg16[%c0_295, %c380] : memref<2x600xf32, #tpu.memory_space<vmem>>, vector<1x20xf32>
    tpu.vector_store %arg16[%c0_295, %c380], %764 {strides = array<i32>} : memref<2x600xf32, #tpu.memory_space<vmem>>, vector<1x20xf32>,
    %766 = vector.extract_strided_slice %725 {offsets = [20, 0], sizes = [1, 20], strides = [1, 1]} : vector<30x20xf32> to vector<1x20xf32>
    %c0_296 = arith.constant 0 : index
    %c400 = arith.constant 400 : index
    %767 = vector.load %arg16[%c0_296, %c400] : memref<2x600xf32, #tpu.memory_space<vmem>>, vector<1x20xf32>
    tpu.vector_store %arg16[%c0_296, %c400], %766 {strides = array<i32>} : memref<2x600xf32, #tpu.memory_space<vmem>>, vector<1x20xf32>,
    %768 = vector.extract_strided_slice %725 {offsets = [21, 0], sizes = [1, 20], strides = [1, 1]} : vector<30x20xf32> to vector<1x20xf32>
    %c0_297 = arith.constant 0 : index
    %c420 = arith.constant 420 : index
    %769 = vector.load %arg16[%c0_297, %c420] : memref<2x600xf32, #tpu.memory_space<vmem>>, vector<1x20xf32>
    tpu.vector_store %arg16[%c0_297, %c420], %768 {strides = array<i32>} : memref<2x600xf32, #tpu.memory_space<vmem>>, vector<1x20xf32>,
    %770 = vector.extract_strided_slice %725 {offsets = [22, 0], sizes = [1, 20], strides = [1, 1]} : vector<30x20xf32> to vector<1x20xf32>
    %c0_298 = arith.constant 0 : index
    %c440 = arith.constant 440 : index
    %771 = vector.load %arg16[%c0_298, %c440] : memref<2x600xf32, #tpu.memory_space<vmem>>, vector<1x20xf32>
    tpu.vector_store %arg16[%c0_298, %c440], %770 {strides = array<i32>} : memref<2x600xf32, #tpu.memory_space<vmem>>, vector<1x20xf32>,
    %772 = vector.extract_strided_slice %725 {offsets = [23, 0], sizes = [1, 20], strides = [1, 1]} : vector<30x20xf32> to vector<1x20xf32>
    %c0_299 = arith.constant 0 : index
    %c460 = arith.constant 460 : index
    %773 = vector.load %arg16[%c0_299, %c460] : memref<2x600xf32, #tpu.memory_space<vmem>>, vector<1x20xf32>
    tpu.vector_store %arg16[%c0_299, %c460], %772 {strides = array<i32>} : memref<2x600xf32, #tpu.memory_space<vmem>>, vector<1x20xf32>,
    %774 = vector.extract_strided_slice %725 {offsets = [24, 0], sizes = [1, 20], strides = [1, 1]} : vector<30x20xf32> to vector<1x20xf32>
    %c0_300 = arith.constant 0 : index
    %c480 = arith.constant 480 : index
    %775 = vector.load %arg16[%c0_300, %c480] : memref<2x600xf32, #tpu.memory_space<vmem>>, vector<1x20xf32>
    tpu.vector_store %arg16[%c0_300, %c480], %774 {strides = array<i32>} : memref<2x600xf32, #tpu.memory_space<vmem>>, vector<1x20xf32>,
    %776 = vector.extract_strided_slice %725 {offsets = [25, 0], sizes = [1, 20], strides = [1, 1]} : vector<30x20xf32> to vector<1x20xf32>
    %c0_301 = arith.constant 0 : index
    %c500 = arith.constant 500 : index
    %777 = vector.load %arg16[%c0_301, %c500] : memref<2x600xf32, #tpu.memory_space<vmem>>, vector<1x20xf32>
    tpu.vector_store %arg16[%c0_301, %c500], %776 {strides = array<i32>} : memref<2x600xf32, #tpu.memory_space<vmem>>, vector<1x20xf32>,
    %778 = vector.extract_strided_slice %725 {offsets = [26, 0], sizes = [1, 20], strides = [1, 1]} : vector<30x20xf32> to vector<1x20xf32>
    %c0_302 = arith.constant 0 : index
    %c520 = arith.constant 520 : index
    %779 = vector.load %arg16[%c0_302, %c520] : memref<2x600xf32, #tpu.memory_space<vmem>>, vector<1x20xf32>
    tpu.vector_store %arg16[%c0_302, %c520], %778 {strides = array<i32>} : memref<2x600xf32, #tpu.memory_space<vmem>>, vector<1x20xf32>,
    %780 = vector.extract_strided_slice %725 {offsets = [27, 0], sizes = [1, 20], strides = [1, 1]} : vector<30x20xf32> to vector<1x20xf32>
    %c0_303 = arith.constant 0 : index
    %c540 = arith.constant 540 : index
    %781 = vector.load %arg16[%c0_303, %c540] : memref<2x600xf32, #tpu.memory_space<vmem>>, vector<1x20xf32>
    tpu.vector_store %arg16[%c0_303, %c540], %780 {strides = array<i32>} : memref<2x600xf32, #tpu.memory_space<vmem>>, vector<1x20xf32>,
    %782 = vector.extract_strided_slice %725 {offsets = [28, 0], sizes = [1, 20], strides = [1, 1]} : vector<30x20xf32> to vector<1x20xf32>
    %c0_304 = arith.constant 0 : index
    %c560 = arith.constant 560 : index
    %783 = vector.load %arg16[%c0_304, %c560] : memref<2x600xf32, #tpu.memory_space<vmem>>, vector<1x20xf32>
    tpu.vector_store %arg16[%c0_304, %c560], %782 {strides = array<i32>} : memref<2x600xf32, #tpu.memory_space<vmem>>, vector<1x20xf32>,
    %784 = vector.extract_strided_slice %725 {offsets = [29, 0], sizes = [1, 20], strides = [1, 1]} : vector<30x20xf32> to vector<1x20xf32>
    %c0_305 = arith.constant 0 : index
    %c580 = arith.constant 580 : index
    %785 = vector.load %arg16[%c0_305, %c580] : memref<2x600xf32, #tpu.memory_space<vmem>>, vector<1x20xf32>
    tpu.vector_store %arg16[%c0_305, %c580], %784 {strides = array<i32>} : memref<2x600xf32, #tpu.memory_space<vmem>>, vector<1x20xf32>,
    %c1_306 = arith.constant 1 : index
    %c0_307 = arith.constant 0 : index
    %c0_308 = arith.constant 0 : index
    %786 = vector.load %arg15[%c1_306, %c0_307, %c0_308] : memref<2x8x64xf32, #tpu.memory_space<vmem>>, vector<1x8x64xf32>
    %787 = vector.shape_cast %786 : vector<1x8x64xf32> to vector<8x64xf32>
    %788 = vector.extract_strided_slice %787 {offsets = [0, 0], sizes = [8, 60], strides = [1, 1]} : vector<8x64xf32> to vector<8x60xf32>
    %789 = vector.extract_strided_slice %787 {offsets = [0, 1], sizes = [8, 60], strides = [1, 1]} : vector<8x64xf32> to vector<8x60xf32>
    %790 = vector.extract_strided_slice %787 {offsets = [0, 2], sizes = [8, 60], strides = [1, 1]} : vector<8x64xf32> to vector<8x60xf32>
    %791 = vector.extract_strided_slice %787 {offsets = [0, 3], sizes = [8, 60], strides = [1, 1]} : vector<8x64xf32> to vector<8x60xf32>
    %792 = vector.extract_strided_slice %787 {offsets = [0, 4], sizes = [8, 60], strides = [1, 1]} : vector<8x64xf32> to vector<8x60xf32>
    %793 = tpu.concatenate %788, %789, %790, %791, %792 in 0 : vector<8x60xf32>, vector<8x60xf32>, vector<8x60xf32>, vector<8x60xf32>, vector<8x60xf32> -> vector<40x60xf32>
    %794 = arith.truncf %793 : vector<40x60xf32> to vector<40x60xbf16>
    %cst_309 = arith.constant dense<0.000000e+00> : vector<30x60xf32>
    %795 = tpu.matmul %702, %794, %cst_309 {dimension_numbers = #tpu.dot_dimension_numbers<[1], [0], [0], [1], [0, 0, 1, 1], [], []>} : vector<30x40xbf16>, vector<40x60xbf16>, vector<30x60xf32> -> vector<30x60xf32>
    %796 = vector.broadcast %703 : vector<30x1xf32> to vector<30x60xf32>
    %797 = arith.mulf %795, %796 : vector<30x60xf32>
    %798 = vector.broadcast %704 : vector<30x1xf32> to vector<30x60xf32>
    %799 = arith.addf %797, %798 : vector<30x60xf32>
    %800 = vector.extract_strided_slice %799 {offsets = [0, 0], sizes = [30, 58], strides = [1, 1]} : vector<30x60xf32> to vector<30x58xf32>
    %801 = vector.extract_strided_slice %799 {offsets = [0, 1], sizes = [30, 58], strides = [1, 1]} : vector<30x60xf32> to vector<30x58xf32>
    %802 = vector.extract_strided_slice %799 {offsets = [0, 2], sizes = [30, 58], strides = [1, 1]} : vector<30x60xf32> to vector<30x58xf32>
    %803 = arith.maximumf %801, %802 : vector<30x58xf32>
    %804 = arith.maximumf %800, %803 : vector<30x58xf32>
    %cst_310 = arith.constant dense<0.000000e+00> : vector<30x20xf32>
    %805 = tpu.matmul %804, %705, %cst_310 {dimension_numbers = #tpu.dot_dimension_numbers<[1], [0], [0], [1], [0, 0, 1, 1], [], []>} : vector<30x58xf32>, vector<58x20xf32>, vector<30x20xf32> -> vector<30x20xf32>
    %806 = vector.extract_strided_slice %805 {offsets = [0, 0], sizes = [1, 20], strides = [1, 1]} : vector<30x20xf32> to vector<1x20xf32>
    %c1_311 = arith.constant 1 : index
    %c0_312 = arith.constant 0 : index
    %807 = vector.load %arg16[%c1_311, %c0_312] : memref<2x600xf32, #tpu.memory_space<vmem>>, vector<1x20xf32>
    tpu.vector_store %arg16[%c1_311, %c0_312], %806 {strides = array<i32>} : memref<2x600xf32, #tpu.memory_space<vmem>>, vector<1x20xf32>,
    %808 = vector.extract_strided_slice %805 {offsets = [1, 0], sizes = [1, 20], strides = [1, 1]} : vector<30x20xf32> to vector<1x20xf32>
    %c1_313 = arith.constant 1 : index
    %c20_314 = arith.constant 20 : index
    %809 = vector.load %arg16[%c1_313, %c20_314] : memref<2x600xf32, #tpu.memory_space<vmem>>, vector<1x20xf32>
    tpu.vector_store %arg16[%c1_313, %c20_314], %808 {strides = array<i32>} : memref<2x600xf32, #tpu.memory_space<vmem>>, vector<1x20xf32>,
    %810 = vector.extract_strided_slice %805 {offsets = [2, 0], sizes = [1, 20], strides = [1, 1]} : vector<30x20xf32> to vector<1x20xf32>
    %c1_315 = arith.constant 1 : index
    %c40_316 = arith.constant 40 : index
    %811 = vector.load %arg16[%c1_315, %c40_316] : memref<2x600xf32, #tpu.memory_space<vmem>>, vector<1x20xf32>
    tpu.vector_store %arg16[%c1_315, %c40_316], %810 {strides = array<i32>} : memref<2x600xf32, #tpu.memory_space<vmem>>, vector<1x20xf32>,
    %812 = vector.extract_strided_slice %805 {offsets = [3, 0], sizes = [1, 20], strides = [1, 1]} : vector<30x20xf32> to vector<1x20xf32>
    %c1_317 = arith.constant 1 : index
    %c60_318 = arith.constant 60 : index
    %813 = vector.load %arg16[%c1_317, %c60_318] : memref<2x600xf32, #tpu.memory_space<vmem>>, vector<1x20xf32>
    tpu.vector_store %arg16[%c1_317, %c60_318], %812 {strides = array<i32>} : memref<2x600xf32, #tpu.memory_space<vmem>>, vector<1x20xf32>,
    %814 = vector.extract_strided_slice %805 {offsets = [4, 0], sizes = [1, 20], strides = [1, 1]} : vector<30x20xf32> to vector<1x20xf32>
    %c1_319 = arith.constant 1 : index
    %c80_320 = arith.constant 80 : index
    %815 = vector.load %arg16[%c1_319, %c80_320] : memref<2x600xf32, #tpu.memory_space<vmem>>, vector<1x20xf32>
    tpu.vector_store %arg16[%c1_319, %c80_320], %814 {strides = array<i32>} : memref<2x600xf32, #tpu.memory_space<vmem>>, vector<1x20xf32>,
    %816 = vector.extract_strided_slice %805 {offsets = [5, 0], sizes = [1, 20], strides = [1, 1]} : vector<30x20xf32> to vector<1x20xf32>
    %c1_321 = arith.constant 1 : index
    %c100_322 = arith.constant 100 : index
    %817 = vector.load %arg16[%c1_321, %c100_322] : memref<2x600xf32, #tpu.memory_space<vmem>>, vector<1x20xf32>
    tpu.vector_store %arg16[%c1_321, %c100_322], %816 {strides = array<i32>} : memref<2x600xf32, #tpu.memory_space<vmem>>, vector<1x20xf32>,
    %818 = vector.extract_strided_slice %805 {offsets = [6, 0], sizes = [1, 20], strides = [1, 1]} : vector<30x20xf32> to vector<1x20xf32>
    %c1_323 = arith.constant 1 : index
    %c120_324 = arith.constant 120 : index
    %819 = vector.load %arg16[%c1_323, %c120_324] : memref<2x600xf32, #tpu.memory_space<vmem>>, vector<1x20xf32>
    tpu.vector_store %arg16[%c1_323, %c120_324], %818 {strides = array<i32>} : memref<2x600xf32, #tpu.memory_space<vmem>>, vector<1x20xf32>,
    %820 = vector.extract_strided_slice %805 {offsets = [7, 0], sizes = [1, 20], strides = [1, 1]} : vector<30x20xf32> to vector<1x20xf32>
    %c1_325 = arith.constant 1 : index
    %c140_326 = arith.constant 140 : index
    %821 = vector.load %arg16[%c1_325, %c140_326] : memref<2x600xf32, #tpu.memory_space<vmem>>, vector<1x20xf32>
    tpu.vector_store %arg16[%c1_325, %c140_326], %820 {strides = array<i32>} : memref<2x600xf32, #tpu.memory_space<vmem>>, vector<1x20xf32>,
    %822 = vector.extract_strided_slice %805 {offsets = [8, 0], sizes = [1, 20], strides = [1, 1]} : vector<30x20xf32> to vector<1x20xf32>
    %c1_327 = arith.constant 1 : index
    %c160_328 = arith.constant 160 : index
    %823 = vector.load %arg16[%c1_327, %c160_328] : memref<2x600xf32, #tpu.memory_space<vmem>>, vector<1x20xf32>
    tpu.vector_store %arg16[%c1_327, %c160_328], %822 {strides = array<i32>} : memref<2x600xf32, #tpu.memory_space<vmem>>, vector<1x20xf32>,
    %824 = vector.extract_strided_slice %805 {offsets = [9, 0], sizes = [1, 20], strides = [1, 1]} : vector<30x20xf32> to vector<1x20xf32>
    %c1_329 = arith.constant 1 : index
    %c180_330 = arith.constant 180 : index
    %825 = vector.load %arg16[%c1_329, %c180_330] : memref<2x600xf32, #tpu.memory_space<vmem>>, vector<1x20xf32>
    tpu.vector_store %arg16[%c1_329, %c180_330], %824 {strides = array<i32>} : memref<2x600xf32, #tpu.memory_space<vmem>>, vector<1x20xf32>,
    %826 = vector.extract_strided_slice %805 {offsets = [10, 0], sizes = [1, 20], strides = [1, 1]} : vector<30x20xf32> to vector<1x20xf32>
    %c1_331 = arith.constant 1 : index
    %c200_332 = arith.constant 200 : index
    %827 = vector.load %arg16[%c1_331, %c200_332] : memref<2x600xf32, #tpu.memory_space<vmem>>, vector<1x20xf32>
    tpu.vector_store %arg16[%c1_331, %c200_332], %826 {strides = array<i32>} : memref<2x600xf32, #tpu.memory_space<vmem>>, vector<1x20xf32>,
    %828 = vector.extract_strided_slice %805 {offsets = [11, 0], sizes = [1, 20], strides = [1, 1]} : vector<30x20xf32> to vector<1x20xf32>
    %c1_333 = arith.constant 1 : index
    %c220_334 = arith.constant 220 : index
    %829 = vector.load %arg16[%c1_333, %c220_334] : memref<2x600xf32, #tpu.memory_space<vmem>>, vector<1x20xf32>
    tpu.vector_store %arg16[%c1_333, %c220_334], %828 {strides = array<i32>} : memref<2x600xf32, #tpu.memory_space<vmem>>, vector<1x20xf32>,
    %830 = vector.extract_strided_slice %805 {offsets = [12, 0], sizes = [1, 20], strides = [1, 1]} : vector<30x20xf32> to vector<1x20xf32>
    %c1_335 = arith.constant 1 : index
    %c240_336 = arith.constant 240 : index
    %831 = vector.load %arg16[%c1_335, %c240_336] : memref<2x600xf32, #tpu.memory_space<vmem>>, vector<1x20xf32>
    tpu.vector_store %arg16[%c1_335, %c240_336], %830 {strides = array<i32>} : memref<2x600xf32, #tpu.memory_space<vmem>>, vector<1x20xf32>,
    %832 = vector.extract_strided_slice %805 {offsets = [13, 0], sizes = [1, 20], strides = [1, 1]} : vector<30x20xf32> to vector<1x20xf32>
    %c1_337 = arith.constant 1 : index
    %c260_338 = arith.constant 260 : index
    %833 = vector.load %arg16[%c1_337, %c260_338] : memref<2x600xf32, #tpu.memory_space<vmem>>, vector<1x20xf32>
    tpu.vector_store %arg16[%c1_337, %c260_338], %832 {strides = array<i32>} : memref<2x600xf32, #tpu.memory_space<vmem>>, vector<1x20xf32>,
    %834 = vector.extract_strided_slice %805 {offsets = [14, 0], sizes = [1, 20], strides = [1, 1]} : vector<30x20xf32> to vector<1x20xf32>
    %c1_339 = arith.constant 1 : index
    %c280_340 = arith.constant 280 : index
    %835 = vector.load %arg16[%c1_339, %c280_340] : memref<2x600xf32, #tpu.memory_space<vmem>>, vector<1x20xf32>
    tpu.vector_store %arg16[%c1_339, %c280_340], %834 {strides = array<i32>} : memref<2x600xf32, #tpu.memory_space<vmem>>, vector<1x20xf32>,
    %836 = vector.extract_strided_slice %805 {offsets = [15, 0], sizes = [1, 20], strides = [1, 1]} : vector<30x20xf32> to vector<1x20xf32>
    %c1_341 = arith.constant 1 : index
    %c300_342 = arith.constant 300 : index
    %837 = vector.load %arg16[%c1_341, %c300_342] : memref<2x600xf32, #tpu.memory_space<vmem>>, vector<1x20xf32>
    tpu.vector_store %arg16[%c1_341, %c300_342], %836 {strides = array<i32>} : memref<2x600xf32, #tpu.memory_space<vmem>>, vector<1x20xf32>,
    %838 = vector.extract_strided_slice %805 {offsets = [16, 0], sizes = [1, 20], strides = [1, 1]} : vector<30x20xf32> to vector<1x20xf32>
    %c1_343 = arith.constant 1 : index
    %c320_344 = arith.constant 320 : index
    %839 = vector.load %arg16[%c1_343, %c320_344] : memref<2x600xf32, #tpu.memory_space<vmem>>, vector<1x20xf32>
    tpu.vector_store %arg16[%c1_343, %c320_344], %838 {strides = array<i32>} : memref<2x600xf32, #tpu.memory_space<vmem>>, vector<1x20xf32>,
    %840 = vector.extract_strided_slice %805 {offsets = [17, 0], sizes = [1, 20], strides = [1, 1]} : vector<30x20xf32> to vector<1x20xf32>
    %c1_345 = arith.constant 1 : index
    %c340_346 = arith.constant 340 : index
    %841 = vector.load %arg16[%c1_345, %c340_346] : memref<2x600xf32, #tpu.memory_space<vmem>>, vector<1x20xf32>
    tpu.vector_store %arg16[%c1_345, %c340_346], %840 {strides = array<i32>} : memref<2x600xf32, #tpu.memory_space<vmem>>, vector<1x20xf32>,
    %842 = vector.extract_strided_slice %805 {offsets = [18, 0], sizes = [1, 20], strides = [1, 1]} : vector<30x20xf32> to vector<1x20xf32>
    %c1_347 = arith.constant 1 : index
    %c360_348 = arith.constant 360 : index
    %843 = vector.load %arg16[%c1_347, %c360_348] : memref<2x600xf32, #tpu.memory_space<vmem>>, vector<1x20xf32>
    tpu.vector_store %arg16[%c1_347, %c360_348], %842 {strides = array<i32>} : memref<2x600xf32, #tpu.memory_space<vmem>>, vector<1x20xf32>,
    %844 = vector.extract_strided_slice %805 {offsets = [19, 0], sizes = [1, 20], strides = [1, 1]} : vector<30x20xf32> to vector<1x20xf32>
    %c1_349 = arith.constant 1 : index
    %c380_350 = arith.constant 380 : index
    %845 = vector.load %arg16[%c1_349, %c380_350] : memref<2x600xf32, #tpu.memory_space<vmem>>, vector<1x20xf32>
    tpu.vector_store %arg16[%c1_349, %c380_350], %844 {strides = array<i32>} : memref<2x600xf32, #tpu.memory_space<vmem>>, vector<1x20xf32>,
    %846 = vector.extract_strided_slice %805 {offsets = [20, 0], sizes = [1, 20], strides = [1, 1]} : vector<30x20xf32> to vector<1x20xf32>
    %c1_351 = arith.constant 1 : index
    %c400_352 = arith.constant 400 : index
    %847 = vector.load %arg16[%c1_351, %c400_352] : memref<2x600xf32, #tpu.memory_space<vmem>>, vector<1x20xf32>
    tpu.vector_store %arg16[%c1_351, %c400_352], %846 {strides = array<i32>} : memref<2x600xf32, #tpu.memory_space<vmem>>, vector<1x20xf32>,
    %848 = vector.extract_strided_slice %805 {offsets = [21, 0], sizes = [1, 20], strides = [1, 1]} : vector<30x20xf32> to vector<1x20xf32>
    %c1_353 = arith.constant 1 : index
    %c420_354 = arith.constant 420 : index
    %849 = vector.load %arg16[%c1_353, %c420_354] : memref<2x600xf32, #tpu.memory_space<vmem>>, vector<1x20xf32>
    tpu.vector_store %arg16[%c1_353, %c420_354], %848 {strides = array<i32>} : memref<2x600xf32, #tpu.memory_space<vmem>>, vector<1x20xf32>,
    %850 = vector.extract_strided_slice %805 {offsets = [22, 0], sizes = [1, 20], strides = [1, 1]} : vector<30x20xf32> to vector<1x20xf32>
    %c1_355 = arith.constant 1 : index
    %c440_356 = arith.constant 440 : index
    %851 = vector.load %arg16[%c1_355, %c440_356] : memref<2x600xf32, #tpu.memory_space<vmem>>, vector<1x20xf32>
    tpu.vector_store %arg16[%c1_355, %c440_356], %850 {strides = array<i32>} : memref<2x600xf32, #tpu.memory_space<vmem>>, vector<1x20xf32>,
    %852 = vector.extract_strided_slice %805 {offsets = [23, 0], sizes = [1, 20], strides = [1, 1]} : vector<30x20xf32> to vector<1x20xf32>
    %c1_357 = arith.constant 1 : index
    %c460_358 = arith.constant 460 : index
    %853 = vector.load %arg16[%c1_357, %c460_358] : memref<2x600xf32, #tpu.memory_space<vmem>>, vector<1x20xf32>
    tpu.vector_store %arg16[%c1_357, %c460_358], %852 {strides = array<i32>} : memref<2x600xf32, #tpu.memory_space<vmem>>, vector<1x20xf32>,
    %854 = vector.extract_strided_slice %805 {offsets = [24, 0], sizes = [1, 20], strides = [1, 1]} : vector<30x20xf32> to vector<1x20xf32>
    %c1_359 = arith.constant 1 : index
    %c480_360 = arith.constant 480 : index
    %855 = vector.load %arg16[%c1_359, %c480_360] : memref<2x600xf32, #tpu.memory_space<vmem>>, vector<1x20xf32>
    tpu.vector_store %arg16[%c1_359, %c480_360], %854 {strides = array<i32>} : memref<2x600xf32, #tpu.memory_space<vmem>>, vector<1x20xf32>,
    %856 = vector.extract_strided_slice %805 {offsets = [25, 0], sizes = [1, 20], strides = [1, 1]} : vector<30x20xf32> to vector<1x20xf32>
    %c1_361 = arith.constant 1 : index
    %c500_362 = arith.constant 500 : index
    %857 = vector.load %arg16[%c1_361, %c500_362] : memref<2x600xf32, #tpu.memory_space<vmem>>, vector<1x20xf32>
    tpu.vector_store %arg16[%c1_361, %c500_362], %856 {strides = array<i32>} : memref<2x600xf32, #tpu.memory_space<vmem>>, vector<1x20xf32>,
    %858 = vector.extract_strided_slice %805 {offsets = [26, 0], sizes = [1, 20], strides = [1, 1]} : vector<30x20xf32> to vector<1x20xf32>
    %c1_363 = arith.constant 1 : index
    %c520_364 = arith.constant 520 : index
    %859 = vector.load %arg16[%c1_363, %c520_364] : memref<2x600xf32, #tpu.memory_space<vmem>>, vector<1x20xf32>
    tpu.vector_store %arg16[%c1_363, %c520_364], %858 {strides = array<i32>} : memref<2x600xf32, #tpu.memory_space<vmem>>, vector<1x20xf32>,
    %860 = vector.extract_strided_slice %805 {offsets = [27, 0], sizes = [1, 20], strides = [1, 1]} : vector<30x20xf32> to vector<1x20xf32>
    %c1_365 = arith.constant 1 : index
    %c540_366 = arith.constant 540 : index
    %861 = vector.load %arg16[%c1_365, %c540_366] : memref<2x600xf32, #tpu.memory_space<vmem>>, vector<1x20xf32>
    tpu.vector_store %arg16[%c1_365, %c540_366], %860 {strides = array<i32>} : memref<2x600xf32, #tpu.memory_space<vmem>>, vector<1x20xf32>,
    %862 = vector.extract_strided_slice %805 {offsets = [28, 0], sizes = [1, 20], strides = [1, 1]} : vector<30x20xf32> to vector<1x20xf32>
    %c1_367 = arith.constant 1 : index
    %c560_368 = arith.constant 560 : index
    %863 = vector.load %arg16[%c1_367, %c560_368] : memref<2x600xf32, #tpu.memory_space<vmem>>, vector<1x20xf32>
    tpu.vector_store %arg16[%c1_367, %c560_368], %862 {strides = array<i32>} : memref<2x600xf32, #tpu.memory_space<vmem>>, vector<1x20xf32>,
    %864 = vector.extract_strided_slice %805 {offsets = [29, 0], sizes = [1, 20], strides = [1, 1]} : vector<30x20xf32> to vector<1x20xf32>
    %c1_369 = arith.constant 1 : index
    %c580_370 = arith.constant 580 : index
    %865 = vector.load %arg16[%c1_369, %c580_370] : memref<2x600xf32, #tpu.memory_space<vmem>>, vector<1x20xf32>
    tpu.vector_store %arg16[%c1_369, %c580_370], %864 {strides = array<i32>} : memref<2x600xf32, #tpu.memory_space<vmem>>, vector<1x20xf32>,
    %c0_371 = arith.constant 0 : index
    %c0_372 = arith.constant 0 : index
    %866 = vector.load %arg16[%c0_371, %c0_372] : memref<2x600xf32, #tpu.memory_space<vmem>>, vector<2x600xf32>
    %867 = arith.truncf %866 : vector<2x600xf32> to vector<2x600xbf16>
    %c0_373 = arith.constant 0 : index
    %c0_374 = arith.constant 0 : index
    %868 = vector.load %arg10[%c0_373, %c0_374] : memref<600x64xbf16, #tpu.memory_space<vmem>>, vector<600x64xbf16>
    %cst_375 = arith.constant dense<0.000000e+00> : vector<2x64xf32>
    %869 = tpu.matmul %867, %868, %cst_375 {dimension_numbers = #tpu.dot_dimension_numbers<[1], [0], [0], [1], [0, 0, 1, 1], [], []>} : vector<2x600xbf16>, vector<600x64xbf16>, vector<2x64xf32> -> vector<2x64xf32>
    %c0_376 = arith.constant 0 : index
    %c0_377 = arith.constant 0 : index
    %870 = vector.load %arg11[%c0_376, %c0_377] : memref<1x64xf32, #tpu.memory_space<vmem>>, vector<1x64xf32>
    %871 = vector.broadcast %870 : vector<1x64xf32> to vector<2x64xf32>
    %872 = arith.addf %869, %871 : vector<2x64xf32>
    %cst_378 = arith.constant 0.000000e+00 : f32
    %873 = vector.broadcast %cst_378 : f32 to vector<2x64xf32>
    %874 = arith.maximumf %872, %873 : vector<2x64xf32>
    %875 = arith.truncf %874 : vector<2x64xf32> to vector<2x64xbf16>
    %c0_379 = arith.constant 0 : index
    %c0_380 = arith.constant 0 : index
    %876 = vector.load %arg12[%c0_379, %c0_380] : memref<64x5xbf16, #tpu.memory_space<vmem>>, vector<64x5xbf16>
    %cst_381 = arith.constant dense<0.000000e+00> : vector<2x5xf32>
    %877 = tpu.matmul %875, %876, %cst_381 {dimension_numbers = #tpu.dot_dimension_numbers<[1], [0], [0], [1], [0, 0, 1, 1], [], []>} : vector<2x64xbf16>, vector<64x5xbf16>, vector<2x5xf32> -> vector<2x5xf32>
    %c0_382 = arith.constant 0 : index
    %c0_383 = arith.constant 0 : index
    %878 = vector.load %arg13[%c0_382, %c0_383] : memref<1x5xf32, #tpu.memory_space<vmem>>, vector<1x5xf32>
    %879 = vector.broadcast %878 : vector<1x5xf32> to vector<2x5xf32>
    %880 = arith.addf %877, %879 : vector<2x5xf32>
    %cst_384 = arith.constant dense<0xFF800000> : vector<2xf32>
    %881 = vector.multi_reduction <maximumf>, %880, %cst_384 [1] : vector<2x5xf32> to vector<2xf32>
    %882 = vector.shape_cast %881 : vector<2xf32> to vector<2x1xf32>
    %883 = vector.broadcast %882 : vector<2x1xf32> to vector<2x5xf32>
    %884 = arith.subf %880, %883 : vector<2x5xf32>
    %885 = math.exp %884 : vector<2x5xf32>
    %cst_385 = arith.constant dense<0.000000e+00> : vector<2xf32>
    %886 = vector.multi_reduction <add>, %885, %cst_385 [1] : vector<2x5xf32> to vector<2xf32>
    %887 = vector.shape_cast %886 : vector<2xf32> to vector<2x1xf32>
    %888 = vector.broadcast %887 : vector<2x1xf32> to vector<2x5xf32>
    %889 = arith.divf %885, %888 : vector<2x5xf32>
    %c0_386 = arith.constant 0 : index
    %c0_387 = arith.constant 0 : index
    %890 = vector.load %arg14[%c0_386, %c0_387] : memref<2x5xf32, #tpu.memory_space<vmem>>, vector<2x5xf32>
    tpu.vector_store %arg14[%c0_386, %c0_387], %889 {strides = array<i32>} : memref<2x5xf32, #tpu.memory_space<vmem>>, vector<2x5xf32>,
    return
  }
}

</mosaic_0001>

<bundles_post_ra>
// kernel: cnnrnn_forward.1
= control target key start
LH: loop header
LB: loop body
LE: loop exit
PB: predicated region body
PF: predicated region fallthrough
CT: control target
= control target key end

     0   :  { %v3812_v1 = vmov 0   ;;  %v3813_v2 = vmov 0.0   ;;  %vm96_vm0 = vcmask 1040384   ;;  %vm4883_vm1 = vmmov 0   ;;  %s4868_s0 = inlined_call_operand.vmem [shape: s32[16,1], index: 0, kind: input, shape index: {}]   ;;  %s4869_s1 = inlined_call_operand.vmem [shape: bf16[50,16], index: 1, kind: input, shape index: {}]   ;;  %s4870_s2 = inlined_call_operand.vmem [shape: bf16[16,256], index: 2, kind: input, shape index: {}]   ;;  %s4871_s3 = inlined_call_operand.vmem [shape: f32[1,256], index: 3, kind: input, shape index: {}]   ;;  %s4872_s4 = inlined_call_operand.vmem [shape: bf16[32,128], index: 4, kind: input, shape index: {}]   ;;  %s4873_s5 = inlined_call_operand.vmem [shape: bf16[32,128], index: 5, kind: input, shape index: {}]   ;;  %s4874_s6 = inlined_call_operand.vmem [shape: bf16[30,40], index: 6, kind: input, shape index: {}]   ;;  %s4875_s7 = inlined_call_operand.vmem [shape: f32[30,1], index: 7, kind: input, shape index: {}]   ;;  %s4876_s8 = inlined_call_operand.vmem [shape: f32[30,1], index: 8, kind: input, shape index: {}]   ;;  %s4877_s9 = inlined_call_operand.vmem [shape: f32[58,20], index: 9, kind: input, shape index: {}]   ;;  %s4878_s10 = inlined_call_operand.vmem [shape: bf16[600,64], index: 10, kind: input, shape index: {}]   ;;  %s4879_s11 = inlined_call_operand.vmem [shape: f32[1,64], index: 11, kind: input, shape index: {}]   ;;  %s4880_s12 = inlined_call_operand.vmem [shape: bf16[64,5], index: 12, kind: input, shape index: {}]   ;;  %s4881_s13 = inlined_call_operand.vmem [shape: f32[1,5], index: 13, kind: input, shape index: {}]   ;;  %s4882_s14 = inlined_call_operand.hbm [shape: f32[2,5], index: 14, kind: output, shape index: {}]  }
   0x1   :  { %v49_v0 = vld [vmem:[%s4868_s0] sm:$0xff]  ;;  %3601 = vset.pattern.permute.xlu0 %v3812_v1  ;;  %3346 = vmatprep.subr.bf16.mxu0 %v3813_v2  ;;  %v3603_v3 = vld [vmem:[%s4869_s1 + $0x18] ss:$0 sps:$4 sm:$0x11]   ;;  %v50_v4 = vld [vmem:[%s4868_s0 + $0x8] sm:$0xff] }
   0x2   :  { %54 = vperm.xlu0 %3601, %v49_v0   ;;  %202 = vmatprep.mubr.bf16.mxu1 %v3812_v1  ;;  %v98_v5 = vsel %vm96_vm0, %v3603_v3, 0  ;;  %v3604_v6 = vld [vmem:[%s4869_s1 + $0x10] sm:$0xff]   ;;  %v3605_v7 = vld [vmem:[%s4869_s1 + $0x8] sm:$0xff]   ;;  %v3606_v8 = vld [vmem:[%s4869_s1] sm:$0xff]  }
   0x3   :  { %3602 = vset.pattern.permute.xlu1 %v3812_v1  ;;  %3347 = vmatpush3.bf16.msra.mxu0 %v98_v5 }
   0x4   :  { %3348 = vmatprep.subr.bf16.mxu0 %v3813_v2  ;;  %3354 = vmatprep.mubr.msk.bf16.mxu0 %vm4883_vm1, %v3813_v2 }
   0x6   :  { %57 = vperm.xlu0 %3601, %v50_v4  }
   0x7   :  { %3349 = vmatpush3.bf16.msra.mxu0 %v3604_v6 }
   0x8   :  { %3350 = vmatprep.subr.bf16.mxu0 %v3813_v2 }
   0xb   :  { %3351 = vmatpush3.bf16.msra.mxu0 %v3605_v7 }
   0xc   :  { %3352 = vmatprep.subr.bf16.mxu0 %v3813_v2 }
   0xf   :  { %3353 = vmatpush3.bf16.msra.mxu0 %v3606_v8 }
  0x10   :  { %3374 = vmatprep.subr.bf16.mxu0 %v3813_v2 }
  0x11   :  { %19 = vsyncpa [#allocation5], 0  ;;  %v51_v9 = vlaneseq  ;;  %vm92_vm4 = vcmask 408576   ;;  %v3607_v16 = vld [vmem:[%s4870_s2 + $0x4] ss:$8 sps:$4 sm:$0xff]   ;;  %vm166_vm5 = vcmask 130048  }
  0x12   :  { %v3609_v17 = vld [vmem:[%s4870_s2] ss:$8 sps:$4 sm:$0xff]   ;;  %184 = vmatprep.subr.bf16.mxu1 %v3607_v16  ;;  %s3816_s28 = smov 32   ;;  %vm302_vm6 = vcmask 261120   ;;  %vm273_vm7 = vcmask 253952   ;;  %vm282_vm8 = vcmask 254977  }
  0x13   :  { %v52_v10 = vand.u32 127, %v51_v9  ;;  %185 = vmatpush1.bf16.msra.mxu1 %v3609_v17  ;;  %v3962_v23 = vshrl.u32 %v51_v9, 7  ;;  %v144_v25 = vld [vmem:[%s4871_s3] sm:$0x3]  ;;  %s3815_s3 = smov 64   ;;  %v3994_v60 = vld [vmem:[%s4872_s4 + $0x8] sm:$0xff]  }
  0x14   :  { %3358 = vmatprep.subr.bf16.mxu1 %v3813_v2  ;;  %v4001_v61 = vld [vmem:[%s4872_s4] sm:$0xff]   ;;  %v4024_v7 = vld [vmem:[%s4873_s5 + $0x8] sm:$0xff]   ;;  %vm472_vm9 = vcmask 256002   ;;  %vm480_vm10 = vcmask 257027   ;;  %vm279_vm11 = vcmask 522502   ;;  %vm284_vm12 = vcmask 523527  }
  0x15   :  { %v148_v24 = vsub.s32 0, %v3962_v23  ;;  %v152_v26 = vsub.s32 1, %v3962_v23  ;;  %v4031_v9 = vld [vmem:[%s4873_s5] sm:$0xff]   ;;  %vm646_vm13 = vcmask 258052   ;;  %vm654_vm14 = vcmask 259077   ;;  %s3817_s21 = smov 126  }
  0x16   :  { %vm478_vm15 = vcmask 520452   ;;  %vm482_vm0 = vcmask 521477   ;;  %s3818_s22 = smov 124   ;;  %s3819_s0 = smov 127  }
  0x17   :  { %v149_v27 = vrot.slane %v144_v25, %v148_v24  ;;  %v153_v28 = vrot.slane %v144_v25, %v152_v26  ;;  %s3820_s23 = smov 125   ;;  %s3824_s19 = smov 120  }
  0x18   :  { %s3825_s5 = smov 72   ;;  %s3826_s20 = smov 20  }
  0x19   :  { %s3833_s1 = smov 100   ;;  %s3834_s24 = smov 44  }
  0x1a   :  { %s3835_s25 = smov 116   ;;  %s3836_s26 = smov 12  }
  0x1b   :  { %s3837_s27 = smov 84   ;;  %s3838_s2 = smov 104  }
  0x1c   :  { %s3839_s29 = smov 16   ;;  %s3846_s30 = smov 48  }
  0x7d   :  { %v55_v11 = vpop.permute.xlu0 %54 }
  0x7e   :  { %vm59_vm2 = vcmp.eq.s32.totalorder %v52_v10, %v55_v11 }
  0x7f   :  { %v61_v13 = vsel %vm59_vm2, 1.0, %v3813_v2  ;;  %vm817_vm2 = vcmask 260102  }
  0x81   :  { %v58_v12 = vpop.permute.xlu0 %57 }
  0x82   :  { %vm60_vm3 = vcmp.eq.s32.totalorder %v52_v10, %v58_v12 }
  0x83   :  { %v62_v14 = vsel %vm60_vm3, 1.0, %v3813_v2  ;;  %vm825_vm3 = vcmask 261127  }
  0x84   :  { %v63_v15 = vpack.c.bf16 %v62_v14, %v61_v13 }
  0x86   :  { %3355 = vmatmul.mubr.msk.bf16.vlgmr.msra.gmra.mxu0 %vm92_vm4, %v63_v15  ;;  %vm652_vm4 = vcmask 518402  }
  0x87   :  { %3378 = vmatprep.mubr.msk.bf16.mxu0 %vm4883_vm1, %v3813_v2  ;;  %3375 = vmatpush3.bf16.msra.mxu0 %v3994_v60 }
  0x88   :  { %3376 = vmatprep.subr.bf16.mxu0 %v3813_v2 }
  0x8b   :  { %3377 = vmatpush3.bf16.msra.mxu0 %v4001_v61 }
  0x8c   :  { %3390 = vmatprep.subr.bf16.mxu0 %v3813_v2 }
 0x146   :  { %v134_v18 = vpop.f32.mrf.mxu0 }
 0x148   :  { %v3356_v19 = vpop.f32.mrf.mxu0 }
 0x14a   :  { %v137_v20 = vpop.f32.mrf.mxu0 }
 0x14b   :  { %v141_v21 = vpack.c.bf16 %v137_v20, %v134_v18 }
 0x14c   :  { %v3357_v22 = vpop.f32.mrf.mxu0 }
 0x14d   :  { %3097 = vmatmul.mubr.msk.bf16.vlgmr.msra.gmra.mxu1 %vm166_vm5, %v141_v21  ;;  %vm656_vm5 = vcmask 519427  }
 0x14e   :  { %3362 = vmatprep.mubr.msk.bf16.mxu1 %vm4883_vm1, %v3813_v2  ;;  %3359 = vmatpush3.bf16.msra.mxu1 %v3994_v60 }
 0x14f   :  { %3360 = vmatprep.subr.bf16.mxu1 %v3813_v2 }
 0x152   :  { %3361 = vmatpush3.bf16.msra.mxu1 %v4001_v61 }
 0x153   :  { %3366 = vmatprep.subr.bf16.mxu1 %v3813_v2 }
 0x20d   :  { %v204_v29 = vpop.f32.mrf.mxu1 }
 0x20e   :  { %v3969_v30 = vadd.f32 %v204_v29, %v149_v27 }
 0x20f   :  { %v206_v31 = vpop.f32.mrf.mxu1 }
 0x210   :  { %3658 = vtanh.f32 %v3969_v30  ;;  %v3972_v32 = vadd.f32 %v206_v31, %v153_v28  ;;  %v221_v39 = vsub.f32 0.0, %v3969_v30 }
 0x211   :  { %v208_v33 = vpop.f32.mrf.mxu1 }
 0x212   :  { %v3974_v34 = vadd.f32 %v208_v33, %v149_v27  ;;  %v222_v40 = vmul.f32 1.442695, %v221_v39 }
 0x213   :  { %v210_v35 = vpop.f32.mrf.mxu1 }
 0x214   :  { %v3976_v36 = vadd.f32 %v210_v35, %v153_v28 }
 0x216   :  { %3660 = vtanh.f32 %v3976_v36  ;;  %v245_v41 = vsub.f32 0.0, %v3976_v36 }
 0x217   :  { %3662 = vpow2.f32 %v222_v40 }
 0x218   :  { %v246_v42 = vmul.f32 1.442695, %v245_v41 }
 0x21a   :  { %3664 = vpow2.f32 %v246_v42 }
 0x21d   :  { %v3659_v37 = vpop.eup %3658 }
 0x21e   :  { %230 = vrot.lane.b32.xlu1 %v3659_v37, %s3815_s3 }
 0x223   :  { %v3661_v38 = vpop.eup %3660 }
 0x224   :  { %254 = vrot.lane.b32.xlu1 %v3661_v38, %s3815_s3  ;;  %v3663_v43 = vpop.eup %3662 }
 0x225   :  { %v224_v44 = vadd.f32 1.0, %v3663_v43 }
 0x227   :  { %v3665_v45 = vpop.eup %3664  ;;  %3666 = vrcp.f32 %v224_v44 }
 0x228   :  { %v248_v46 = vadd.f32 1.0, %v3665_v45 }
 0x22a   :  { %3668 = vrcp.f32 %v248_v46 }
 0x234   :  { %v3667_v47 = vpop.eup %3666 }
 0x235   :  { %v228_v53 = vmul.f32 0.0, %v3667_v47 }
 0x237   :  { %v3669_v50 = vpop.eup %3668 }
 0x238   :  { %v252_v56 = vmul.f32 0.0, %v3669_v50 }
 0x290   :  { %v231_v48 = vpop.permute.xlu1 %230 }
 0x291   :  { %v233_v49 = vmul.f32 %v3667_v47, %v231_v48 }
 0x293   :  { %235 = vrot.lane.b32.xlu0 %v233_v49, %s3816_s28 }
 0x296   :  { %v255_v51 = vpop.permute.xlu1 %254 }
 0x297   :  { %v257_v52 = vmul.f32 %v3669_v50, %v255_v51 }
 0x299   :  { %259 = vrot.lane.b32.xlu1 %v257_v52, %s3816_s28 }
 0x305   :  { %v236_v54 = vpop.permute.xlu0 %235 }
 0x306   :  { %v3985_v55 = vadd.f32 %v236_v54, %v228_v53 }
 0x308   :  { %3670 = vtanh.f32 %v3985_v55  ;;  %v422_v44 = vrot.slane %v3985_v55, 6 }
 0x30b   :  { %v260_v57 = vpop.permute.xlu1 %259 }
 0x30c   :  { %v3988_v58 = vadd.f32 %v260_v57, %v252_v56 }
 0x30e   :  { %3672 = vtanh.f32 %v3988_v58  ;;  %v449_v48 = vrot.slane %v3988_v58, 2 }
 0x315   :  { %v3671_v59 = vpop.eup %3670 }
 0x316   :  { %241 = vrot.lane.b32.xlu0 %v3671_v59, %s3815_s3 }
 0x31b   :  { %v3673_v62 = vpop.eup %3672 }
 0x31c   :  { %265 = vrot.lane.b32.xlu1 %v3673_v62, %s3815_s3 }
 0x388   :  { %v242_v63 = vpop.permute.xlu0 %241 }
 0x389   :  { %v4011_v0 = vmul.f32 %v3667_v47, %v242_v63 }
 0x38b   :  { %v286_v1 = vpack.c.bf16 %v4011_v0, %v4011_v0 }
 0x38d   :  { %288 = vrot.lane.b32.xlu0 %v286_v1, %s3816_s28 }
 0x38e   :  { %v266_v3 = vpop.permute.xlu1 %265 }
 0x38f   :  { %v4016_v4 = vmul.f32 %v3669_v50, %v266_v3 }
 0x391   :  { %v350_v5 = vpack.c.bf16 %v4016_v4, %v4016_v4 }
 0x393   :  { %v352_v6 = vrot.slane %v350_v5, 3 }
 0x395   :  { %353 = vrot.lane.b32.xlu1 %v352_v6, %s3816_s28 }
 0x3ff   :  { %v289_v8 = vpop.permute.xlu0 %288 }
 0x400   :  { %3363 = vmatmul.mubr.msk.bf16.vlgmr.msra.gmra.mxu1 %vm302_vm6, %v289_v8 }
 0x401   :  { %3367 = vmatpush3.bf16.msra.mxu1 %v4024_v7  ;;  %3370 = vmatprep.mubr.msk.bf16.mxu1 %vm4883_vm1, %v3813_v2 }
 0x402   :  { %3368 = vmatprep.subr.bf16.mxu1 %v3813_v2 }
 0x405   :  { %3369 = vmatpush3.bf16.msra.mxu1 %v4031_v9 }
 0x406   :  { %3382 = vmatprep.subr.bf16.mxu1 %v3813_v2 }
 0x407   :  { %v354_v10 = vpop.permute.xlu1 %353 }
 0x408   :  { %3371 = vmatmul.mubr.msk.bf16.vlgmr.msra.gmra.mxu1 %vm302_vm6, %v354_v10 }
 0x409   :  { %3383 = vmatpush3.bf16.msra.mxu1 %v4024_v7  ;;  %3386 = vmatprep.mubr.msk.bf16.mxu1 %vm4883_vm1, %v3813_v2 }
 0x40a   :  { %3384 = vmatprep.subr.bf16.mxu1 %v3813_v2 }
 0x40d   :  { %3385 = vmatpush3.bf16.msra.mxu1 %v4031_v9 }
 0x40e   :  { %3398 = vmatprep.subr.bf16.mxu1 %v3813_v2 }
 0x4c0   :  { %v340_v11 = vpop.f32.mrf.mxu1 }
 0x4c1   :  { %v347_v12 = vrot.slane %v340_v11, 6 }
 0x4c2   :  { %v3364_v13 = vpop.f32.mrf.mxu1 }
 0x4c3   :  { %v349_v14 = vadd.f32 %v347_v12, %v3969_v30 }
 0x4c4   :  { %v343_v15 = vpop.f32.mrf.mxu1 }
 0x4c5   :  { %3674 = vtanh.f32 %v349_v14  ;;  %v414_v26 = vsub.f32 0.0, %v349_v14 }
 0x4c6   :  { %v3365_v16 = vpop.f32.mrf.mxu1 }
 0x4c7   :  { %v415_v27 = vmul.f32 1.442695, %v414_v26 }
 0x4c8   :  { %v404_v17 = vpop.f32.mrf.mxu1 }
 0x4c9   :  { %v411_v18 = vrot.slane %v404_v17, 4 }
 0x4ca   :  { %v3372_v19 = vpop.f32.mrf.mxu1 }
 0x4cb   :  { %v413_v20 = vadd.f32 %v411_v18, %v3976_v36 }
 0x4cc   :  { %v407_v21 = vpop.f32.mrf.mxu1 }
 0x4cd   :  { %3676 = vtanh.f32 %v413_v20  ;;  %v441_v28 = vsub.f32 0.0, %v413_v20 }
 0x4ce   :  { %v3373_v22 = vpop.f32.mrf.mxu1  ;;  %3678 = vpow2.f32 %v415_v27 }
 0x4cf   :  { %v442_v29 = vmul.f32 1.442695, %v441_v28 }
 0x4d1   :  { %3680 = vpow2.f32 %v442_v29 }
 0x4d2   :  { %v3675_v24 = vpop.eup %3674 }
 0x4d3   :  { %426 = vrot.lane.b32.xlu0 %v3675_v24, %s3815_s3 }
 0x4da   :  { %v3677_v25 = vpop.eup %3676 }
 0x4db   :  { %453 = vrot.lane.b32.xlu1 %v3677_v25, %s3815_s3  ;;  %v3679_v31 = vpop.eup %3678 }
 0x4dc   :  { %v417_v33 = vadd.f32 1.0, %v3679_v31 }
 0x4de   :  { %3682 = vrcp.f32 %v417_v33  ;;  %v3681_v35 = vpop.eup %3680 }
 0x4df   :  { %v444_v37 = vadd.f32 1.0, %v3681_v35 }
 0x4e1   :  { %3684 = vrcp.f32 %v444_v37 }
 0x4eb   :  { %v3683_v38 = vpop.eup %3682 }
 0x4ec   :  { %v424_v45 = vmul.f32 %v3683_v38, %v422_v44 }
 0x4ee   :  { %v3685_v41 = vpop.eup %3684 }
 0x4ef   :  { %v451_v49 = vmul.f32 %v3685_v41, %v449_v48 }
 0x545   :  { %v427_v39 = vpop.permute.xlu0 %426 }
 0x546   :  { %v429_v40 = vmul.f32 %v3683_v38, %v427_v39 }
 0x548   :  { %431 = vrot.lane.b32.xlu0 %v429_v40, %s3816_s28 }
 0x54d   :  { %v454_v42 = vpop.permute.xlu1 %453 }
 0x54e   :  { %v456_v43 = vmul.f32 %v3685_v41, %v454_v42 }
 0x550   :  { %458 = vrot.lane.b32.xlu1 %v456_v43, %s3816_s28 }
 0x5ba   :  { %v432_v46 = vpop.permute.xlu0 %431 }
 0x5bb   :  { %v4052_v47 = vadd.f32 %v432_v46, %v424_v45 }
 0x5bd   :  { %3686 = vtanh.f32 %v4052_v47  ;;  %v596_v40 = vrot.slane %v4052_v47, 6 }
 0x5c2   :  { %v459_v50 = vpop.permute.xlu1 %458 }
 0x5c3   :  { %v4056_v51 = vadd.f32 %v459_v50, %v451_v49 }
 0x5c5   :  { %3688 = vtanh.f32 %v4056_v51  ;;  %v623_v44 = vrot.slane %v4056_v51, 2 }
 0x5ca   :  { %v3687_v52 = vpop.eup %3686 }
 0x5cb   :  { %437 = vrot.lane.b32.xlu0 %v3687_v52, %s3815_s3 }
 0x5d2   :  { %v3689_v53 = vpop.eup %3688 }
 0x5d3   :  { %464 = vrot.lane.b32.xlu1 %v3689_v53, %s3815_s3 }
 0x63d   :  { %v438_v54 = vpop.permute.xlu0 %437 }
 0x63e   :  { %v4061_v55 = vmul.f32 %v3683_v38, %v438_v54 }
 0x640   :  { %v484_v56 = vpack.c.bf16 %v4061_v55, %v4061_v55 }
 0x642   :  { %v486_v57 = vrot.slane %v484_v56, 1 }
 0x644   :  { %487 = vrot.lane.b32.xlu0 %v486_v57, %s3816_s28 }
 0x645   :  { %v465_v58 = vpop.permute.xlu1 %464 }
 0x646   :  { %v4066_v59 = vmul.f32 %v3685_v41, %v465_v58 }
 0x648   :  { %v536_v62 = vpack.c.bf16 %v4066_v59, %v4066_v59 }
 0x64a   :  { %v538_v63 = vrot.slane %v536_v62, 2 }
 0x64c   :  { %539 = vrot.lane.b32.xlu1 %v538_v63, %s3816_s28 }
 0x6b6   :  { %v488_v1 = vpop.permute.xlu0 %487 }
 0x6b7   :  { %3379 = vmatmul.mubr.msk.bf16.vlgmr.msra.gmra.mxu0 %vm302_vm6, %v488_v1 }
 0x6b8   :  { %3391 = vmatpush3.bf16.msra.mxu0 %v3994_v60  ;;  %3394 = vmatprep.mubr.msk.bf16.mxu0 %vm4883_vm1, %v3813_v2 }
 0x6b9   :  { %3392 = vmatprep.subr.bf16.mxu0 %v3813_v2 }
 0x6bc   :  { %3393 = vmatpush3.bf16.msra.mxu0 %v4001_v61 }
 0x6bd   :  { %3406 = vmatprep.subr.bf16.mxu0 %v3813_v2 }
 0x6be   :  { %v540_v3 = vpop.permute.xlu1 %539 }
 0x6bf   :  { %3387 = vmatmul.mubr.msk.bf16.vlgmr.msra.gmra.mxu1 %vm302_vm6, %v540_v3 }
 0x6c0   :  { %3399 = vmatpush3.bf16.msra.mxu1 %v4024_v7  ;;  %3402 = vmatprep.mubr.msk.bf16.mxu1 %vm4883_vm1, %v3813_v2 }
 0x6c1   :  { %3400 = vmatprep.subr.bf16.mxu1 %v3813_v2 }
 0x6c4   :  { %3401 = vmatpush3.bf16.msra.mxu1 %v4031_v9 }
 0x6c5   :  { %3414 = vmatprep.subr.bf16.mxu1 %v3813_v2 }
 0x777   :  { %v526_v5 = vpop.f32.mrf.mxu0 }
 0x778   :  { %v533_v6 = vrot.slane %v526_v5, 4 }
 0x779   :  { %v3380_v8 = vpop.f32.mrf.mxu0 }
 0x77a   :  { %v535_v10 = vadd.f32 %v533_v6, %v3969_v30 }
 0x77b   :  { %v529_v11 = vpop.f32.mrf.mxu0 }
 0x77c   :  { %3690 = vtanh.f32 %v535_v10  ;;  %v588_v21 = vsub.f32 0.0, %v535_v10 }
 0x77d   :  { %v3381_v12 = vpop.f32.mrf.mxu0 }
 0x77e   :  { %v589_v22 = vmul.f32 1.442695, %v588_v21 }
 0x77f   :  { %v578_v13 = vpop.f32.mrf.mxu1 }
 0x780   :  { %v585_v14 = vrot.slane %v578_v13, 6 }
 0x781   :  { %v3388_v15 = vpop.f32.mrf.mxu1 }
 0x782   :  { %v587_v16 = vadd.f32 %v585_v14, %v3976_v36 }
 0x783   :  { %v581_v17 = vpop.f32.mrf.mxu1 }
 0x784   :  { %3692 = vtanh.f32 %v587_v16  ;;  %v615_v24 = vsub.f32 0.0, %v587_v16 }
 0x785   :  { %v3389_v18 = vpop.f32.mrf.mxu1  ;;  %3694 = vpow2.f32 %v589_v22 }
 0x786   :  { %v616_v25 = vmul.f32 1.442695, %v615_v24 }
 0x788   :  { %3696 = vpow2.f32 %v616_v25 }
 0x789   :  { %v3691_v19 = vpop.eup %3690 }
 0x78a   :  { %600 = vrot.lane.b32.xlu0 %v3691_v19, %s3815_s3 }
 0x791   :  { %v3693_v20 = vpop.eup %3692 }
 0x792   :  { %627 = vrot.lane.b32.xlu1 %v3693_v20, %s3815_s3  ;;  %v3695_v26 = vpop.eup %3694 }
 0x793   :  { %v591_v27 = vadd.f32 1.0, %v3695_v26 }
 0x795   :  { %3698 = vrcp.f32 %v591_v27  ;;  %v3697_v28 = vpop.eup %3696 }
 0x796   :  { %v618_v29 = vadd.f32 1.0, %v3697_v28 }
 0x798   :  { %3700 = vrcp.f32 %v618_v29 }
 0x7a2   :  { %v3699_v31 = vpop.eup %3698 }
 0x7a3   :  { %v598_v41 = vmul.f32 %v3699_v31, %v596_v40 }
 0x7a5   :  { %v3701_v37 = vpop.eup %3700 }
 0x7a6   :  { %v625_v45 = vmul.f32 %v3701_v37, %v623_v44 }
 0x7fc   :  { %v601_v33 = vpop.permute.xlu0 %600 }
 0x7fd   :  { %v603_v35 = vmul.f32 %v3699_v31, %v601_v33 }
 0x7ff   :  { %605 = vrot.lane.b32.xlu0 %v603_v35, %s3816_s28 }
 0x804   :  { %v628_v38 = vpop.permute.xlu1 %627 }
 0x805   :  { %v630_v39 = vmul.f32 %v3701_v37, %v628_v38 }
 0x807   :  { %632 = vrot.lane.b32.xlu1 %v630_v39, %s3816_s28 }
 0x871   :  { %v606_v42 = vpop.permute.xlu0 %605 }
 0x872   :  { %v4092_v43 = vadd.f32 %v606_v42, %v598_v41 }
 0x874   :  { %3702 = vtanh.f32 %v4092_v43  ;;  %v767_v33 = vrot.slane %v4092_v43, 6 }
 0x879   :  { %v633_v46 = vpop.permute.xlu1 %632 }
 0x87a   :  { %v4096_v48 = vadd.f32 %v633_v46, %v625_v45 }
 0x87c   :  { %3704 = vtanh.f32 %v4096_v48  ;;  %v794_v39 = vrot.slane %v4096_v48, 2 }
 0x881   :  { %v3703_v49 = vpop.eup %3702 }
 0x882   :  { %611 = vrot.lane.b32.xlu0 %v3703_v49, %s3815_s3 }
 0x889   :  { %v3705_v50 = vpop.eup %3704 }
 0x88a   :  { %638 = vrot.lane.b32.xlu1 %v3705_v50, %s3815_s3 }
 0x8f4   :  { %v612_v47 = vpop.permute.xlu0 %611 }
 0x8f5   :  { %v4101_v52 = vmul.f32 %v3699_v31, %v612_v47 }
 0x8f7   :  { %v658_v53 = vpack.c.bf16 %v4101_v52, %v4101_v52 }
 0x8f9   :  { %v660_v54 = vrot.slane %v658_v53, 2 }
 0x8fb   :  { %661 = vrot.lane.b32.xlu0 %v660_v54, %s3816_s28 }
 0x8fc   :  { %v639_v51 = vpop.permute.xlu1 %638 }
 0x8fd   :  { %v4106_v56 = vmul.f32 %v3701_v37, %v639_v51 }
 0x8ff   :  { %v710_v57 = vpack.c.bf16 %v4106_v56, %v4106_v56 }
 0x901   :  { %v712_v58 = vrot.slane %v710_v57, 1 }
 0x903   :  { %713 = vrot.lane.b32.xlu1 %v712_v58, %s3816_s28 }
 0x96d   :  { %v662_v62 = vpop.permute.xlu0 %661 }
 0x96e   :  { %3395 = vmatmul.mubr.msk.bf16.vlgmr.msra.gmra.mxu0 %vm302_vm6, %v662_v62 }
 0x96f   :  { %3407 = vmatpush3.bf16.msra.mxu0 %v3994_v60  ;;  %3410 = vmatprep.mubr.msk.bf16.mxu0 %vm4883_vm1, %v3813_v2 }
 0x970   :  { %3408 = vmatprep.subr.bf16.mxu0 %v3813_v2 }
 0x973   :  { %3409 = vmatpush3.bf16.msra.mxu0 %v4001_v61 }
 0x974   :  { %3422 = vmatprep.subr.bf16.mxu0 %v3813_v2 }
 0x975   :  { %v714_v63 = vpop.permute.xlu1 %713 }
 0x976   :  { %3403 = vmatmul.mubr.msk.bf16.vlgmr.msra.gmra.mxu1 %vm302_vm6, %v714_v63 }
 0x977   :  { %3415 = vmatpush3.bf16.msra.mxu1 %v4024_v7  ;;  %3418 = vmatprep.mubr.msk.bf16.mxu1 %vm4883_vm1, %v3813_v2 }
 0x978   :  { %3416 = vmatprep.subr.bf16.mxu1 %v3813_v2 }
 0x97b   :  { %3417 = vmatpush3.bf16.msra.mxu1 %v4031_v9 }
 0x97c   :  { %3430 = vmatprep.subr.bf16.mxu1 %v3813_v2 }
 0xa2e   :  { %v700_v1 = vpop.f32.mrf.mxu0 }
 0xa2f   :  { %v707_v3 = vrot.slane %v700_v1, 2 }
 0xa30   :  { %v3396_v5 = vpop.f32.mrf.mxu0 }
 0xa31   :  { %v709_v6 = vadd.f32 %v707_v3, %v3969_v30 }
 0xa32   :  { %v703_v8 = vpop.f32.mrf.mxu0 }
 0xa33   :  { %3706 = vtanh.f32 %v709_v6  ;;  %v759_v18 = vsub.f32 0.0, %v709_v6 }
 0xa34   :  { %v3397_v10 = vpop.f32.mrf.mxu0 }
 0xa35   :  { %v760_v19 = vmul.f32 1.442695, %v759_v18 }
 0xa36   :  { %v752_v11 = vpop.f32.mrf.mxu1 }
 0xa37   :  { %v758_v12 = vadd.f32 %v752_v11, %v3976_v36 }
 0xa38   :  { %v3404_v13 = vpop.f32.mrf.mxu1 }
 0xa39   :  { %3708 = vtanh.f32 %v758_v12  ;;  %v786_v20 = vsub.f32 0.0, %v758_v12 }
 0xa3a   :  { %v755_v14 = vpop.f32.mrf.mxu1  ;;  %3710 = vpow2.f32 %v760_v19 }
 0xa3b   :  { %v787_v30 = vmul.f32 1.442695, %v786_v20 }
 0xa3c   :  { %v3405_v15 = vpop.f32.mrf.mxu1 }
 0xa3d   :  { %3712 = vpow2.f32 %v787_v30 }
 0xa40   :  { %v3707_v16 = vpop.eup %3706 }
 0xa41   :  { %771 = vrot.lane.b32.xlu0 %v3707_v16, %s3815_s3 }
 0xa46   :  { %v3709_v17 = vpop.eup %3708 }
 0xa47   :  { %798 = vrot.lane.b32.xlu1 %v3709_v17, %s3815_s3  ;;  %v3711_v21 = vpop.eup %3710 }
 0xa48   :  { %v762_v22 = vadd.f32 1.0, %v3711_v21 }
 0xa4a   :  { %v3713_v24 = vpop.eup %3712  ;;  %3714 = vrcp.f32 %v762_v22 }
 0xa4b   :  { %v789_v36 = vadd.f32 1.0, %v3713_v24 }
 0xa4d   :  { %3716 = vrcp.f32 %v789_v36 }
 0xa57   :  { %v3715_v25 = vpop.eup %3714 }
 0xa58   :  { %v769_v35 = vmul.f32 %v3715_v25, %v767_v33 }
 0xa5a   :  { %v3717_v28 = vpop.eup %3716 }
 0xa5b   :  { %v796_v40 = vmul.f32 %v3717_v28, %v794_v39 }
 0xab3   :  { %v772_v26 = vpop.permute.xlu0 %771 }
 0xab4   :  { %v774_v27 = vmul.f32 %v3715_v25, %v772_v26 }
 0xab6   :  { %776 = vrot.lane.b32.xlu0 %v774_v27, %s3816_s28 }
 0xab9   :  { %v799_v29 = vpop.permute.xlu1 %798 }
 0xaba   :  { %v801_v31 = vmul.f32 %v3717_v28, %v799_v29 }
 0xabc   :  { %803 = vrot.lane.b32.xlu1 %v801_v31, %s3816_s28 }
 0xb28   :  { %v777_v37 = vpop.permute.xlu0 %776 }
 0xb29   :  { %v4132_v38 = vadd.f32 %v777_v37, %v769_v35 }
 0xb2b   :  { %3718 = vtanh.f32 %v4132_v38  ;;  %v937_v27 = vrot.slane %v4132_v38, 6 }
 0xb2e   :  { %v804_v41 = vpop.permute.xlu1 %803 }
 0xb2f   :  { %v4136_v42 = vadd.f32 %v804_v41, %v796_v40 }
 0xb31   :  { %3720 = vtanh.f32 %v4136_v42  ;;  %v964_v33 = vrot.slane %v4136_v42, 2 }
 0xb38   :  { %v3719_v44 = vpop.eup %3718 }
 0xb39   :  { %782 = vrot.lane.b32.xlu0 %v3719_v44, %s3815_s3 }
 0xb3e   :  { %v3721_v45 = vpop.eup %3720 }
 0xb3f   :  { %809 = vrot.lane.b32.xlu1 %v3721_v45, %s3815_s3 }
 0xbab   :  { %v783_v43 = vpop.permute.xlu0 %782 }
 0xbac   :  { %v4141_v46 = vmul.f32 %v3715_v25, %v783_v43 }
 0xbae   :  { %v829_v48 = vpack.c.bf16 %v4141_v46, %v4141_v46 }
 0xbb0   :  { %v831_v49 = vrot.slane %v829_v48, 3 }
 0xbb1   :  { %v810_v50 = vpop.permute.xlu1 %809 }
 0xbb2   :  { %v4145_v47 = vmul.f32 %v3717_v28, %v810_v50  ;;  %832 = vrot.lane.b32.xlu1 %v831_v49, %s3816_s28 }
 0xbb4   :  { %v878_v53 = vpack.c.bf16 %v4145_v47, %v4145_v47 }
 0xbb6   :  { %880 = vrot.lane.b32.xlu0 %v878_v53, %s3816_s28 }
 0xc24   :  { %v833_v54 = vpop.permute.xlu1 %832 }
 0xc25   :  { %3411 = vmatmul.mubr.msk.bf16.vlgmr.msra.gmra.mxu0 %vm302_vm6, %v833_v54 }
 0xc26   :  { %3423 = vmatpush3.bf16.msra.mxu0 %v3994_v60  ;;  %3426 = vmatprep.mubr.msk.bf16.mxu0 %vm4883_vm1, %v3813_v2 }
 0xc27   :  { %3424 = vmatprep.subr.bf16.mxu0 %v3813_v2 }
 0xc28   :  { %v881_v51 = vpop.permute.xlu0 %880 }
 0xc29   :  { %3419 = vmatmul.mubr.msk.bf16.vlgmr.msra.gmra.mxu1 %vm302_vm6, %v881_v51 }
 0xc2a   :  { %3425 = vmatpush3.bf16.msra.mxu0 %v4001_v61  ;;  %3431 = vmatpush3.bf16.msra.mxu1 %v4024_v7 }
 0xc2b   :  { %3432 = vmatprep.subr.bf16.mxu1 %v3813_v2  ;;  %3434 = vmatprep.mubr.msk.bf16.mxu1 %vm4883_vm1, %v3813_v2 }
 0xc2c   :  { %3438 = vmatprep.subr.bf16.mxu0 %v3813_v2 }
 0xc2e   :  { %3433 = vmatpush3.bf16.msra.mxu1 %v4031_v9 }
 0xc2f   :  { %3446 = vmatprep.subr.bf16.mxu1 %v3813_v2 }
 0xce5   :  { %v871_v57 = vpop.f32.mrf.mxu0 }
 0xce6   :  { %v877_v58 = vadd.f32 %v871_v57, %v3974_v34 }
 0xce7   :  { %v3412_v62 = vpop.f32.mrf.mxu0 }
 0xce8   :  { %3722 = vtanh.f32 %v877_v58  ;;  %v929_v14 = vsub.f32 0.0, %v877_v58 }
 0xce9   :  { %v874_v63 = vpop.f32.mrf.mxu0  ;;  %v919_v1 = vpop.f32.mrf.mxu1 }
 0xcea   :  { %v926_v3 = vrot.slane %v919_v1, 2  ;;  %v930_v15 = vmul.f32 1.442695, %v929_v14 }
 0xceb   :  { %v3413_v5 = vpop.f32.mrf.mxu0  ;;  %v3420_v6 = vpop.f32.mrf.mxu1 }
 0xcec   :  { %v928_v8 = vadd.f32 %v926_v3, %v3972_v32 }
 0xced   :  { %v922_v10 = vpop.f32.mrf.mxu1 }
 0xcee   :  { %3724 = vtanh.f32 %v928_v8  ;;  %v956_v16 = vsub.f32 0.0, %v928_v8 }
 0xcef   :  { %v3421_v11 = vpop.f32.mrf.mxu1  ;;  %3726 = vpow2.f32 %v930_v15 }
 0xcf0   :  { %v957_v17 = vmul.f32 1.442695, %v956_v16 }
 0xcf2   :  { %3728 = vpow2.f32 %v957_v17 }
 0xcf5   :  { %v3723_v12 = vpop.eup %3722 }
 0xcf6   :  { %941 = vrot.lane.b32.xlu0 %v3723_v12, %s3815_s3 }
 0xcfb   :  { %v3725_v13 = vpop.eup %3724 }
 0xcfc   :  { %968 = vrot.lane.b32.xlu1 %v3725_v13, %s3815_s3  ;;  %v3727_v18 = vpop.eup %3726 }
 0xcfd   :  { %v932_v19 = vadd.f32 1.0, %v3727_v18 }
 0xcff   :  { %v3729_v20 = vpop.eup %3728  ;;  %3730 = vrcp.f32 %v932_v19 }
 0xd00   :  { %v959_v30 = vadd.f32 1.0, %v3729_v20 }
 0xd02   :  { %3732 = vrcp.f32 %v959_v30 }
 0xd0c   :  { %v3731_v21 = vpop.eup %3730 }
 0xd0d   :  { %v939_v28 = vmul.f32 %v3731_v21, %v937_v27 }
 0xd0f   :  { %v3733_v36 = vpop.eup %3732 }
 0xd10   :  { %v966_v35 = vmul.f32 %v3733_v36, %v964_v33 }
 0xd68   :  { %v942_v22 = vpop.permute.xlu0 %941 }
 0xd69   :  { %v944_v24 = vmul.f32 %v3731_v21, %v942_v22 }
 0xd6b   :  { %946 = vrot.lane.b32.xlu0 %v944_v24, %s3816_s28 }
 0xd6e   :  { %v969_v25 = vpop.permute.xlu1 %968 }
 0xd6f   :  { %v971_v26 = vmul.f32 %v3733_v36, %v969_v25 }
 0xd71   :  { %973 = vrot.lane.b32.xlu1 %v971_v26, %s3816_s28 }
 0xddd   :  { %v947_v29 = vpop.permute.xlu0 %946 }
 0xdde   :  { %v4172_v31 = vadd.f32 %v947_v29, %v939_v28 }
 0xde0   :  { %3734 = vtanh.f32 %v4172_v31  ;;  %v1106_v26 = vrot.slane %v4172_v31, 6 }
 0xde3   :  { %v974_v37 = vpop.permute.xlu1 %973 }
 0xde4   :  { %v4176_v39 = vadd.f32 %v974_v37, %v966_v35 }
 0xde6   :  { %3736 = vtanh.f32 %v4176_v39  ;;  %v1133_v33 = vrot.slane %v4176_v39, 2 }
 0xded   :  { %v3735_v40 = vpop.eup %3734 }
 0xdee   :  { %952 = vrot.lane.b32.xlu0 %v3735_v40, %s3815_s3 }
 0xdf3   :  { %v3737_v41 = vpop.eup %3736 }
 0xdf4   :  { %979 = vrot.lane.b32.xlu1 %v3737_v41, %s3815_s3 }
 0xe60   :  { %v953_v38 = vpop.permute.xlu0 %952 }
 0xe61   :  { %v4181_v44 = vmul.f32 %v3731_v21, %v953_v38 }
 0xe63   :  { %v995_v42 = vpack.c.bf16 %v4181_v44, %v4181_v44 }
 0xe65   :  { %997 = vrot.lane.b32.xlu0 %v995_v42, %s3816_s28 }
 0xe66   :  { %v980_v45 = vpop.permute.xlu1 %979 }
 0xe67   :  { %v4186_v43 = vmul.f32 %v3733_v36, %v980_v45 }
 0xe69   :  { %v1046_v48 = vpack.c.bf16 %v4186_v43, %v4186_v43 }
 0xe6b   :  { %v1048_v49 = vrot.slane %v1046_v48, 3 }
 0xe6d   :  { %1049 = vrot.lane.b32.xlu1 %v1048_v49, %s3816_s28 }
 0xed7   :  { %v998_v50 = vpop.permute.xlu0 %997 }
 0xed8   :  { %3427 = vmatmul.mubr.msk.bf16.vlgmr.msra.gmra.mxu0 %vm302_vm6, %v998_v50 }
 0xed9   :  { %3439 = vmatpush3.bf16.msra.mxu0 %v3994_v60  ;;  %3442 = vmatprep.mubr.msk.bf16.mxu0 %vm4883_vm1, %v3813_v2 }
 0xeda   :  { %3440 = vmatprep.subr.bf16.mxu0 %v3813_v2 }
 0xedd   :  { %3441 = vmatpush3.bf16.msra.mxu0 %v4001_v61 }
 0xede   :  { %3454 = vmatprep.subr.bf16.mxu0 %v3813_v2 }
 0xedf   :  { %v1050_v53 = vpop.permute.xlu1 %1049 }
 0xee0   :  { %3435 = vmatmul.mubr.msk.bf16.vlgmr.msra.gmra.mxu1 %vm302_vm6, %v1050_v53 }
 0xee1   :  { %3447 = vmatpush3.bf16.msra.mxu1 %v4024_v7  ;;  %3450 = vmatprep.mubr.msk.bf16.mxu1 %vm4883_vm1, %v3813_v2 }
 0xee2   :  { %3448 = vmatprep.subr.bf16.mxu1 %v3813_v2 }
 0xee5   :  { %3449 = vmatpush3.bf16.msra.mxu1 %v4031_v9 }
 0xee6   :  { %3462 = vmatprep.subr.bf16.mxu1 %v3813_v2 }
 0xf98   :  { %v1036_v54 = vpop.f32.mrf.mxu0 }
 0xf99   :  { %v1043_v51 = vrot.slane %v1036_v54, 6 }
 0xf9a   :  { %v3428_v57 = vpop.f32.mrf.mxu0 }
 0xf9b   :  { %v1045_v58 = vadd.f32 %v1043_v51, %v3974_v34 }
 0xf9c   :  { %v1039_v62 = vpop.f32.mrf.mxu0 }
 0xf9d   :  { %3738 = vtanh.f32 %v1045_v58  ;;  %v1098_v13 = vsub.f32 0.0, %v1045_v58 }
 0xf9e   :  { %v3429_v63 = vpop.f32.mrf.mxu0 }
 0xf9f   :  { %v1099_v14 = vmul.f32 1.442695, %v1098_v13 }
 0xfa0   :  { %v1088_v1 = vpop.f32.mrf.mxu1 }
 0xfa1   :  { %v1095_v3 = vrot.slane %v1088_v1, 4 }
 0xfa2   :  { %v3436_v5 = vpop.f32.mrf.mxu1 }
 0xfa3   :  { %v1097_v6 = vadd.f32 %v1095_v3, %v3972_v32 }
 0xfa4   :  { %v1091_v8 = vpop.f32.mrf.mxu1 }
 0xfa5   :  { %3740 = vtanh.f32 %v1097_v6  ;;  %v1125_v15 = vsub.f32 0.0, %v1097_v6 }
 0xfa6   :  { %v3437_v10 = vpop.f32.mrf.mxu1  ;;  %3742 = vpow2.f32 %v1099_v14 }
 0xfa7   :  { %v1126_v16 = vmul.f32 1.442695, %v1125_v15 }
 0xfa9   :  { %3744 = vpow2.f32 %v1126_v16 }
 0xfaa   :  { %v3739_v11 = vpop.eup %3738 }
 0xfab   :  { %1110 = vrot.lane.b32.xlu0 %v3739_v11, %s3815_s3 }
 0xfb2   :  { %v3741_v12 = vpop.eup %3740 }
 0xfb3   :  { %1137 = vrot.lane.b32.xlu1 %v3741_v12, %s3815_s3  ;;  %v3743_v17 = vpop.eup %3742 }
 0xfb4   :  { %v1101_v18 = vadd.f32 1.0, %v3743_v17 }
 0xfb6   :  { %3746 = vrcp.f32 %v1101_v18  ;;  %v3745_v19 = vpop.eup %3744 }
 0xfb7   :  { %v1128_v20 = vadd.f32 1.0, %v3745_v19 }
 0xfb9   :  { %3748 = vrcp.f32 %v1128_v20 }
 0xfc3   :  { %v3747_v30 = vpop.eup %3746 }
 0xfc4   :  { %v1108_v27 = vmul.f32 %v3747_v30, %v1106_v26 }
 0xfc6   :  { %v3749_v24 = vpop.eup %3748 }
 0xfc7   :  { %v1135_v35 = vmul.f32 %v3749_v24, %v1133_v33 }
0x101d   :  { %v1111_v21 = vpop.permute.xlu0 %1110 }
0x101e   :  { %v1113_v22 = vmul.f32 %v3747_v30, %v1111_v21 }
0x1020   :  { %1115 = vrot.lane.b32.xlu0 %v1113_v22, %s3816_s28 }
0x1025   :  { %v1138_v36 = vpop.permute.xlu1 %1137 }
0x1026   :  { %v1140_v25 = vmul.f32 %v3749_v24, %v1138_v36 }
0x1028   :  { %1142 = vrot.lane.b32.xlu1 %v1140_v25, %s3816_s28 }
0x1092   :  { %v1116_v28 = vpop.permute.xlu0 %1115 }
0x1093   :  { %v4212_v29 = vadd.f32 %v1116_v28, %v1108_v27 }
0x1095   :  { %3750 = vtanh.f32 %v4212_v29  ;;  %v1276_v36 = vrot.slane %v4212_v29, 6 }
0x109a   :  { %v1143_v37 = vpop.permute.xlu1 %1142 }
0x109b   :  { %v4216_v40 = vadd.f32 %v1143_v37, %v1135_v35 }
0x109d   :  { %3752 = vtanh.f32 %v4216_v40  ;;  %v1303_v28 = vrot.slane %v4216_v40, 2 }
0x10a2   :  { %v3751_v41 = vpop.eup %3750 }
0x10a3   :  { %1121 = vrot.lane.b32.xlu0 %v3751_v41, %s3815_s3 }
0x10aa   :  { %v3753_v38 = vpop.eup %3752 }
0x10ab   :  { %1148 = vrot.lane.b32.xlu1 %v3753_v38, %s3815_s3 }
0x1115   :  { %v1122_v31 = vpop.permute.xlu0 %1121 }
0x1116   :  { %v4221_v42 = vmul.f32 %v3747_v30, %v1122_v31 }
0x1118   :  { %v1164_v45 = vpack.c.bf16 %v4221_v42, %v4221_v42 }
0x111a   :  { %v1166_v48 = vrot.slane %v1164_v45, 1 }
0x111c   :  { %1167 = vrot.lane.b32.xlu0 %v1166_v48, %s3816_s28 }
0x111d   :  { %v1149_v39 = vpop.permute.xlu1 %1148 }
0x111e   :  { %v4226_v49 = vmul.f32 %v3749_v24, %v1149_v39 }
0x1120   :  { %v1216_v50 = vpack.c.bf16 %v4226_v49, %v4226_v49 }
0x1122   :  { %v1218_v53 = vrot.slane %v1216_v50, 2 }
0x1124   :  { %1219 = vrot.lane.b32.xlu1 %v1218_v53, %s3816_s28 }
0x118e   :  { %v1168_v54 = vpop.permute.xlu0 %1167 }
0x118f   :  { %3443 = vmatmul.mubr.msk.bf16.vlgmr.msra.gmra.mxu0 %vm302_vm6, %v1168_v54 }
0x1190   :  { %3455 = vmatpush3.bf16.msra.mxu0 %v3994_v60  ;;  %3458 = vmatprep.mubr.msk.bf16.mxu0 %vm4883_vm1, %v3813_v2 }
0x1191   :  { %3456 = vmatprep.subr.bf16.mxu0 %v3813_v2 }
0x1194   :  { %3457 = vmatpush3.bf16.msra.mxu0 %v4001_v61 }
0x1196   :  { %v1220_v51 = vpop.permute.xlu1 %1219 }
0x1197   :  { %3451 = vmatmul.mubr.msk.bf16.vlgmr.msra.gmra.mxu1 %vm302_vm6, %v1220_v51 }
0x1198   :  { %3463 = vmatpush3.bf16.msra.mxu1 %v4024_v7  ;;  %3466 = vmatprep.mubr.msk.bf16.mxu1 %vm4883_vm1, %v3813_v2  ;;  %vm827_vm1 = vcmask 517377  }
0x1199   :  { %3464 = vmatprep.subr.bf16.mxu1 %v3813_v2 }
0x119c   :  { %3465 = vmatpush3.bf16.msra.mxu1 %v4031_v9 }
0x124f   :  { %v1206_v60 = vpop.f32.mrf.mxu0 }
0x1250   :  { %v1213_v57 = vrot.slane %v1206_v60, 4 }
0x1251   :  { %v3444_v58 = vpop.f32.mrf.mxu0 }
0x1252   :  { %v1215_v62 = vadd.f32 %v1213_v57, %v3974_v34 }
0x1253   :  { %v1209_v63 = vpop.f32.mrf.mxu0 }
0x1254   :  { %3754 = vtanh.f32 %v1215_v62  ;;  %v1268_v11 = vsub.f32 0.0, %v1215_v62 }
0x1255   :  { %v3445_v61 = vpop.f32.mrf.mxu0 }
0x1256   :  { %v1269_v12 = vmul.f32 1.442695, %v1268_v11 }
0x1257   :  { %v1258_v1 = vpop.f32.mrf.mxu1 }
0x1258   :  { %v1265_v3 = vrot.slane %v1258_v1, 6 }
0x1259   :  { %v3452_v5 = vpop.f32.mrf.mxu1 }
0x125a   :  { %v1267_v7 = vadd.f32 %v1265_v3, %v3972_v32 }
0x125b   :  { %v1261_v6 = vpop.f32.mrf.mxu1 }
0x125c   :  { %3756 = vtanh.f32 %v1267_v7  ;;  %v1295_v13 = vsub.f32 0.0, %v1267_v7 }
0x125d   :  { %v3453_v8 = vpop.f32.mrf.mxu1  ;;  %3758 = vpow2.f32 %v1269_v12 }
0x125e   :  { %v1296_v14 = vmul.f32 1.442695, %v1295_v13 }
0x1260   :  { %3760 = vpow2.f32 %v1296_v14 }
0x1261   :  { %v3755_v10 = vpop.eup %3754 }
0x1262   :  { %1280 = vrot.lane.b32.xlu0 %v3755_v10, %s3815_s3 }
0x1269   :  { %v3757_v9 = vpop.eup %3756 }
0x126a   :  { %1307 = vrot.lane.b32.xlu1 %v3757_v9, %s3815_s3  ;;  %v3759_v15 = vpop.eup %3758 }
0x126b   :  { %v1271_v16 = vadd.f32 1.0, %v3759_v15 }
0x126d   :  { %3762 = vrcp.f32 %v1271_v16  ;;  %v3761_v17 = vpop.eup %3760 }
0x126e   :  { %v1298_v18 = vadd.f32 1.0, %v3761_v17 }
0x1270   :  { %3764 = vrcp.f32 %v1298_v18 }
0x127a   :  { %v3763_v19 = vpop.eup %3762 }
0x127b   :  { %v1278_v25 = vmul.f32 %v3763_v19, %v1276_v36 }
0x127d   :  { %v3765_v21 = vpop.eup %3764 }
0x127e   :  { %v1305_v33 = vmul.f32 %v3765_v21, %v1303_v28 }
0x12d4   :  { %v1281_v20 = vpop.permute.xlu0 %1280 }
0x12d5   :  { %v1283_v30 = vmul.f32 %v3763_v19, %v1281_v20 }
0x12d7   :  { %1285 = vrot.lane.b32.xlu0 %v1283_v30, %s3816_s28 }
0x12dc   :  { %v1308_v22 = vpop.permute.xlu1 %1307 }
0x12dd   :  { %v1310_v24 = vmul.f32 %v3765_v21, %v1308_v22 }
0x12df   :  { %1312 = vrot.lane.b32.xlu1 %v1310_v24, %s3816_s28 }
0x1349   :  { %v1286_v26 = vpop.permute.xlu0 %1285 }
0x134a   :  { %v4250_v27 = vadd.f32 %v1286_v26, %v1278_v25 }
0x134c   :  { %3766 = vtanh.f32 %v4250_v27 }
0x1351   :  { %v1313_v35 = vpop.permute.xlu1 %1312 }
0x1352   :  { %v4254_v37 = vadd.f32 %v1313_v35, %v1305_v33 }
0x1354   :  { %3768 = vtanh.f32 %v4254_v37  ;;  %v1470_v25 = vrot.slane %v4254_v37, 2 }
0x1359   :  { %v3767_v41 = vpop.eup %3766 }
0x135a   :  { %1291 = vrot.lane.b32.xlu0 %v3767_v41, %s3815_s3 }
0x1361   :  { %v3769_v38 = vpop.eup %3768 }
0x1362   :  { %1318 = vrot.lane.b32.xlu1 %v3769_v38, %s3815_s3 }
0x13cc   :  { %v1292_v29 = vpop.permute.xlu0 %1291 }
0x13cd   :  { %v4259_v31 = vmul.f32 %v3763_v19, %v1292_v29 }
0x13cf   :  { %v1334_v45 = vpack.c.bf16 %v4259_v31, %v4259_v31 }
0x13d1   :  { %v1336_v48 = vrot.slane %v1334_v45, 2 }
0x13d3   :  { %1337 = vrot.lane.b32.xlu0 %v1336_v48, %s3816_s28 }
0x13d4   :  { %v1319_v40 = vpop.permute.xlu1 %1318 }
0x13d5   :  { %v4264_v39 = vmul.f32 %v3765_v21, %v1319_v40  ;;  %v1443_v21 = vrot.slane %v4250_v27, 6 }
0x13d7   :  { %v1386_v50 = vpack.c.bf16 %v4264_v39, %v4264_v39 }
0x13d9   :  { %v1388_v53 = vrot.slane %v1386_v50, 1 }
0x13db   :  { %1389 = vrot.lane.b32.xlu1 %v1388_v53, %s3816_s28 }
0x1445   :  { %v1338_v54 = vpop.permute.xlu0 %1337 }
0x1446   :  { %3459 = vmatmul.mubr.msk.bf16.vlgmr.msra.gmra.mxu0 %vm302_vm6, %v1338_v54  ;;  %v1505_v54 = vld [vmem:[%s4875_s7] sm:$0xff] }
0x144d   :  { %v1390_v51 = vpop.permute.xlu1 %1389 }
0x144e   :  { %3467 = vmatmul.mubr.msk.bf16.vlgmr.msra.gmra.mxu1 %vm302_vm6, %v1390_v51  ;;  %vm823_vm6 = vcmask 516352   ;;  %v1509_v51 = vld [vmem:[%s4876_s8] sm:$0xff] }
0x1506   :  { %v1376_v60 = vpop.f32.mrf.mxu0 }
0x1507   :  { %v1383_v57 = vrot.slane %v1376_v60, 2  ;;  %v1507_v60 = vld [vmem:[%s4875_s7 + $0x10] sm:$0xff] }
0x1508   :  { %v3460_v58 = vpop.f32.mrf.mxu0 }
0x1509   :  { %v1385_v62 = vadd.f32 %v1383_v57, %v3974_v34  ;;  %v1506_v57 = vld [vmem:[%s4875_s7 + $0x8] sm:$0xff]  ;;  %v1511_v58 = vld [vmem:[%s4876_s8 + $0x10] sm:$0xff] }
0x150a   :  { %v1379_v63 = vpop.f32.mrf.mxu0 }
0x150b   :  { %3770 = vtanh.f32 %v1385_v62  ;;  %v1435_v9 = vsub.f32 0.0, %v1385_v62  ;;  %v1510_v62 = vld [vmem:[%s4876_s8 + $0x8] sm:$0xff]  ;;  %v1508_v63 = vld [vmem:[%s4875_s7 + $0x18] sm:$0x3f]  ;;  %s3827_s7 = smov 40  }
0x150c   :  { %v3461_v61 = vpop.f32.mrf.mxu0 }
0x150d   :  { %v1436_v11 = vmul.f32 1.442695, %v1435_v9  ;;  %v1512_v61 = vld [vmem:[%s4876_s8 + $0x18] sm:$0x3f]  ;;  %s3828_s8 = smov 80  }
0x150e   :  { %v1428_v1 = vpop.f32.mrf.mxu1 }
0x150f   :  { %v1434_v3 = vadd.f32 %v1428_v1, %v3972_v32 }
0x1510   :  { %v3468_v5 = vpop.f32.mrf.mxu1 }
0x1511   :  { %3772 = vtanh.f32 %v1434_v3  ;;  %v1462_v12 = vsub.f32 0.0, %v1434_v3 }
0x1512   :  { %v1431_v7 = vpop.f32.mrf.mxu1  ;;  %3774 = vpow2.f32 %v1436_v11 }
0x1513   :  { %v1463_v34 = vmul.f32 1.442695, %v1462_v12 }
0x1514   :  { %v3469_v6 = vpop.f32.mrf.mxu1 }
0x1515   :  { %3776 = vpow2.f32 %v1463_v34 }
0x1518   :  { %v3771_v8 = vpop.eup %3770 }
0x1519   :  { %1447 = vrot.lane.b32.xlu0 %v3771_v8, %s3815_s3 }
0x151e   :  { %v3773_v10 = vpop.eup %3772 }
0x151f   :  { %1474 = vrot.lane.b32.xlu1 %v3773_v10, %s3815_s3  ;;  %v3775_v13 = vpop.eup %3774 }
0x1520   :  { %v1438_v14 = vadd.f32 1.0, %v3775_v13  ;;  %v3615_v13 = vld [vmem:[%s4874_s6 + $0x8] sm:$0x7f]  }
0x1522   :  { %v3777_v15 = vpop.eup %3776  ;;  %3778 = vrcp.f32 %v1438_v14 }
0x1523   :  { %v1465_v32 = vadd.f32 1.0, %v3777_v15 }
0x1525   :  { %3780 = vrcp.f32 %v1465_v32 }
0x152f   :  { %v3779_v16 = vpop.eup %3778 }
0x1530   :  { %v1445_v22 = vmul.f32 %v3779_v16, %v1443_v21 }
0x1532   :  { %v3781_v19 = vpop.eup %3780 }
0x1533   :  { %v1472_v26 = vmul.f32 %v3781_v19, %v1470_v25 }
0x158b   :  { %v1448_v17 = vpop.permute.xlu0 %1447 }
0x158c   :  { %v1450_v18 = vmul.f32 %v3779_v16, %v1448_v17 }
0x158e   :  { %1452 = vrot.lane.b32.xlu0 %v1450_v18, %s3816_s28 }
0x1591   :  { %v1475_v20 = vpop.permute.xlu1 %1474 }
0x1592   :  { %v1477_v30 = vmul.f32 %v3781_v19, %v1475_v20 }
0x1594   :  { %1479 = vrot.lane.b32.xlu1 %v1477_v30, %s3816_s28 }
0x1600   :  { %v1453_v24 = vpop.permute.xlu0 %1452 }
0x1601   :  { %v1455_v36 = vadd.f32 %v1453_v24, %v1445_v22 }
0x1603   :  { %3782 = vtanh.f32 %v1455_v36 }
0x1606   :  { %v1480_v28 = vpop.permute.xlu1 %1479 }
0x1607   :  { %v1482_v33 = vadd.f32 %v1480_v28, %v1472_v26 }
0x1609   :  { %3784 = vtanh.f32 %v1482_v33 }
0x1610   :  { %v3783_v35 = vpop.eup %3782 }
0x1611   :  { %1458 = vrot.lane.b32.xlu0 %v3783_v35, %s3815_s3 }
0x1615   :  { %270 = vrot.lane.b32.xlu0 %v4011_v0, %s3816_s28 }
0x1616   :  { %v3785_v41 = vpop.eup %3784 }
0x1617   :  { %1485 = vrot.lane.b32.xlu1 %v3785_v41, %s3815_s3 }
0x1619   :  { %469 = vrot.lane.b32.xlu0 %v4061_v55, %s3816_s28 }
0x161b   :  { %276 = vrot.lane.b32.xlu1 %v4016_v4, %s3815_s3 }
0x161d   :  { %643 = vrot.lane.b32.xlu0 %v4101_v52, %s3816_s28 }
0x161f   :  { %475 = vrot.lane.b32.xlu1 %v4066_v59, %s3815_s3 }
0x1621   :  { %814 = vrot.lane.b32.xlu0 %v4141_v46, %s3816_s28 }
0x1623   :  { %649 = vrot.lane.b32.xlu1 %v4106_v56, %s3815_s3 }
0x1625   :  { %984 = vrot.lane.b32.xlu0 %v4181_v44, %s3816_s28 }
0x1627   :  { %820 = vrot.lane.b32.xlu1 %v4145_v47, %s3815_s3 }
0x1629   :  { %1153 = vrot.lane.b32.xlu0 %v4221_v42, %s3816_s28 }
0x162b   :  { %989 = vrot.lane.b32.xlu1 %v4186_v43, %s3815_s3 }
0x162d   :  { %1323 = vrot.lane.b32.xlu0 %v4259_v31, %s3816_s28 }
0x162f   :  { %1158 = vrot.lane.b32.xlu1 %v4226_v49, %s3815_s3 }
0x1633   :  { %1328 = vrot.lane.b32.xlu1 %v4264_v39, %s3815_s3  ;;  %v3614_v39 = vld [vmem:[%s4874_s6] sm:$0xff]   ;;  %s3829_s6 = smov 92  }
0x1683   :  { %v1459_v0 = vpop.permute.xlu0 %1458 }
0x1684   :  { %v1461_v4 = vmul.f32 %v3779_v16, %v1459_v0 }
0x1686   :  { %1490 = vrot.lane.b32.xlu0 %v1461_v4, %s3816_s28 }
0x1687   :  { %v271_v55 = vpop.permute.xlu0 %270 }
0x1688   :  { %274 = vst.msk [vmem:[#allocation2] sm:$0x1] %vm273_vm7, %v271_v55 }
0x1689   :  { %283 = vst.msk [vmem:[#allocation2 + $0x7] sm:$0x2] %vm282_vm8, %v271_v55  ;;  %v1486_v59 = vpop.permute.xlu1 %1485 }
0x168a   :  { %v1488_v52 = vmul.f32 %v3781_v19, %v1486_v59 }
0x168b   :  { %v470_v56 = vpop.permute.xlu0 %469 }
0x168c   :  { %473 = vst.msk [vmem:[#allocation2 - $0x1] sm:$0x4] %vm472_vm9, %v470_v56  ;;  %1495 = vrot.lane.b32.xlu1 %v1488_v52, %s3815_s3 }
0x168d   :  { %481 = vst.msk [vmem:[#allocation2 + $0x6] sm:$0x8] %vm480_vm10, %v470_v56  ;;  %v277_v46 = vpop.permute.xlu1 %276 }
0x168e   :  { %280 = vst.msk [vmem:[#allocation2 + $0x1] sm:$0x40] %vm279_vm11, %v277_v46 }
0x168f   :  { %285 = vst.msk [vmem:[#allocation2 + $0x8] sm:$0x80] %vm284_vm12, %v277_v46  ;;  %v644_v47 = vpop.permute.xlu0 %643 }
0x1690   :  { %647 = vst.msk [vmem:[#allocation2 - $0x2] sm:$0x10] %vm646_vm13, %v644_v47 }
0x1691   :  { %655 = vst.msk [vmem:[#allocation2 + $0x5] sm:$0x20] %vm654_vm14, %v644_v47  ;;  %v476_v44 = vpop.permute.xlu1 %475 }
0x1692   :  { %479 = vst.msk [vmem:[#allocation2 + $0x2] sm:$0x10] %vm478_vm15, %v476_v44 }
0x1693   :  { %483 = vst.msk [vmem:[#allocation2 + $0x9] sm:$0x20] %vm482_vm0, %v476_v44  ;;  %v815_v43 = vpop.permute.xlu0 %814 }
0x1694   :  { %818 = vst.msk [vmem:[#allocation2 - $0x3] sm:$0x40] %vm817_vm2, %v815_v43 }
0x1695   :  { %826 = vst.msk [vmem:[#allocation2 + $0x4] sm:$0x80] %vm825_vm3, %v815_v43  ;;  %v650_v42 = vpop.permute.xlu1 %649 }
0x1696   :  { %653 = vst.msk [vmem:[#allocation2 + $0x3] sm:$0x4] %vm652_vm4, %v650_v42 }
0x1697   :  { %657 = vst.msk [vmem:[#allocation2 + $0xa] sm:$0x8] %vm656_vm5, %v650_v42  ;;  %v985_v49 = vpop.permute.xlu0 %984  ;;  %v4404_v42 = vld [vmem:[%s4877_s9 + $0x38] sm:$0x3] }
0x1699   :  { %v821_v27 = vpop.permute.xlu1 %820 }
0x169a   :  { %824 = vst.msk [vmem:[#allocation2 + $0x4] sm:$0x1] %vm823_vm6, %v821_v27 }
0x169b   :  { %828 = vst.msk [vmem:[#allocation2 + $0xb] sm:$0x2] %vm827_vm1, %v821_v27  ;;  %v1154_v37 = vpop.permute.xlu0 %1153 }
0x169c   :  { %987 = vst.msk [vmem:[#allocation2 + $0x4] sm:$0x1] %vm273_vm7, %v985_v49  ;;  %vm1548_vm7 = vcmask 326656  }
0x169d   :  { %993 = vst.msk [vmem:[#allocation2 + $0xb] sm:$0x2] %vm282_vm8, %v985_v49  ;;  %v990_v38 = vpop.permute.xlu1 %989  ;;  %3476 = vmatprep.mubr.msk.bf16.mxu0 %vm1548_vm7, %v3614_v39  ;;  %vm1709_vm8 = vcmask 1041408   ;;  %v4409_v49 = vld [vmem:[%s4877_s9 + $0x30] sm:$0xff] }
0x169e   :  { %1156 = vst.msk [vmem:[#allocation2 + $0x3] sm:$0x4] %vm472_vm9, %v1154_v37  ;;  %3480 = vmatprep.subr.msk.mxu1 %vm1709_vm8, %v4404_v42  ;;  %vm1696_vm9 = vcmask 474112  }
0x169f   :  { %1162 = vst.msk [vmem:[#allocation2 + $0xa] sm:$0x8] %vm480_vm10, %v1154_v37  ;;  %v1324_v29 = vpop.permute.xlu0 %1323  ;;  %3481 = vmatpush3.msk.msra.mxu1 %vm1709_vm8, %v4404_v42  ;;  %vm1798_vm10 = vcmask 155648  }
0x16a0   :  { %992 = vst.msk [vmem:[#allocation2 - $0x3] sm:$0x40] %vm279_vm11, %v990_v38  ;;  %3482 = vmatprep.subr.mxu1 %v4409_v49  ;;  %vm1813_vm11 = vcmask 319648  }
0x16a1   :  { %994 = vst.msk [vmem:[#allocation2 + $0x4] sm:$0x80] %vm284_vm12, %v990_v38  ;;  %v1159_v31 = vpop.permute.xlu1 %1158  ;;  %3483 = vmatpush3.msra.mxu1 %v4409_v49  ;;  %vm1819_vm12 = vcmask 483648  }
0x16a2   :  { %1326 = vst.msk [vmem:[#allocation2 + $0x2] sm:$0x10] %vm646_vm13, %v1324_v29  ;;  %vm1826_vm13 = vcmask 647648  }
0x16a3   :  { %1332 = vst.msk [vmem:[#allocation2 + $0x9] sm:$0x20] %vm654_vm14, %v1324_v29  ;;  %v4420_v29 = vld [vmem:[%s4877_s9 + $0x28] sm:$0xff]  ;;  %vm1839_vm14 = vcmask 811648  }
0x16a4   :  { %1161 = vst.msk [vmem:[#allocation2 - $0x2] sm:$0x10] %vm478_vm15, %v1159_v31  ;;  %3484 = vmatprep.subr.mxu1 %v4420_v29  ;;  %vm1855_vm15 = vcmask 1041344  }
0x16a5   :  { %1163 = vst.msk [vmem:[#allocation2 + $0x5] sm:$0x20] %vm482_vm0, %v1159_v31  ;;  %v1329_v45 = vpop.permute.xlu1 %1328  ;;  %3485 = vmatpush3.msra.mxu1 %v4420_v29  ;;  %vm1856_vm0 = vcmask 92162  }
0x16a6   :  { %1331 = vst.msk [vmem:[#allocation2 - $0x1] sm:$0x4] %vm652_vm4, %v1329_v45  ;;  %vm4719_vm4 = vmor %vm1856_vm0, %vm1855_vm15  ;;  %vm4892_vm0 = vcmask 188448  }
0x16a7   :  { %1333 = vst.msk [vmem:[#allocation2 + $0x6] sm:$0x8] %vm656_vm5, %v1329_v45  ;;  %vm4886_vm5 = vcmask 254048  }
0x16f8   :  { %v1491_v48 = vpop.permute.xlu0 %1490 }
0x16f9   :  { %1493 = vst.msk [vmem:[#allocation2 + $0x1] sm:$0x40] %vm817_vm2, %v1491_v48  ;;  %vm1852_vm2 = vcmask 982016  }
0x16fa   :  { %1499 = vst.msk [vmem:[#allocation2 + $0x8] sm:$0x80] %vm825_vm3, %v1491_v48  ;;  %vm1846_vm3 = vcmask 975648  }
0x16fe   :  { %v1496_v40 = vpop.permute.xlu1 %1495 }
0x16ff   :  { %1498 = vst.msk [vmem:[#allocation2] sm:$0x1] %vm823_vm6, %v1496_v40  ;;  %vm4891_vm6 = vcmask 418048  }
0x1700   :  { %1500 = vst.msk [vmem:[#allocation2 + $0x7] sm:$0x2] %vm827_vm1, %v1496_v40  ;;  %vm4885_vm1 = vcmask 1043456  }
0x1706   :  { %v1521_v50 = vld [vmem:[#allocation2] sm:$0xff] }
0x1707   :  { %1526 = vrot.lane.b32.xlu1 %v1521_v50, %s3817_s21  ;;  %1532 = vrot.lane.b32.xlu0 %v1521_v50, %s3818_s22  ;;  %v2066_v53 = vld [vmem:[#allocation2 + $0x8] sm:$0xff] }
0x170b   :  { %1523 = vrot.lane.b32.xlu1 %v1521_v50, %s3819_s0  ;;  %1529 = vrot.lane.b32.xlu0 %v1521_v50, %s3820_s23 }
0x170f   :  { %2071 = vrot.lane.b32.xlu1 %v2066_v53, %s3817_s21  ;;  %2077 = vrot.lane.b32.xlu0 %v2066_v53, %s3818_s22  ;;  %s3831_s21 = smov 24  }
0x1713   :  { %2068 = vrot.lane.b32.xlu1 %v2066_v53, %s3819_s0  ;;  %2074 = vrot.lane.b32.xlu0 %v2066_v53, %s3820_s23  ;;  %s3832_s23 = smov 60  }
0x1717   :  { %1610 = vperm.xlu0 %3601, %v1505_v54   ;;  %1615 = vperm.xlu1 %3602, %v1506_v57   ;;  %v4453_v54 = vld [vmem:[%s4877_s9 + $0x10] sm:$0xff] }
0x171b   :  { %1634 = vperm.xlu0 %3601, %v1509_v51   ;;  %1639 = vperm.xlu1 %3602, %v1510_v62   ;;  %v1514_v51 = vld [vmem:[%s4877_s9 + $0x8] sm:$0xff] }
0x171f   :  { %1620 = vperm.xlu0 %3601, %v1507_v60   ;;  %1625 = vperm.xlu1 %3602, %v1508_v63   ;;  %v1513_v60 = vld [vmem:[%s4877_s9] sm:$0xff] }
0x1723   :  { %1644 = vperm.xlu0 %3601, %v1511_v58   ;;  %1649 = vperm.xlu1 %3602, %v1512_v61  }
0x1779   :  { %v1527_v1 = vpop.permute.xlu1 %1526  ;;  %v1533_v3 = vpop.permute.xlu0 %1532 }
0x177a   :  { %v1537_v5 = vpack.c.bf16 %v1533_v3, %v1533_v3 }
0x177c   :  { %v1557_v7 = vsel %vm4885_vm1, %v1537_v5, 0  ;;  %3562 = vmatprep.subr.msk.bf16.mxu0 %vm4885_vm1, %v1537_v5 }
0x177d   :  { %v1524_v6 = vpop.permute.xlu1 %1523  ;;  %3471 = vmatpush3.bf16.msra.mxu0 %v1557_v7  ;;  %v1530_v8 = vpop.permute.xlu0 %1529 }
0x177e   :  { %v1536_v10 = vpack.c.bf16 %v1530_v8, %v1527_v1  ;;  %v1535_v9 = vpack.c.bf16 %v1524_v6, %v1521_v50  ;;  %v4444_v50 = vld [vmem:[%s4877_s9 + $0x18] sm:$0xff] }
0x1780   :  { %3472 = vmatprep.subr.bf16.mxu0 %v1536_v10 }
0x1781   :  { %3473 = vmatpush3.bf16.msra.mxu0 %v1536_v10  ;;  %v2078_v11 = vpop.permute.xlu0 %2077  ;;  %v2072_v12 = vpop.permute.xlu1 %2071 }
0x1782   :  { %3474 = vmatprep.subr.bf16.mxu0 %v1535_v9  ;;  %v2082_v34 = vpack.c.bf16 %v2078_v11, %v2078_v11 }
0x1784   :  { %v2084_v15 = vsel %vm4885_vm1, %v2082_v34, 0 }
0x1785   :  { %3475 = vmatpush3.bf16.msra.mxu0 %v1535_v9  ;;  %v2075_v14 = vpop.permute.xlu0 %2074  ;;  %v2069_v16 = vpop.permute.xlu1 %2068 }
0x1786   :  { %3563 = vmatprep.subr.msk.bf16.mxu0 %vm4885_vm1, %v2082_v34  ;;  %v2081_v32 = vpack.c.bf16 %v2075_v14, %v2072_v12  ;;  %v2080_v17 = vpack.c.bf16 %v2069_v16, %v2066_v53  ;;  %vm1928_vm1 = vcmask 352448  }
0x1788   :  { %3477 = vmatmul.mubr.msk.bf16.vlgmr.msra.gmra.mxu0 %vm1548_vm7, %v3615_v13 }
0x1789   :  { %3503 = vmatpush3.bf16.msra.mxu0 %v2084_v15  ;;  %3508 = vmatprep.mubr.msk.bf16.mxu0 %vm1548_vm7, %v3614_v39  ;;  %v4434_v39 = vld [vmem:[%s4877_s9 + $0x20] sm:$0xff]  ;;  %s3822_s9 = smov 112  }
0x178a   :  { %3504 = vmatprep.subr.bf16.mxu0 %v2081_v32  ;;  %3486 = vmatprep.subr.mxu1 %v4434_v39 }
0x178b   :  { %3487 = vmatpush3.msra.mxu1 %v4434_v39 }
0x178c   :  { %3488 = vmatprep.subr.mxu1 %v4444_v50 }
0x178d   :  { %3505 = vmatpush3.bf16.msra.mxu0 %v2081_v32  ;;  %3489 = vmatpush3.msra.mxu1 %v4444_v50 }
0x178e   :  { %3506 = vmatprep.subr.bf16.mxu0 %v2080_v17  ;;  %3490 = vmatprep.subr.mxu1 %v4453_v54 }
0x178f   :  { %3491 = vmatpush3.msra.mxu1 %v4453_v54 }
0x1790   :  { %3492 = vmatprep.subr.mxu1 %v1514_v51 }
0x1791   :  { %3507 = vmatpush3.bf16.msra.mxu0 %v2080_v17  ;;  %3493 = vmatpush3.msra.mxu1 %v1514_v51 }
0x1792   :  { %v1611_v18 = vpop.permute.xlu0 %1610  ;;  %v1616_v19 = vpop.permute.xlu1 %1615  ;;  %3494 = vmatprep.subr.mxu1 %v1513_v60 }
0x1793   :  { %3495 = vmatpush3.msra.mxu1 %v1513_v60 }
0x1794   :  { %3509 = vmatmul.mubr.msk.bf16.vlgmr.msra.gmra.mxu0 %vm1548_vm7, %v3615_v13  ;;  %3512 = vmatprep.subr.msk.mxu1 %vm1709_vm8, %v4404_v42  ;;  %vm4887_vm7 = vcmask 582048  }
0x1796   :  { %v1635_v20 = vpop.permute.xlu0 %1634  ;;  %v1640_v30 = vpop.permute.xlu1 %1639 }
0x179a   :  { %v1621_v22 = vpop.permute.xlu0 %1620  ;;  %v1626_v33 = vpop.permute.xlu1 %1625 }
0x179e   :  { %v1645_v0 = vpop.permute.xlu0 %1644  ;;  %v1650_v52 = vpop.permute.xlu1 %1649 }
0x1848   :  { %v3478_v21 = vpop.f32.mrf.mxu0 }
0x1849   :  { %v1630_v26 = vmul.f32 %v3478_v21, %v1621_v22 }
0x184a   :  { %v1593_v24 = vpop.f32.mrf.mxu0 }
0x184b   :  { %v1628_v36 = vmul.f32 %v1611_v18, %v1593_v24  ;;  %v4389_v4 = vadd.f32 %v1645_v0, %v1630_v26 }
0x184c   :  { %v3479_v25 = vpop.f32.mrf.mxu0 }
0x184d   :  { %v4385_v28 = vadd.f32 %v1635_v20, %v1628_v36  ;;  %v1631_v55 = vmul.f32 %v3479_v25, %v1626_v33 }
0x184e   :  { %v1596_v35 = vpop.f32.mrf.mxu0 }
0x184f   :  { %v1629_v41 = vmul.f32 %v1616_v19, %v1596_v35  ;;  %1660 = vrot.lane.b32.xlu0 %v4385_v28, %s3819_s0  ;;  %v4397_v46 = vadd.f32 %v1650_v52, %v1631_v55 }
0x1851   :  { %v4391_v59 = vadd.f32 %v1640_v30, %v1629_v41 }
0x1853   :  { %1664 = vrot.lane.b32.xlu0 %v4389_v4, %s3819_s0  ;;  %1662 = vrot.lane.b32.xlu1 %v4391_v59, %s3819_s0 }
0x1854   :  { %v3510_v56 = vpop.f32.mrf.mxu0 }
0x1855   :  { %v2137_v27 = vmul.f32 %v3510_v56, %v1621_v22 }
0x1856   :  { %v2120_v47 = vpop.f32.mrf.mxu0 }
0x1857   :  { %v2135_v44 = vmul.f32 %v2120_v47, %v1611_v18  ;;  %1666 = vrot.lane.b32.xlu1 %v4397_v46, %s3819_s0  ;;  %v4426_v45 = vadd.f32 %v2137_v27, %v1645_v0 }
0x1858   :  { %v3511_v43 = vpop.f32.mrf.mxu0 }
0x1859   :  { %v4411_v37 = vadd.f32 %v2135_v44, %v1635_v20  ;;  %v2138_v48 = vmul.f32 %v3511_v43, %v1626_v33 }
0x185a   :  { %v2123_v38 = vpop.f32.mrf.mxu0 }
0x185b   :  { %v2136_v31 = vmul.f32 %v2123_v38, %v1616_v19  ;;  %2147 = vrot.lane.b32.xlu0 %v4411_v37, %s3819_s0  ;;  %v4447_v53 = vadd.f32 %v2138_v48, %v1650_v52 }
0x185d   :  { %v4428_v40 = vadd.f32 %v2136_v31, %v1640_v30 }
0x185f   :  { %2151 = vrot.lane.b32.xlu0 %v4426_v45, %s3819_s0  ;;  %2149 = vrot.lane.b32.xlu1 %v4428_v40, %s3819_s0 }
0x1863   :  { %2153 = vrot.lane.b32.xlu1 %v4447_v53, %s3819_s0 }
0x18c1   :  { %v1661_v57 = vpop.permute.xlu0 %1660 }
0x18c2   :  { %v1672_v58 = vmax.f32 %v4385_v28, %v1661_v57 }
0x18c4   :  { %1680 = vrot.lane.b32.xlu0 %v1672_v58, %s3819_s0 }
0x18c5   :  { %v1665_v62 = vpop.permute.xlu0 %1664  ;;  %v1663_v63 = vpop.permute.xlu1 %1662 }
0x18c6   :  { %v1674_v61 = vmax.f32 %v4389_v4, %v1665_v62  ;;  %v1673_v1 = vmax.f32 %v4391_v59, %v1663_v63 }
0x18c8   :  { %1684 = vrot.lane.b32.xlu0 %v1674_v61, %s3819_s0  ;;  %1682 = vrot.lane.b32.xlu1 %v1673_v1, %s3819_s0 }
0x18c9   :  { %v1667_v3 = vpop.permute.xlu1 %1666 }
0x18ca   :  { %v1675_v5 = vmax.f32 %v4397_v46, %v1667_v3 }
0x18cc   :  { %1686 = vrot.lane.b32.xlu1 %v1675_v5, %s3819_s0 }
0x18cd   :  { %v2148_v7 = vpop.permute.xlu0 %2147 }
0x18ce   :  { %v2159_v6 = vmax.f32 %v4411_v37, %v2148_v7 }
0x18d0   :  { %2167 = vrot.lane.b32.xlu0 %v2159_v6, %s3819_s0 }
0x18d1   :  { %v2152_v8 = vpop.permute.xlu0 %2151  ;;  %v2150_v10 = vpop.permute.xlu1 %2149 }
0x18d2   :  { %v2161_v9 = vmax.f32 %v4426_v45, %v2152_v8  ;;  %v2160_v11 = vmax.f32 %v4428_v40, %v2150_v10 }
0x18d4   :  { %2171 = vrot.lane.b32.xlu0 %v2161_v9, %s3819_s0  ;;  %2169 = vrot.lane.b32.xlu1 %v2160_v11, %s3819_s0 }
0x18d5   :  { %v2154_v12 = vpop.permute.xlu1 %2153 }
0x18d6   :  { %v2162_v34 = vmax.f32 %v4447_v53, %v2154_v12 }
0x18d8   :  { %2173 = vrot.lane.b32.xlu1 %v2162_v34, %s3819_s0  ;;  %s3823_s0 = smov 52  }
0x1936   :  { %v1681_v13 = vpop.permute.xlu0 %1680 }
0x1937   :  { %v1692_v14 = vmax.f32 %v4385_v28, %v1681_v13  ;;  %v3821_v28 = vmov 1983009808  }
0x1938   :  { %v1802_v33 = vunpack.c.l.s4 %v3821_v28  ;;  %v3620_v28 = vld [vmem:[%s4878_s10 + $0xb8] sm:$0xff]  }
0x1939   :  { %3496 = vmatprep.mubr.msk.f32.mxu1 %vm1696_vm9, %v1692_v14 }
0x193a   :  { %v1685_v15 = vpop.permute.xlu0 %1684  ;;  %v1683_v32 = vpop.permute.xlu1 %1682  ;;  %v1803_v35 = vunpack.c.0.s8 %v1802_v33 }
0x193b   :  { %v1694_v16 = vmax.f32 %v4389_v4, %v1685_v15  ;;  %v1693_v17 = vmax.f32 %v4391_v59, %v1683_v32 }
0x193c   :  { %v4514_v41 = vsub.s32 %v1803_v35, %v3962_v23 }
0x193d   :  { %3497 = vmatmul.mubr.msk.f32.vlgmr.msra.gmra.mxu1 %vm1696_vm9, %v1693_v17 }
0x193e   :  { %3513 = vmatpush3.msk.msra.mxu1 %vm1709_vm8, %v4404_v42  ;;  %3499 = vmatprep.mubr.msk.f32.mxu1 %vm1696_vm9, %v1694_v16  ;;  %v1687_v18 = vpop.permute.xlu1 %1686  ;;  %vm1913_vm8 = vcmask 1041280  }
0x193f   :  { %3514 = vmatprep.subr.mxu1 %v4409_v49  ;;  %v1695_v19 = vmax.f32 %v4397_v46, %v1687_v18 }
0x1940   :  { %3515 = vmatpush3.msra.mxu1 %v4409_v49 }
0x1941   :  { %3516 = vmatprep.subr.mxu1 %v4420_v29  ;;  %3500 = vmatmul.mubr.msk.f32.gmra.mxu1 %vm1696_vm9, %v1695_v19 }
0x1942   :  { %3517 = vmatpush3.msra.mxu1 %v4420_v29  ;;  %v2168_v20 = vpop.permute.xlu0 %2167 }
0x1943   :  { %v2179_v30 = vmax.f32 %v4411_v37, %v2168_v20  ;;  %3518 = vmatprep.subr.mxu1 %v4434_v39 }
0x1944   :  { %3519 = vmatpush3.msra.mxu1 %v4434_v39 }
0x1945   :  { %3520 = vmatprep.subr.mxu1 %v4444_v50  ;;  %3528 = vmatprep.mubr.msk.f32.mxu1 %vm1696_vm9, %v2179_v30 }
0x1946   :  { %3521 = vmatpush3.msra.mxu1 %v4444_v50  ;;  %v2170_v21 = vpop.permute.xlu1 %2169  ;;  %v2172_v22 = vpop.permute.xlu0 %2171 }
0x1947   :  { %3522 = vmatprep.subr.mxu1 %v4453_v54  ;;  %v2180_v24 = vmax.f32 %v4428_v40, %v2170_v21  ;;  %v2181_v36 = vmax.f32 %v4426_v45, %v2172_v22 }
0x1948   :  { %3523 = vmatpush3.msra.mxu1 %v4453_v54 }
0x1949   :  { %3524 = vmatprep.subr.mxu1 %v1514_v51 }
0x194a   :  { %3525 = vmatpush3.msra.mxu1 %v1514_v51  ;;  %v2174_v25 = vpop.permute.xlu1 %2173 }
0x194b   :  { %3526 = vmatprep.subr.mxu1 %v1513_v60  ;;  %v2182_v26 = vmax.f32 %v4447_v53, %v2174_v25  ;;  %v3618_v25 = vld [vmem:[%s4878_s10 + $0xf8] sm:$0xff]  }
0x194c   :  { %3527 = vmatpush3.msra.mxu1 %v1513_v60 }
0x194d   :  { %3529 = vmatmul.mubr.msk.f32.vlgmr.msra.gmra.mxu1 %vm1696_vm9, %v2180_v24  ;;  %v3616_v24 = vld [vmem:[%s4878_s10 + $0x78] sm:$0xff]   ;;  %3312 = vmatprep.subr.bf16.mxu1 %v3618_v25 }
0x194e   :  { %3531 = vmatprep.mubr.msk.f32.mxu1 %vm1696_vm9, %v2181_v36  ;;  %v3617_v36 = vld [vmem:[%s4878_s10 + $0x38] sm:$0xff]   ;;  %3290 = vmatprep.subr.bf16.mxu0 %v3616_v24 }
0x194f   :  { %3291 = vmatpush3.bf16.msra.mxu0 %v3617_v36  ;;  %3313 = vmatpush3.bf16.msra.mxu1 %v3620_v28 }
0x1951   :  { %3532 = vmatmul.mubr.msk.f32.gmra.mxu1 %vm1696_vm9, %v2182_v26  ;;  %v3619_v26 = vld [vmem:[%s4878_s10 + $0x70] sm:$0xff]   ;;  %vm1914_vm9 = vcmask 26626  }
0x1952   :  { %3292 = vmatprep.subr.bf16.mxu0 %v3619_v26  ;;  %vm4739_vm15 = vmor %vm1914_vm9, %vm1913_vm8  ;;  %vm1971_vm8 = vcmask 1041376   ;;  %vm1972_vm9 = vcmask 124930  }
0x19fd   :  { %v3498_v0 = vpop.f32.mrf.mxu1 }
0x19fe   :  { %v1873_v4 = vrot.slane %v3498_v0, %v4514_v41  ;;  %v1899_v55 = vcombine.high %v3498_v0, %v3498_v0  ;;  %v3621_v0 = vld [vmem:[%s4878_s10 + $0x30] sm:$0xff]  }
0x19ff   :  { %v1779_v59 = vpop.f32.mrf.mxu1  ;;  %3293 = vmatpush3.bf16.msra.mxu0 %v3621_v0 }
0x1a00   :  { %v1906_v52 = vrot.slane %v1899_v55, %v4514_v41  ;;  %1799 = vst.msk [vmem:[#allocation3] sm:$0x1] %vm1798_vm10, %v1779_v59  ;;  %1874 = vrot.lane.b32.xlu0 %v1873_v4, %s3816_s28  ;;  %v1828_v56 = vcombine.high %v1779_v59, %v1779_v59  ;;  %v3129_v47 = vrot.slane %v1873_v4, 9  ;;  %v1886_v49 = vcombine.high %v1873_v4, %v1873_v4  ;;  %v3622_v4 = vld [vmem:[%s4878_s10 + $0xf0] sm:$0xff]  }
0x1a01   :  { %v4520_v46 = vpop.f32.mrf.mxu1  ;;  %v1807_v27 = vrot.slane %v1779_v59, %v4514_v41  ;;  %3314 = vmatprep.subr.bf16.mxu1 %v3622_v4 }
0x1a02   :  { %1907 = vrot.lane.b32.xlu1 %v1906_v52, %s3822_s9  ;;  %v1835_v23 = vrot.slane %v1828_v56, %v4514_v41  ;;  %v3130_v51 = vrot.slane %v1886_v49, 9  ;;  %v3131_v57 = vrot.slane %v1906_v52, 9  ;;  %v1924_v63 = vcombine.high %v1906_v52, %v1906_v52  ;;  %v3623_v56 = vld [vmem:[%s4878_s10 + $0x68] sm:$0xff]  }
0x1a03   :  { %v4523_v44 = vpop.f32.mrf.mxu1  ;;  %v3125_v29 = vrot.slane %v1807_v27, 9  ;;  %v1815_v45 = vcombine.high %v1807_v27, %v1807_v27  ;;  %v4555_v8 = vrot.slane %v4520_v46, %v4514_v41  ;;  %3294 = vmatprep.subr.bf16.mxu0 %v3623_v56 }
0x1a04   :  { %v4527_v43 = vrot.slane %v4523_v44, %v4514_v41  ;;  %1881 = vrot.lane.b32.xlu0 %v3129_v47, %s3823_s0  ;;  %v4530_v42 = vcombine.high %v1835_v23, %v1835_v23  ;;  %v3127_v5 = vrot.slane %v1835_v23, 9  ;;  %v3132_v6 = vrot.slane %v1924_v63, 9  ;;  %v3624_v47 = vld [vmem:[%s4878_s10 + $0xb0] sm:$0xff]  }
0x1a05   :  { %v3126_v1 = vrot.slane %v1815_v45, 9  ;;  %v3137_v9 = vrot.slane %v4555_v8, 9  ;;  %v1975_v13 = vcombine.high %v4523_v44, %v4523_v44  ;;  %3315 = vmatpush3.bf16.msra.mxu1 %v3624_v47  ;;  %v3626_v44 = vld [vmem:[%s4878_s10 + $0xe8] sm:$0xff]  }
0x1a06   :  { %v4535_v37 = vcombine.high %v4527_v43, %v4527_v43  ;;  %1849 = vrot.lane.b32.xlu1 %v4530_v42, %s3824_s19  ;;  %v3128_v11 = vrot.slane %v4530_v42, 9  ;;  %v3133_v12 = vrot.slane %v4527_v43, 9  ;;  %v3628_v42 = vld [vmem:[%s4878_s10 + $0xa8] sm:$0xff]   ;;  %3316 = vmatprep.subr.bf16.mxu1 %v3626_v44 }
0x1a07   :  { %v1982_v32 = vrot.slane %v1975_v13, %v4514_v41 }
0x1a08   :  { %1887 = vrot.lane.b32.xlu0 %v1886_v49, %s3825_s5  ;;  %v3134_v38 = vrot.slane %v4535_v37, 9 }
0x1a09   :  { %v3135_v35 = vrot.slane %v1982_v32, 9  ;;  %v1995_v52 = vcombine.high %v1982_v32, %v1982_v32  ;;  %3317 = vmatpush3.bf16.msra.mxu1 %v3628_v42 }
0x1a0a   :  { %1965 = vrot.lane.b32.xlu1 %v3134_v38, %s3818_s22  ;;  %v3630_v38 = vld [vmem:[%s4878_s10 + $0xe0] sm:$0xff]  }
0x1a0b   :  { %v3136_v27 = vrot.slane %v1995_v52, 9  ;;  %3318 = vmatprep.subr.bf16.mxu1 %v3630_v38 }
0x1a0c   :  { %1810 = vrot.lane.b32.xlu0 %v3125_v29, %s3826_s20  ;;  %v3631_v29 = vld [vmem:[%s4878_s10 + $0x58] sm:$0xff]  }
0x1a0d   :  { %v3530_v31 = vpop.f32.mrf.mxu1 }
0x1a0e   :  { %v4542_v48 = vrot.slane %v3530_v31, %v4514_v41  ;;  %v2366_v40 = vcombine.high %v3530_v31, %v3530_v31  ;;  %v3632_v31 = vld [vmem:[%s4878_s10 + $0xa0] sm:$0xff]  }
0x1a0f   :  { %v2261_v39 = vpop.f32.mrf.mxu1  ;;  %3319 = vmatpush3.bf16.msra.mxu1 %v3632_v31 }
0x1a10   :  { %2280 = vst.msk [vmem:[#allocation3 + $0x1] sm:$0x1] %vm1798_vm10, %v2261_v39  ;;  %2345 = vrot.lane.b32.xlu1 %v4542_v48, %s3816_s28  ;;  %1816 = vrot.lane.b32.xlu0 %v1815_v45, %s3827_s7  ;;  %v2373_v50 = vrot.slane %v2366_v40, %v4514_v41  ;;  %v2355_v53 = vcombine.high %v4542_v48, %v4542_v48  ;;  %s3830_s28 = smov 4   ;;  %v3151_v18 = vrot.slane %v4542_v48, 9  ;;  %v3633_v48 = vld [vmem:[%s4878_s10 + $0x18] sm:$0xff]   ;;  %vm4888_vm10 = vcmask 746048  }
0x1a11   :  { %v2288_v54 = vrot.slane %v2261_v39, %v4514_v41  ;;  %v2306_v62 = vcombine.high %v2261_v39, %v2261_v39  ;;  %v4567_v15 = vpop.f32.mrf.mxu1  ;;  %v3634_v40 = vld [vmem:[%s4878_s10 + $0xd8] sm:$0xff]   ;;  %v3635_v39 = vld [vmem:[%s4878_s10 + $0x50] sm:$0xff]  }
0x1a12   :  { %v3152_v3 = vrot.slane %v2355_v53, 9  ;;  %v3153_v7 = vrot.slane %v2373_v50, 9  ;;  %v2386_v10 = vcombine.high %v2373_v50, %v2373_v50  ;;  %v4574_v16 = vrot.slane %v4567_v15, %v4514_v41  ;;  %3320 = vmatprep.subr.bf16.mxu1 %v3634_v40 }
0x1a13   :  { %v3147_v60 = vrot.slane %v2288_v54, 9  ;;  %v2295_v58 = vcombine.high %v2288_v54, %v2288_v54  ;;  %v2313_v61 = vrot.slane %v2306_v62, %v4514_v41  ;;  %v2271_v20 = vpop.f32.mrf.mxu1 }
0x1a14   :  { %2374 = vrot.lane.b32.xlu1 %v2373_v50, %s3822_s9  ;;  %1836 = vrot.lane.b32.xlu0 %v1835_v23, %s3828_s8  ;;  %v3154_v17 = vrot.slane %v2386_v10, 9  ;;  %v3159_v19 = vrot.slane %v4574_v16, 9  ;;  %v2404_v30 = vrot.slane %v2271_v20, %v4514_v41  ;;  %v2428_v59 = vcombine.high %v2271_v20, %v2271_v20  ;;  %v3625_v23 = vld [vmem:[%s4878_s10 + $0x28] sm:$0xff]   ;;  %v3636_v50 = vld [vmem:[%s4878_s10 + $0x98] sm:$0xff]  }
0x1a15   :  { %v2324_v34 = vcombine.high %v2313_v61, %v2313_v61  ;;  %v3149_v14 = vrot.slane %v2313_v61, 9  ;;  %v3148_v22 = vrot.slane %v2295_v58, 9  ;;  %3295 = vmatpush3.bf16.msra.mxu0 %v3625_v23  ;;  %3321 = vmatpush3.bf16.msra.mxu1 %v3636_v50 }
0x1a16   :  { %v3155_v33 = vrot.slane %v2404_v30, 9  ;;  %v2415_v55 = vcombine.high %v2404_v30, %v2404_v30  ;;  %v2435_v49 = vrot.slane %v2428_v59, %v4514_v41 }
0x1a17   :  { %v3150_v21 = vrot.slane %v2324_v34, 9 }
0x1a18   :  { %2356 = vrot.lane.b32.xlu1 %v2355_v53, %s3825_s5  ;;  %1894 = vrot.lane.b32.xlu0 %v3130_v51, %s3829_s6  ;;  %v3156_v45 = vrot.slane %v2415_v55, 9  ;;  %v3157_v53 = vrot.slane %v2435_v49, 9  ;;  %v2446_v54 = vcombine.high %v2435_v49, %v2435_v49  ;;  %v3637_v51 = vld [vmem:[%s4878_s10 + $0x10] sm:$0xff]  }
0x1a1a   :  { %v3158_v62 = vrot.slane %v2446_v54, 9 }
0x1a1c   :  { %2291 = vrot.lane.b32.xlu1 %v3147_v60, %s3826_s20  ;;  %1919 = vrot.lane.b32.xlu0 %v3131_v57, %s3830_s28  ;;  %v3638_v60 = vld [vmem:[%s4878_s10 + $0xd0] sm:$0xff]   ;;  %v3639_v57 = vld [vmem:[%s4878_s10 + $0x48] sm:$0xff]  }
0x1a1d   :  { %3322 = vmatprep.subr.bf16.mxu1 %v3638_v60 }
0x1a20   :  { %2296 = vrot.lane.b32.xlu1 %v2295_v58, %s3827_s7  ;;  %1925 = vrot.lane.b32.xlu0 %v1924_v63, %s3831_s21  ;;  %s3842_s7 = smov 76   ;;  %v3640_v58 = vld [vmem:[%s4878_s10 + $0x90] sm:$0xff]   ;;  %v3641_v63 = vld [vmem:[%s4878_s10 + $0x8] sm:$0xff]  }
0x1a21   :  { %3323 = vmatpush3.bf16.msra.mxu1 %v3640_v58 }
0x1a24   :  { %2314 = vrot.lane.b32.xlu1 %v2313_v61, %s3828_s8  ;;  %1823 = vrot.lane.b32.xlu0 %v3126_v1, %s3832_s23  ;;  %s3840_s8 = smov 36   ;;  %v3642_v61 = vld [vmem:[%s4878_s10 + $0xc8] sm:$0xff]   ;;  %v3643_v1 = vld [vmem:[%s4878_s10 + $0x40] sm:$0xff]  }
0x1a25   :  { %3324 = vmatprep.subr.bf16.mxu1 %v3642_v61 }
0x1a28   :  { %2362 = vrot.lane.b32.xlu1 %v3152_v3, %s3829_s6  ;;  %1843 = vrot.lane.b32.xlu0 %v3127_v5, %s3833_s1  ;;  %v3644_v3 = vld [vmem:[%s4878_s10 + $0x88] sm:$0xff]   ;;  %v2033_v5 = vcombine.high %v4555_v8, %v4555_v8 }
0x1a29   :  { %3325 = vmatpush3.bf16.msra.mxu1 %v3644_v3 }
0x1a2c   :  { %2382 = vrot.lane.b32.xlu1 %v3153_v7, %s3830_s28  ;;  %1932 = vrot.lane.b32.xlu0 %v3132_v6, %s3834_s24  ;;  %v3645_v7 = vld [vmem:[%s4878_s10] sm:$0xff]  }
0x1a2d   :  { %v3646_v6 = vld [vmem:[%s4878_s10 + $0xc0] sm:$0xff]  }
0x1a2e   :  { %3326 = vmatprep.subr.bf16.mxu1 %v3646_v6 }
0x1a30   :  { %2387 = vrot.lane.b32.xlu1 %v2386_v10, %s3831_s21  ;;  %1945 = vrot.lane.b32.xlu0 %v4527_v43, %s3815_s3  ;;  %v3627_v43 = vld [vmem:[%s4878_s10 + $0x60] sm:$0xff]   ;;  %v2046_v10 = vcombine.high %v4520_v46, %v4520_v46  ;;  %v2488_v46 = vcombine.high %v4567_v15, %v4567_v15 }
0x1a31   :  { %3296 = vmatprep.subr.bf16.mxu0 %v3627_v43 }
0x1a34   :  { %2023 = vrot.lane.b32.xlu1 %v3137_v9, %s3835_s25  ;;  %1861 = vrot.lane.b32.xlu0 %v3128_v11, %s3836_s26  ;;  %v3138_v9 = vrot.slane %v2033_v5, 9  ;;  %v3647_v11 = vld [vmem:[%s4878_s10 + $0x80] sm:$0xff]  }
0x1a35   :  { %3327 = vmatpush3.bf16.msra.mxu1 %v3647_v11 }
0x1a36   :  { %3550 = vmatprep.subr.bf16.mxu1 %v3813_v2 }
0x1a38   :  { %2325 = vrot.lane.b32.xlu1 %v2324_v34, %s3824_s19  ;;  %1952 = vrot.lane.b32.xlu0 %v3133_v12, %s3837_s27  ;;  %v2053_v12 = vrot.slane %v2046_v10, %v4514_v41 }
0x1a3a   :  { %v3139_v13 = vrot.slane %v2053_v12, 9 }
0x1a3c   :  { %2320 = vrot.lane.b32.xlu1 %v3149_v14, %s3833_s1  ;;  %1958 = vrot.lane.b32.xlu0 %v4535_v37, %s3838_s2  ;;  %v3629_v37 = vld [vmem:[%s4878_s10 + $0x20] sm:$0xff]   ;;  %s3844_s1 = smov 8   ;;  %v2495_v14 = vrot.slane %v2488_v46, %v4514_v41 }
0x1a3d   :  { %3297 = vmatpush3.bf16.msra.mxu0 %v3629_v37 }
0x1a3e   :  { %3298 = vmatprep.subr.bf16.mxu0 %v3631_v29 }
0x1a40   :  { %2393 = vrot.lane.b32.xlu1 %v3154_v17, %s3834_s24  ;;  %1983 = vrot.lane.b32.xlu0 %v1982_v32, %s3839_s29  ;;  %v3161_v32 = vrot.slane %v2495_v14, 9 }
0x1a41   :  { %3299 = vmatpush3.bf16.msra.mxu0 %v3633_v48 }
0x1a42   :  { %3300 = vmatprep.subr.bf16.mxu0 %v3635_v39 }
0x1a44   :  { %2471 = vrot.lane.b32.xlu1 %v3159_v19, %s3835_s25  ;;  %2351 = vrot.lane.b32.xlu0 %v3151_v18, %s3823_s0 }
0x1a45   :  { %3301 = vmatpush3.bf16.msra.mxu0 %v3637_v51 }
0x1a46   :  { %3302 = vmatprep.subr.bf16.mxu0 %v3639_v57 }
0x1a48   :  { %2333 = vrot.lane.b32.xlu1 %v3150_v21, %s3836_s26  ;;  %2302 = vrot.lane.b32.xlu0 %v3148_v22, %s3832_s23  ;;  %s3845_s26 = smov 28  }
0x1a49   :  { %3303 = vmatpush3.bf16.msra.mxu0 %v3641_v63 }
0x1a4a   :  { %3304 = vmatprep.subr.bf16.mxu0 %v3643_v1 }
0x1a4c   :  { %2411 = vrot.lane.b32.xlu1 %v3155_v33, %s3837_s27  ;;  %1990 = vrot.lane.b32.xlu0 %v3135_v35, %s3840_s8  ;;  %s3841_s27 = smov 56  }
0x1a4d   :  { %3305 = vmatpush3.bf16.msra.mxu0 %v3645_v7 }
0x1a4e   :  { %3534 = vmatprep.subr.bf16.mxu0 %v3813_v2 }
0x1a50   :  { %2416 = vrot.lane.b32.xlu1 %v2415_v55, %s3838_s2  ;;  %1996 = vrot.lane.b32.xlu0 %v1995_v52, %s3841_s27 }
0x1a54   :  { %2436 = vrot.lane.b32.xlu1 %v2435_v49, %s3839_s29  ;;  %2003 = vrot.lane.b32.xlu0 %v3136_v27, %s3842_s7 }
0x1a58   :  { %2422 = vrot.lane.b32.xlu1 %v3156_v45, %s3818_s22  ;;  %2405 = vrot.lane.b32.xlu0 %v2404_v30, %s3815_s3  ;;  %s3847_s22 = smov 68  }
0x1a5c   :  { %2442 = vrot.lane.b32.xlu1 %v3157_v53, %s3840_s8  ;;  %2447 = vrot.lane.b32.xlu0 %v2446_v54, %s3841_s27  ;;  %s3843_s27 = smov 96  }
0x1a60   :  { %2453 = vrot.lane.b32.xlu1 %v3158_v62, %s3842_s7  ;;  %2016 = vrot.lane.b32.xlu0 %v4555_v8, %s3843_s27  ;;  %v2477_v8 = vcombine.high %v4574_v16, %v4574_v16 }
0x1a62   :  { %v3160_v34 = vrot.slane %v2477_v8, 9 }
0x1a64   :  { %2465 = vrot.lane.b32.xlu1 %v4574_v16, %s3843_s27  ;;  %2034 = vrot.lane.b32.xlu0 %v2033_v5, %s3844_s1 }
0x1a68   :  { %2478 = vrot.lane.b32.xlu1 %v2477_v8, %s3844_s1  ;;  %2041 = vrot.lane.b32.xlu0 %v3138_v9, %s3845_s26 }
0x1a6c   :  { %2484 = vrot.lane.b32.xlu1 %v3160_v34, %s3845_s26  ;;  %2054 = vrot.lane.b32.xlu0 %v2053_v12, %s3846_s30 }
0x1a70   :  { %2496 = vrot.lane.b32.xlu1 %v2495_v14, %s3846_s30  ;;  %2061 = vrot.lane.b32.xlu0 %v3139_v13, %s3847_s22 }
0x1a72   :  { %v1875_v16 = vpop.permute.xlu0 %1874 }
0x1a74   :  { %2502 = vrot.lane.b32.xlu1 %v3161_v32, %s3847_s22  ;;  %v4705_v17 = vpop.permute.xlu1 %1907 }
0x1a75   :  { %v1909_v38 = vrot.slane %v4705_v17, 6 }
0x1a76   :  { %v1882_v18 = vpop.permute.xlu0 %1881 }
0x1a78   :  { %v1850_v19 = vpop.permute.xlu1 %1849 }
0x1a79   :  { %v1851_v59 = vrot.slane %v1850_v19, 6 }
0x1a7a   :  { %v1888_v15 = vpop.permute.xlu0 %1887 }
0x1a7b   :  { %v1853_v23 = vsel %vm1852_vm2, %v1851_v59, %v1850_v19 }
0x1a7c   :  { %v4707_v20 = vpop.permute.xlu1 %1965 }
0x1a7d   :  { %v1967_v40 = vrot.slane %v4707_v20, 6 }
0x1a7e   :  { %v1811_v30 = vpop.permute.xlu0 %1810 }
0x1a7f   :  { %1814 = vst.msk [vmem:[#allocation3] sm:$0x1] %vm1813_vm11, %v1811_v30 }
0x1a82   :  { %v4709_v21 = vpop.permute.xlu1 %2345  ;;  %v1817_v22 = vpop.permute.xlu0 %1816 }
0x1a83   :  { %1820 = vst.msk [vmem:[#allocation3] sm:$0x1] %vm1819_vm12, %v1817_v22 }
0x1a86   :  { %v4711_v24 = vpop.permute.xlu1 %2374  ;;  %v1837_v36 = vpop.permute.xlu0 %1836 }
0x1a87   :  { %v2376_v7 = vrot.slane %v4711_v24, 6 }
0x1a8a   :  { %v4713_v25 = vpop.permute.xlu1 %2356  ;;  %v1895_v26 = vpop.permute.xlu0 %1894 }
0x1a8e   :  { %v2292_v28 = vpop.permute.xlu1 %2291  ;;  %v1920_v33 = vpop.permute.xlu0 %1919 }
0x1a8f   :  { %2294 = vst.msk [vmem:[#allocation3 + $0x1] sm:$0x1] %vm1813_vm11, %v2292_v28  ;;  %vm4889_vm11 = vcmask 916480  }
0x1a90   :  { %v1911_v48 = vsel %vm4889_vm11, %v1909_v38, %v4705_v17  ;;  %vm1968_vm11 = vcmask 1014784   ;;  %v3653_v38 = vld [vmem:[%s4878_s10 + $0x100] sm:$0xff]  }
0x1a91   :  { %v1969_v54 = vsel %vm1968_vm11, %v1967_v40, %v4707_v20  ;;  %v3656_v40 = vld [vmem:[%s4880_s12 + $0x8] sm:$0xff]  }
0x1a92   :  { %v2297_v35 = vpop.permute.xlu1 %2296  ;;  %v1926_v0 = vpop.permute.xlu0 %1925 }
0x1a93   :  { %2299 = vst.msk [vmem:[#allocation3 + $0x1] sm:$0x1] %vm1819_vm12, %v2297_v35  ;;  %vm4890_vm12 = vcmask 910048   ;;  %v3648_v35 = vld [vmem:[%s4878_s10 + $0x128] ss:$0 sps:$4 sm:$0xff]  }
0x1a96   :  { %v4715_v4 = vpop.permute.xlu1 %2314  ;;  %v1824_v55 = vpop.permute.xlu0 %1823 }
0x1a97   :  { %1827 = vst.msk [vmem:[#allocation3] sm:$0x1] %vm1826_vm13, %v1824_v55 }
0x1a98   :  { %1840 = vst.msk [vmem:[#allocation3] sm:$0x1] %vm1839_vm14, %v1837_v36 }
0x1a9a   :  { %v4723_v56 = vpop.permute.xlu1 %2362  ;;  %v1844_v47 = vpop.permute.xlu0 %1843 }
0x1a9b   :  { %1847 = vst.msk [vmem:[#allocation3] sm:$0x1] %vm1846_vm3, %v1844_v47 }
0x1a9c   :  { %1858 = vst.msk [vmem:[#allocation3] sm:$0x5] %vm4719_vm4, %v1853_v23 }
0x1a9e   :  { %v4729_v44 = vpop.permute.xlu1 %2382  ;;  %v1933_v43 = vpop.permute.xlu0 %1932 }
0x1aa2   :  { %v4731_v42 = vpop.permute.xlu1 %2387  ;;  %v1946_v49 = vpop.permute.xlu0 %1945 }
0x1aa6   :  { %v4733_v27 = vpop.permute.xlu1 %2023  ;;  %v1862_v37 = vpop.permute.xlu0 %1861 }
0x1aa7   :  { %1865 = vst.msk [vmem:[#allocation3 + $0x2] sm:$0x1] %vm4886_vm5, %v1862_v37  ;;  %vm1935_vm5 = vcmask 516448   ;;  %v3652_v37 = vld [vmem:[%s4878_s10 + $0x108] sm:$0xff]  }
0x1aa8   :  { %1878 = vst.msk [vmem:[#allocation3 + $0x2] sm:$0x1] %vm4891_vm6, %v1875_v16  ;;  %vm4754_vm6 = vmor %vm1972_vm9, %vm1971_vm8  ;;  %vm1993_vm8 = vcmask 450848   ;;  %vm4900_vm9 = vcmask 254048   ;;  %v2025_v16 = vrot.slane %v4733_v27, 6 }
0x1aa9   :  { %1885 = vst.msk [vmem:[#allocation3 + $0x2] sm:$0x1] %vm4887_vm7, %v1882_v18  ;;  %vm1948_vm7 = vcmask 680448  }
0x1aaa   :  { %1891 = vst.msk [vmem:[#allocation3 + $0x2] sm:$0x1] %vm4888_vm10, %v1888_v15  ;;  %v2326_v31 = vpop.permute.xlu1 %2325  ;;  %v1953_v45 = vpop.permute.xlu0 %1952  ;;  %vm1955_vm10 = vcmask 844448  }
0x1aab   :  { %1898 = vst.msk [vmem:[#allocation3 + $0x2] sm:$0x1] %vm4890_vm12, %v1895_v26  ;;  %vm1961_vm12 = vcmask 1008448   ;;  %v2327_v62 = vrot.slane %v2326_v31, 6 }
0x1aac   :  { %1916 = vst.msk [vmem:[#allocation3 + $0x2] sm:$0x5] %vm4739_vm15, %v1911_v48  ;;  %v3655_v48 = vld [vmem:[%s4880_s12 + $0x10] sm:$0xff]  }
0x1aad   :  { %1923 = vst.msk [vmem:[#allocation3 + $0x4] sm:$0x1] %vm4892_vm0, %v1920_v33  ;;  %vm4893_vm0 = vcmask 286848   ;;  %v2328_v1 = vsel %vm1852_vm2, %v2327_v62, %v2326_v31  ;;  %vm4903_vm2 = vcmask 746048  }
0x1aae   :  { %1929 = vst.msk [vmem:[#allocation3 + $0x4] sm:$0x1] %vm1928_vm1, %v1926_v0  ;;  %v2321_v39 = vpop.permute.xlu1 %2320  ;;  %v1959_v50 = vpop.permute.xlu0 %1958 }
0x1aaf   :  { %1936 = vst.msk [vmem:[#allocation3 + $0x4] sm:$0x1] %vm1935_vm5, %v1933_v43 }
0x1ab0   :  { %1949 = vst.msk [vmem:[#allocation3 + $0x4] sm:$0x1] %vm1948_vm7, %v1946_v49  ;;  %v3650_v49 = vld [vmem:[%s4878_s10 + $0x118] sm:$0xff]  }
0x1ab1   :  { %1956 = vst.msk [vmem:[#allocation3 + $0x4] sm:$0x1] %vm1955_vm10, %v1953_v45  ;;  %v3654_v45 = vld [vmem:[%s4880_s12 + $0x18] sm:$0xff]  }
0x1ab2   :  { %1962 = vst.msk [vmem:[#allocation3 + $0x4] sm:$0x1] %vm1961_vm12, %v1959_v50  ;;  %v2394_v51 = vpop.permute.xlu1 %2393  ;;  %v1984_v60 = vpop.permute.xlu0 %1983 }
0x1ab3   :  { %1974 = vst.msk [vmem:[#allocation3 + $0x4] sm:$0x5] %vm4754_vm6, %v1969_v54 }
0x1ab4   :  { %1987 = vst.msk [vmem:[#allocation3 + $0x6] sm:$0x1] %vm4893_vm0, %v1984_v60  ;;  %vm4902_vm0 = vcmask 582048  }
0x1ab6   :  { %v4765_v57 = vpop.permute.xlu1 %2471  ;;  %v2352_v58 = vpop.permute.xlu0 %2351 }
0x1ab7   :  { %v2473_v15 = vrot.slane %v4765_v57, 6 }
0x1aba   :  { %v2334_v63 = vpop.permute.xlu1 %2333  ;;  %v2303_v61 = vpop.permute.xlu0 %2302 }
0x1abb   :  { %2305 = vst.msk [vmem:[#allocation3 + $0x1] sm:$0x1] %vm1826_vm13, %v2303_v61  ;;  %vm4901_vm13 = vcmask 418048   ;;  %v3163_v61 = vld [vmem:[%s4879_s11] ss:$0 sm:$0xff]  ;;  %s3848_s11 = smov [#allocation4]  }
0x1abc   :  { %2317 = vst.msk [vmem:[#allocation3 + $0x1] sm:$0x1] %vm1839_vm14, %v4715_v4  ;;  %vm1999_vm14 = vcmask 614848  }
0x1abd   :  { %2323 = vst.msk [vmem:[#allocation3 + $0x1] sm:$0x1] %vm1846_vm3, %v2321_v39  ;;  %vm4904_vm3 = vcmask 916480   ;;  %v3657_v39 = vld [vmem:[%s4880_s12] sm:$0xff]  }
0x1abe   :  { %2330 = vst.msk [vmem:[#allocation3 + $0x1] sm:$0x5] %vm4719_vm4, %v2328_v1  ;;  %v2412_v3 = vpop.permute.xlu1 %2411  ;;  %v1991_v5 = vpop.permute.xlu0 %1990  ;;  %v2377_v8 = vsel %vm4904_vm3, %v2376_v7, %v4711_v24  ;;  %vm4905_vm4 = vcmask 910048   ;;  %vm2851_vm3 = vcmask 719872  }
0x1abf   :  { %2336 = vst.msk [vmem:[#allocation3 + $0x3] sm:$0x1] %vm4900_vm9, %v2334_v63  ;;  %vm2006_vm9 = vcmask 778848  }
0x1ac0   :  { %1994 = vst.msk [vmem:[#allocation3 + $0x6] sm:$0x1] %vm1993_vm8, %v1991_v5 }
0x1ac1   :  { %2348 = vst.msk [vmem:[#allocation3 + $0x3] sm:$0x1] %vm4901_vm13, %v4709_v21  ;;  %vm4906_vm13 = vcmask 188448  }
0x1ac2   :  { %2354 = vst.msk [vmem:[#allocation3 + $0x3] sm:$0x1] %vm4902_vm0, %v2352_v58  ;;  %v2417_v6 = vpop.permute.xlu1 %2416  ;;  %v1997_v10 = vpop.permute.xlu0 %1996  ;;  %vm2026_vm0 = vcmask 949248  }
0x1ac3   :  { %2359 = vst.msk [vmem:[#allocation3 + $0x3] sm:$0x1] %vm4903_vm2, %v4713_v25  ;;  %v2027_v19 = vsel %vm2026_vm0, %v2025_v16, %v4733_v27  ;;  %v2474_v21 = vsel %vm2026_vm0, %v2473_v15, %v4765_v57  ;;  %vm4909_vm2 = vmmov 0   ;;  %v3651_v27 = vld [vmem:[%s4878_s10 + $0x110] sm:$0xff]  }
0x1ac4   :  { %2365 = vst.msk [vmem:[#allocation3 + $0x3] sm:$0x1] %vm4905_vm4, %v4723_v56  ;;  %vm3019_vm4 = vcmask 523264  }
0x1ac5   :  { %2000 = vst.msk [vmem:[#allocation3 + $0x6] sm:$0x1] %vm1999_vm14, %v1997_v10 }
0x1ac6   :  { %2379 = vst.msk [vmem:[#allocation3 + $0x3] sm:$0x5] %vm4739_vm15, %v2377_v8  ;;  %v2437_v9 = vpop.permute.xlu1 %2436  ;;  %v2004_v11 = vpop.permute.xlu0 %2003  ;;  %vm4907_vm15 = vcmask 286848  }
0x1ac7   :  { %2385 = vst.msk [vmem:[#allocation3 + $0x5] sm:$0x1] %vm4906_vm13, %v4729_v44 }
0x1ac8   :  { %2390 = vst.msk [vmem:[#allocation3 + $0x5] sm:$0x1] %vm1928_vm1, %v4731_v42  ;;  %vm2029_vm1 = vcmask 1041312  }
0x1ac9   :  { %2396 = vst.msk [vmem:[#allocation3 + $0x5] sm:$0x1] %vm1935_vm5, %v2394_v51  ;;  %vm2030_vm5 = vcmask 59394  }
0x1aca   :  { %2007 = vst.msk [vmem:[#allocation3 + $0x6] sm:$0x1] %vm2006_vm9, %v2004_v11  ;;  %v2423_v12 = vpop.permute.xlu1 %2422  ;;  %v2406_v46 = vpop.permute.xlu0 %2405 }
0x1acb   :  { %v2424_v34 = vrot.slane %v2423_v12, 6  ;;  %2408 = vst.msk [vmem:[#allocation3 + $0x5] sm:$0x1] %vm1948_vm7, %v2406_v46  ;;  %vm2019_vm7 = vcmask 942848  }
0x1acc   :  { %2414 = vst.msk [vmem:[#allocation3 + $0x5] sm:$0x1] %vm1955_vm10, %v2412_v3  ;;  %vm2031_vm10 = vmor %vm2030_vm5, %vm2029_vm1 }
0x1acd   :  { %v2425_v13 = vsel %vm1968_vm11, %v2424_v34, %v2423_v12  ;;  %2419 = vst.msk [vmem:[#allocation3 + $0x5] sm:$0x1] %vm1961_vm12, %v2417_v6  ;;  %vm2044_vm11 = vcmask 385248   ;;  %vm2057_vm12 = vcmask 549248   ;;  %v3203_v12 = vld [vmem:[%s4881_s13] ss:$0 sm:$0xff] }
0x1ace   :  { %2427 = vst.msk [vmem:[#allocation3 + $0x5] sm:$0x5] %vm4754_vm6, %v2425_v13  ;;  %v2443_v14 = vpop.permute.xlu1 %2442  ;;  %v2448_v32 = vpop.permute.xlu0 %2447  ;;  %vm2037_vm6 = vcmask 221248   ;;  %s3082_s13 = sshll.u32 %s3848_s11, 4  ;;  %s3083_s13 = int_to_ptr.vmem [resolvable:$true] %s3082_s13 }
0x1acf   :  { %2439 = vst.msk [vmem:[#allocation3 + $0x7] sm:$0x1] %vm4907_vm15, %v2437_v9  ;;  %s3790_s25 = scalar_lea.vmem %s3083_s13, 32  ;;  %p3795_p1 = scmp.lt.s32.totalorder %s3083_s13, %s3083_s13 }
0x1ad0   :  { %2445 = vst.msk [vmem:[#allocation3 + $0x7] sm:$0x1] %vm1993_vm8, %v2443_v14  ;;  %vm2064_vm8 = vcmask 713248   ;;  %p3791_p0 = scmp.ne.s32.totalorder %s3083_s13, %s3790_s25  ;;  %p3796_p2 = scmp.lt.s32.totalorder %s3790_s25, %s3790_s25 }
0x1ad1   :  { %2450 = vst.msk [vmem:[#allocation3 + $0x7] sm:$0x1] %vm1999_vm14, %v2448_v32  ;;  %vm4908_vm14 = vcmask 1043456  }
0x1ad2   :  { %v2454_v17 = vpop.permute.xlu1 %2453  ;;  %v2017_v18 = vpop.permute.xlu0 %2016  ;;  %v2856_v23 = vsel %vm4908_vm14, %v3648_v35, 0  ;;  %p3797_p3 = por %p3796_p2, %p3795_p1 }
0x1ad3   :  { %2456 = vst.msk [vmem:[#allocation3 + $0x7] sm:$0x1] %vm2006_vm9, %v2454_v17  ;;  %vm3063_vm9 = vcmask 33792  }
0x1ad4   :  { %2020 = vst.msk [vmem:[#allocation3 + $0x6] sm:$0x1] %vm2019_vm7, %v2017_v18  ;;  %p3798_p4 = pnand %p3797_p3, %p3791_p0 }
0x1ad5   :  { %2032 = vst.msk [vmem:[#allocation3 + $0x6] sm:$0x5] %vm2031_vm10, %v2027_v19 }
0x1ad6   :  { %v2466_v20 = vpop.permute.xlu1 %2465  ;;  %v2035_v30 = vpop.permute.xlu0 %2034 }
0x1ad7   :  { %2468 = vst.msk [vmem:[#allocation3 + $0x7] sm:$0x1] %vm2019_vm7, %v2466_v20 }
0x1ad8   :  { %2038 = vst.msk [vmem:[#allocation3 + $0x8] sm:$0x1] %vm2037_vm6, %v2035_v30 }
0x1ad9   :  { %2476 = vst.msk [vmem:[#allocation3 + $0x7] sm:$0x5] %vm2031_vm10, %v2474_v21 }
0x1ada   :  { %v2479_v22 = vpop.permute.xlu1 %2478  ;;  %v2042_v24 = vpop.permute.xlu0 %2041 }
0x1adb   :  { %2481 = vst.msk [vmem:[#allocation3 + $0x9] sm:$0x1] %vm2037_vm6, %v2479_v22 }
0x1adc   :  { %2045 = vst.msk [vmem:[#allocation3 + $0x8] sm:$0x1] %vm2044_vm11, %v2042_v24 }
0x1ade   :  { %v2485_v36 = vpop.permute.xlu1 %2484  ;;  %v2055_v25 = vpop.permute.xlu0 %2054 }
0x1adf   :  { %2487 = vst.msk [vmem:[#allocation3 + $0x9] sm:$0x1] %vm2044_vm11, %v2485_v36 }
0x1ae0   :  { %2058 = vst.msk [vmem:[#allocation3 + $0x8] sm:$0x1] %vm2057_vm12, %v2055_v25  ;;  %v2506_v26 = vld [vmem:[#allocation3] sm:$0xff] }
0x1ae1   :  { %v2517_v28 = vrot.slane %v2506_v26, %v4514_v41  ;;  %v2510_v33 = vcombine.high %v2506_v26, %v2506_v26 }
0x1ae2   :  { %v2497_v0 = vpop.permute.xlu1 %2496  ;;  %v2062_v4 = vpop.permute.xlu0 %2061 }
0x1ae3   :  { %v2525_v55 = vcombine.high %v2517_v28, %v2517_v28  ;;  %v2524_v59 = vrot.slane %v2510_v33, %v4514_v41  ;;  %2499 = vst.msk [vmem:[#allocation3 + $0x9] sm:$0x1] %vm2057_vm12, %v2497_v0  ;;  %v2539_v47 = vpack.c.bf16 %v2517_v28, %v2517_v28  ;;  %v3649_v41 = vld [vmem:[%s4878_s10 + $0x120] sm:$0xff]  }
0x1ae4   :  { %2065 = vst.msk [vmem:[#allocation3 + $0x8] sm:$0x1] %vm2064_vm8, %v2062_v4 }
0x1ae5   :  { %v2540_v52 = vpack.c.bf16 %v2525_v55, %v2525_v55  ;;  %v2526_v56 = vcombine.high %v2524_v59, %v2524_v59  ;;  %v2541_v42 = vpack.c.bf16 %v2524_v59, %v2524_v59 }
0x1ae6   :  { %v2503_v44 = vpop.permute.xlu1 %2502 }
0x1ae7   :  { %2890 = vmatprep.mubr.bf16.mxu0 %v2540_v52  ;;  %v2542_v43 = vpack.c.bf16 %v2526_v56, %v2526_v56  ;;  %2505 = vst.msk [vmem:[#allocation3 + $0x9] sm:$0x1] %vm2064_vm8, %v2503_v44 }
0x1ae8   :  { %2891 = vmatmul.mubr.bf16.vlgmr.msra.gmra.mxu0 %v2539_v47 }
0x1ae9   :  { %3535 = vmatpush3.bf16.msra.mxu0 %v2856_v23  ;;  %2930 = vmatprep.mubr.bf16.mxu1 %v2542_v43 }
0x1aea   :  { %2931 = vmatmul.mubr.bf16.vlgmr.msra.gmra.mxu1 %v2541_v42  ;;  %3536 = vmatprep.subr.bf16.mxu0 %v3813_v2 }
0x1aeb   :  { %3546 = vmatprep.mubr.msk.bf16.mxu0 %vm4909_vm2, %v3813_v2  ;;  %3558 = vmatprep.mubr.msk.bf16.mxu1 %vm4909_vm2, %v3813_v2 }
0x1aec   :  { %3551 = vmatpush3.bf16.msra.mxu1 %v3654_v45 }
0x1aed   :  { %3537 = vmatpush3.bf16.msra.mxu0 %v3649_v41  ;;  %3552 = vmatprep.subr.bf16.mxu1 %v3813_v2 }
0x1aee   :  { %3538 = vmatprep.subr.bf16.mxu0 %v3813_v2  ;;  %v3162_v29 = vld.sshfl [vmem:[#allocation3 + $0x8] sm:$0x3 pattern:$0x76325410] }
0x1aef   :  { %v2543_v31 = vpack.c.bf16 %v3162_v29, %v3162_v29 }
0x1af0   :  { %3553 = vmatpush3.bf16.msra.mxu1 %v3655_v48 }
0x1af1   :  { %3539 = vmatpush3.bf16.msra.mxu0 %v3650_v49  ;;  %3554 = vmatprep.subr.bf16.mxu1 %v3813_v2 }
0x1af2   :  { %3540 = vmatprep.subr.bf16.mxu0 %v3813_v2 }
0x1af4   :  { %3555 = vmatpush3.bf16.msra.mxu1 %v3656_v40 }
0x1af5   :  { %3541 = vmatpush3.bf16.msra.mxu0 %v3651_v27  ;;  %3556 = vmatprep.subr.bf16.mxu1 %v3813_v2 }
0x1af6   :  { %3542 = vmatprep.subr.bf16.mxu0 %v3813_v2 }
0x1af8   :  { %3557 = vmatpush3.bf16.msra.mxu1 %v3657_v39 }
0x1af9   :  { %3543 = vmatpush3.bf16.msra.mxu0 %v3652_v37 }
0x1afa   :  { %3544 = vmatprep.subr.bf16.mxu0 %v3813_v2 }
0x1afd   :  { %3545 = vmatpush3.bf16.msra.mxu0 %v3653_v38 }
0x1b00   :  { %3547 = vmatmul.mubr.msk.bf16.vlgmr.msra.gmra.mxu0 %vm2851_vm3, %v2543_v31 }
0x1ba8   :  { %v3306_v50 = vpop.f32.mrf.mxu0 }
0x1baa   :  { %v3307_v53 = vpop.f32.mrf.mxu0  ;;  %v3328_v54 = vpop.f32.mrf.mxu1 }
0x1bab   :  { %v3308_v63 = vadd.f32 %v3307_v53, %v3306_v50 }
0x1bac   :  { %v3309_v51 = vpop.f32.mrf.mxu0  ;;  %v3329_v60 = vpop.f32.mrf.mxu1 }
0x1bad   :  { %v2893_v1 = vadd.f32 %v3308_v63, %v3163_v61  ;;  %v3330_v2 = vadd.f32 %v3329_v60, %v3328_v54 }
0x1bae   :  { %v3310_v57 = vpop.f32.mrf.mxu0  ;;  %v3331_v58 = vpop.f32.mrf.mxu1 }
0x1baf   :  { %v2933_v3 = vadd.f32 %v3330_v2, %v2893_v1 }
0x1bb0   :  { %v3332_v62 = vpop.f32.mrf.mxu1 }
0x1bc0   :  { %v2972_v5 = vpop.f32.mrf.mxu0 }
0x1bc1   :  { %v2973_v7 = vadd.f32 %v2972_v5, %v2933_v3 }
0x1bc2   :  { %v3548_v6 = vpop.f32.mrf.mxu0 }
0x1bc3   :  { %v2978_v10 = vmax.f32 %v2973_v7, 0.0 }
0x1bc4   :  { %v2975_v8 = vpop.f32.mrf.mxu0 }
0x1bc5   :  { %v2979_v9 = vpack.c.bf16 %v2978_v10, %v2978_v10 }
0x1bc6   :  { %v3549_v11 = vpop.f32.mrf.mxu0 }
0x1bc7   :  { %3559 = vmatmul.mubr.msk.bf16.vlgmr.msra.gmra.mxu1 %vm3019_vm4, %v2979_v9 }
0x1c87   :  { %v3057_v46 = vpop.f32.mrf.mxu1 }
0x1c88   :  { %v3058_v34 = vadd.f32 %v3203_v12, %v3057_v46 }
0x1c89   :  { %v3560_v13 = vpop.f32.mrf.mxu1 }
0x1c8a   :  { %v3064_v14 = vsel %vm3063_vm9, %v3058_v34, -inf }
0x1c8b   :  { %3065 = vmax.xlane.f32.xlu0 %v3064_v14  ;;  %v3060_v32 = vpop.f32.mrf.mxu1 }
0x1c8d   :  { %v3561_v16 = vpop.f32.mrf.mxu1 }
0x1d14   :  { %v3066_v17 = vpop.xlane.xlu0 %3065 }
0x1d15   :  { %v3067_v18 = vsub.f32 %v3058_v34, %v3066_v17 }
0x1d17   :  { %v3068_v19 = vmul.f32 1.442695, %v3067_v18 }
0x1d19   :  { %3786 = vpow2.f32 %v3068_v19 }
0x1d26   :  { %v3787_v15 = vpop.eup %3786 }
0x1d27   :  { %v3070_v20 = vsel %vm3063_vm9, %v3787_v15, 0.0 }
0x1d28   :  { %3071 = vadd.xlane.f32.xlu1 %v3070_v20 }
0x1db1   :  { %v3072_v30 = vpop.xlane.xlu1 %3071 }
0x1db2   :  { %3788 = vrcp.f32 %v3072_v30 }
0x1dbf   :  { %v3789_v21 = vpop.eup %3788 }
0x1dc0   :  { %v3074_v22 = vmul.f32 %v3789_v21, %v3787_v15 }
0x1dc2   :  { %3075 = vst.msk [vmem:[#allocation4] sm:$0x3] %vm3063_vm9, %v3074_v22 }
0x1dc3   :  { %3801 = shalt.err (!%p3798_p4)
}
0x1dc4   :  { %3085 = dma.vmem_to_hbm [thread:$0]  %s3083_s13, 32, %s4882_s14, [#allocation5]  }
0x1dc5   :  { %3810 = dma.done.wait [#allocation5], 32  }
0x1dc6   :  { %3811 = vsyncadd [#allocation5], 4294967264 }
0x1dc7   :  { %3089 = vsyncpa [#allocation5], 1 }

</bundles_post_ra>
